<compile_context>
chip_gen: v6e
topology: v6e:2x2x1
jax: 0.10.0
libtpu: 0.0.40
codegen_flags: <defaults>
</compile_context>

<pallas_src>
import functools

import jax
import jax.numpy as jnp
from jax import lax
from jax.experimental import pallas as pl
from jax.experimental.pallas import tpu as pltpu

_MXU_DTYPE = jnp.bfloat16  # MXU operand dtype; accumulation stays f32.


def _conv3x3_same_w(src, w_ref, out_rows):
    """3x3 conv: VALID along H (caller supplies out_rows + 2 rows of src),
    zero-padded SAME along W (pltpu.roll + boundary masks).

    src:    (out_rows + 2, W, C) float32
    w_ref:  Ref (3, 3*C, Cout) bf16; axis 0 = kh, rows within = kw*C + cin
    returns (out_rows, W, Cout) float32
    """
    rows, W, C = src.shape
    cout = w_ref.shape[-1]

    col = lax.broadcasted_iota(jnp.int32, (1, W, 1), 1)
    # pltpu.roll follows jnp.roll semantics: roll(x, s)[w] == x[w - s].
    left = jnp.where(col > 0, pltpu.roll(src, shift=1, axis=1), 0.0)            # src[:, w-1, :]
    right = jnp.where(col < W - 1, pltpu.roll(src, shift=W - 1, axis=1), 0.0)   # src[:, w+1, :]

    # Fold kw into the lane (K) dim, casting to bf16 here so `wide` is the only
    # 3x-sized buffer (selects above stay f32 -> portable to v5e).
    wide = jnp.concatenate(
        [left.astype(_MXU_DTYPE), src.astype(_MXU_DTYPE), right.astype(_MXU_DTYPE)],
        axis=-1)                                            # (rows, W, 3*C) bf16

    # Three accumulating kh-dots (K = 3*C each) into one f32 accumulator: no 9x im2col.
    acc = jnp.dot(wide[0:out_rows].reshape(out_rows * W, 3 * C), w_ref[0],
                  preferred_element_type=jnp.float32)
    for kh in (1, 2):
        lhs = wide[kh:kh + out_rows].reshape(out_rows * W, 3 * C)
        acc = acc + jnp.dot(lhs, w_ref[kh], preferred_element_type=jnp.float32)
    return acc.reshape(out_rows, W, cout)


def _resblock_kernel(xw_ref, w1_ref, b1_ref, w2_ref, b2_ref, o_ref, *, h_image):
    """One (batch, H-tile) grid step.

    xw_ref: (TH + 4, W, C)    input rows [h0-2, h0+TH+2), zero rows outside the image
    w1_ref: (3, 3*C, C) bf16  conv1 weights (kh, kw*C+cin, cout)
    b1_ref: (1, C)      f32
    w2_ref: (3, 3*C, C) bf16  conv2 weights
    b2_ref: (1, C)      f32
    o_ref : (TH, W, C)        output rows [h0, h0+TH)
    """
    TH, W, C = o_ref.shape
    R1 = TH + 2                                   # conv1 rows: 1-row halo each side for conv2

    x = xw_ref[...].astype(jnp.float32)           # (TH+4, W, C); no-op for f32 inputs

    # ---- conv1 + bias + ReLU (computed for TH+2 rows, incl. conv2's halo) ----
    y1 = _conv3x3_same_w(x, w1_ref, R1)
    y1 = jnp.maximum(y1 + b1_ref[...], 0.0)

    # conv2's SAME padding is *zero*, not "conv1 evaluated outside the image":
    # zero the halo rows that fall outside [0, h_image).  h_image is the true image
    # height (closure), independent of the tiling policy.
    h0 = pl.program_id(1) * TH
    row = h0 - 1 + lax.broadcasted_iota(jnp.int32, (R1, 1, 1), 0)
    y1 = jnp.where((row >= 0) & (row < h_image), y1, 0.0)

    # ---- conv2 + bias ----
    y2 = _conv3x3_same_w(y1, w2_ref, TH) + b2_ref[...]

    # ---- identity shortcut (leading-dim slice of the loaded window) + store ----
    o_ref[...] = (y2 + x[2:2 + TH]).astype(o_ref.dtype)


def _vmem_capacity_bytes():
    """Per-core VMEM capacity; conservative 64 MiB (v7x) if the query is unavailable."""
    try:
        info = pltpu.get_tpu_info()
        cap = getattr(info, "vmem_capacity_bytes", None)
        if cap:
            return int(cap)
    except Exception:
        pass
    return 64 * 1024 * 1024


def _per_step_vmem_bytes(TH, W, C, in_bytes=4, out_bytes=4):
    """Conservative per-grid-step VMEM estimate (blocks + in-kernel intermediates)."""
    tile = (TH + 4) * W * C
    io = 2 * tile * in_bytes + 2 * TH * W * C * out_bytes          # double-buffered blocks
    wts = 2 * 2 * 9 * C * C * 2 + 4 * 2 * C * 4                    # weights + biases
    inter = 7 * tile * 4                                           # x, roll temps, wide, acc, y1
    return io + wts + inter


def _pick_tile_h(H, W, C, budget_bytes):
    cands = sorted({t for t in (256, 128, 64, 32, 16, 8, H) if t <= H and H % t == 0},
                   reverse=True)
    for t in cands:
        if _per_step_vmem_bytes(t, W, C) <= budget_bytes:
            return t
    return cands[-1]   # smallest available; TODO(synk): add W tiling if even this is too big


def resblock_forward(x_nchw, w1_hwio, b1, w2_hwio, b2, *, tile_h=None):
    """ResBlock forward (default config). Input/output are NCHW like PyTorch."""
    N, C, H, W = x_nchw.shape
    assert w1_hwio.shape == (3, 3, C, C) and w2_hwio.shape == (3, 3, C, C)

    vmem_cap = _vmem_capacity_bytes()
    vmem_limit = min(int(vmem_cap * 0.8), 112 * 1024 * 1024)   # ~51 MiB v7x, ~102 MiB v5e/v6e

    if tile_h is None:
        TH = _pick_tile_h(H, W, C, vmem_limit)
        # v7x megacore: make sure there are >= 2 (parallel) grid steps when possible.
        while N * (H // TH) < 2 and TH >= 16 and H % (TH // 2) == 0:
            TH //= 2
    else:
        TH = tile_h if H % tile_h == 0 else H
    n_th = H // TH

    # NCHW -> NHWC (layout glue; the conv contraction is over lanes = channels).
    x_nhwc = jnp.transpose(x_nchw, (0, 2, 3, 1))

    # Overlapping H-tiles with a 2-row halo each side (zero rows beyond the image), so
    # conv1 can produce the 1-row output halo conv2 needs.  Built as ONE fused
    # pad + gather (no Python slice/stack loop).  No W padding: the W boundary is
    # handled in-kernel with pltpu.roll + masks, keeping slices/stores lane-aligned.
    xh = jnp.pad(x_nhwc, ((0, 0), (2, 2), (0, 0), (0, 0)))
    row_idx = jnp.arange(n_th)[:, None] * TH + jnp.arange(TH + 4)[None, :]
    xwin = xh[:, row_idx]                                   # (N, n_th, TH+4, W, C)

    # HWIO -> (3, 3*C, C) (kh leading, kw*C+cin rows); bf16 MXU operands, f32 accumulate.
    w1r = w1_hwio.reshape(3, 3 * C, C).astype(_MXU_DTYPE)
    w2r = w2_hwio.reshape(3, 3 * C, C).astype(_MXU_DTYPE)
    b1_2d = b1.reshape(1, C).astype(jnp.float32)
    b2_2d = b2.reshape(1, C).astype(jnp.float32)

    kernel = functools.partial(_resblock_kernel, h_image=H)

    def _run(single_buffer_weights):
        def const_spec(shape):
            idx = lambda b, t, _n=len(shape): (0,) * _n
            if single_buffer_weights:
                # Constant index_map -> fetched once; double-buffering would only waste VMEM.
                return pl.BlockSpec(shape, idx, pipeline_mode=pl.Buffered(1))
            return pl.BlockSpec(shape, idx)

        return pl.pallas_call(
            kernel,
            out_shape=jax.ShapeDtypeStruct((N, H, W, C), x_nchw.dtype),
            grid_spec=pltpu.PrefetchScalarGridSpec(
                num_scalar_prefetch=0,
                grid=(N, n_th),
                in_specs=[
                    pl.BlockSpec((None, None, TH + 4, W, C),
                                 lambda b, t: (b, t, 0, 0, 0)),
                    const_spec((3, 3 * C, C)),
                    const_spec((1, C)),
                    const_spec((3, 3 * C, C)),
                    const_spec((1, C)),
                ],
                out_specs=pl.BlockSpec((None, TH, W, C),
                                       lambda b, t: (b, t, 0, 0)),
            ),
            compiler_params=pltpu.CompilerParams(
                dimension_semantics=("parallel", "parallel"),
                vmem_limit_bytes=vmem_limit,
            ),
        )(xwin, w1r, b1_2d, w2r, b2_2d)

    try:
        out_nhwc = _run(True)
    except Exception:
        # pipeline_mode single-buffering unsupported in this jax build -> default buffering.
        out_nhwc = _run(False)

    return jnp.transpose(out_nhwc, (0, 3, 1, 2))  # NHWC -> NCHW


def _reference(x_nchw, w1_hwio, b1, w2_hwio, b2):
    """Pure-JAX reference (lax.conv) mirroring the PyTorch forward."""
    x = jnp.transpose(x_nchw, (0, 2, 3, 1))
    dn = ("NHWC", "HWIO", "NHWC")
    y = lax.conv_general_dilated(x, w1_hwio, (1, 1), "SAME",
                                 dimension_numbers=dn) + b1
    y = jnp.maximum(y, 0.0)
    y = lax.conv_general_dilated(y, w2_hwio, (1, 1), "SAME",
                                 dimension_numbers=dn) + b2
    y = y + x  # identity shortcut (downscale=False)
    return jnp.transpose(y, (0, 3, 1, 2))


def _init_conv_params(key, cin, cout, k=3):
    """Deterministic init matching PyTorch Conv2d defaults (kaiming-uniform bound)."""
    kw_key, b_key = jax.random.split(key)
    fan_in = cin * k * k
    bound = 1.0 / jnp.sqrt(fan_in)
    w = jax.random.uniform(kw_key, (k, k, cin, cout), jnp.float32, -bound, bound)
    b = jax.random.uniform(b_key, (cout,), jnp.float32, -bound, bound)
    return w, b


if __name__ == "__main__":
    key = jax.random.PRNGKey(0)
    kx, k1, k2 = jax.random.split(key, 3)

    N, C, H, W = 2, 4, 16, 16  # small shapes consistent with ResBlock(in=out channels)
    x = jax.random.normal(kx, (N, C, H, W), jnp.float32)

    w1, b1 = _init_conv_params(k1, C, C)
    w2, b2 = _init_conv_params(k2, C, C)

    ref = _reference(x, w1, b1, w2, b2)

    # Explicit tile_h=8 -> 2 H-tiles per image, exercising the halo / multi-tile path.
    out = resblock_forward(x, w1, b1, w2, b2, tile_h=8)
    out = jax.block_until_ready(out)
    assert out.shape == (N, C, H, W)
    # bf16 MXU operands (f32 accumulation) -> loosened tolerance vs the f32 reference.
    assert jnp.allclose(out, ref, atol=5e-2, rtol=5e-2)

    # Default path: VMEM-budget-aware tile selection.
    out_auto = jax.block_until_ready(resblock_forward(x, w1, b1, w2, b2))
    assert jnp.allclose(out_auto, ref, atol=5e-2, rtol=5e-2)

    print("KERNEL_OK")
</pallas_src>

<mosaic_0001>
module attributes {stable_mosaic.version = 11 : i64} {
  func.func @_resblock_kernel(%arg0: i32, %arg1: i32, %arg2: memref<1x1x12x16x4xf32, #tpu.memory_space<vmem>>, %arg3: memref<3x12x4xbf16, #tpu.memory_space<vmem>>, %arg4: memref<1x4xf32, #tpu.memory_space<vmem>>, %arg5: memref<3x12x4xbf16, #tpu.memory_space<vmem>>, %arg6: memref<1x4xf32, #tpu.memory_space<vmem>>, %arg7: memref<1x8x16x4xf32, #tpu.memory_space<vmem>>) attributes {dimension_semantics = [#tpu.dimension_semantics<parallel>, #tpu.dimension_semantics<parallel>], iteration_bounds = array<i64: 2, 2>, scalar_prefetch = 0 : i64, scratch_operands = 0 : i64, tpu.core_type = #tpu.core_type<tc>, window_params = [{transform_indices = @transform_0, window_bounds = array<i64: 1, 1, 12, 16, 4>}, {pipeline_mode = #tpu.pipeline_mode<synchronous>, transform_indices = @transform_1, window_bounds = array<i64: 3, 12, 4>}, {pipeline_mode = #tpu.pipeline_mode<synchronous>, transform_indices = @transform_2, window_bounds = array<i64: 1, 4>}, {pipeline_mode = #tpu.pipeline_mode<synchronous>, transform_indices = @transform_3, window_bounds = array<i64: 3, 12, 4>}, {pipeline_mode = #tpu.pipeline_mode<synchronous>, transform_indices = @transform_4, window_bounds = array<i64: 1, 4>}, {transform_indices = @transform_5, window_bounds = array<i64: 1, 8, 16, 4>}]} {
    %c0 = arith.constant 0 : index
    %c0_0 = arith.constant 0 : index
    %c0_1 = arith.constant 0 : index
    %c0_2 = arith.constant 0 : index
    %c0_3 = arith.constant 0 : index
    %0 = vector.load %arg2[%c0, %c0_0, %c0_1, %c0_2, %c0_3] : memref<1x1x12x16x4xf32, #tpu.memory_space<vmem>>, vector<1x1x12x16x4xf32>
    %1 = vector.shape_cast %0 : vector<1x1x12x16x4xf32> to vector<12x16x4xf32>
    %2 = tpu.iota {dimensions = array<i32: 1>} : vector<1x16x1xi32>
    %c0_i32 = arith.constant 0 : i32
    %3 = vector.broadcast %c0_i32 : i32 to vector<1x16x1xi32>
    %4 = arith.cmpi sgt, %2, %3 : vector<1x16x1xi32>
    %c1_i32 = arith.constant 1 : i32
    %5 = tpu.dynamic_rotate %1 by %c1_i32 dim 1 : vector<12x16x4xf32>, i32 -> vector<12x16x4xf32>
    %cst = arith.constant 0.000000e+00 : f32
    %6 = vector.shape_cast %4 : vector<1x16x1xi1> to vector<1x16x1xi1>
    %7 = vector.broadcast %6 : vector<1x16x1xi1> to vector<12x16x4xi1>
    %8 = vector.broadcast %cst : f32 to vector<12x16x4xf32>
    %9 = arith.select %7, %5, %8 : vector<12x16x4xi1>, vector<12x16x4xf32>
    %c15_i32 = arith.constant 15 : i32
    %10 = vector.broadcast %c15_i32 : i32 to vector<1x16x1xi32>
    %11 = arith.cmpi slt, %2, %10 : vector<1x16x1xi32>
    %c15_i32_4 = arith.constant 15 : i32
    %12 = tpu.dynamic_rotate %1 by %c15_i32_4 dim 1 : vector<12x16x4xf32>, i32 -> vector<12x16x4xf32>
    %cst_5 = arith.constant 0.000000e+00 : f32
    %13 = vector.shape_cast %11 : vector<1x16x1xi1> to vector<1x16x1xi1>
    %14 = vector.broadcast %13 : vector<1x16x1xi1> to vector<12x16x4xi1>
    %15 = vector.broadcast %cst_5 : f32 to vector<12x16x4xf32>
    %16 = arith.select %14, %12, %15 : vector<12x16x4xi1>, vector<12x16x4xf32>
    %17 = arith.truncf %9 : vector<12x16x4xf32> to vector<12x16x4xbf16>
    %18 = arith.truncf %1 : vector<12x16x4xf32> to vector<12x16x4xbf16>
    %19 = arith.truncf %16 : vector<12x16x4xf32> to vector<12x16x4xbf16>
    %20 = tpu.concatenate %17, %18, %19 in 2 : vector<12x16x4xbf16>, vector<12x16x4xbf16>, vector<12x16x4xbf16> -> vector<12x16x12xbf16>
    %21 = vector.extract_strided_slice %20 {offsets = [0, 0, 0], sizes = [10, 16, 12], strides = [1, 1, 1]} : vector<12x16x12xbf16> to vector<10x16x12xbf16>
    %22 = vector.shape_cast %21 : vector<10x16x12xbf16> to vector<160x12xbf16>
    %c0_6 = arith.constant 0 : index
    %c0_7 = arith.constant 0 : index
    %c0_8 = arith.constant 0 : index
    %23 = vector.load %arg3[%c0_6, %c0_7, %c0_8] : memref<3x12x4xbf16, #tpu.memory_space<vmem>>, vector<1x12x4xbf16>
    %24 = vector.shape_cast %23 : vector<1x12x4xbf16> to vector<12x4xbf16>
    %cst_9 = arith.constant dense<0.000000e+00> : vector<160x4xf32>
    %25 = tpu.matmul %22, %24, %cst_9 {dimension_numbers = #tpu.dot_dimension_numbers<[1], [0], [0], [1], [0, 0, 1, 1], [], []>} : vector<160x12xbf16>, vector<12x4xbf16>, vector<160x4xf32> -> vector<160x4xf32>
    %26 = vector.extract_strided_slice %20 {offsets = [1, 0, 0], sizes = [10, 16, 12], strides = [1, 1, 1]} : vector<12x16x12xbf16> to vector<10x16x12xbf16>
    %27 = vector.shape_cast %26 : vector<10x16x12xbf16> to vector<160x12xbf16>
    %c1 = arith.constant 1 : index
    %c0_10 = arith.constant 0 : index
    %c0_11 = arith.constant 0 : index
    %28 = vector.load %arg3[%c1, %c0_10, %c0_11] : memref<3x12x4xbf16, #tpu.memory_space<vmem>>, vector<1x12x4xbf16>
    %29 = vector.shape_cast %28 : vector<1x12x4xbf16> to vector<12x4xbf16>
    %cst_12 = arith.constant dense<0.000000e+00> : vector<160x4xf32>
    %30 = tpu.matmul %27, %29, %cst_12 {dimension_numbers = #tpu.dot_dimension_numbers<[1], [0], [0], [1], [0, 0, 1, 1], [], []>} : vector<160x12xbf16>, vector<12x4xbf16>, vector<160x4xf32> -> vector<160x4xf32>
    %31 = arith.addf %25, %30 : vector<160x4xf32>
    %32 = vector.extract_strided_slice %20 {offsets = [2, 0, 0], sizes = [10, 16, 12], strides = [1, 1, 1]} : vector<12x16x12xbf16> to vector<10x16x12xbf16>
    %33 = vector.shape_cast %32 : vector<10x16x12xbf16> to vector<160x12xbf16>
    %c2 = arith.constant 2 : index
    %c0_13 = arith.constant 0 : index
    %c0_14 = arith.constant 0 : index
    %34 = vector.load %arg3[%c2, %c0_13, %c0_14] : memref<3x12x4xbf16, #tpu.memory_space<vmem>>, vector<1x12x4xbf16>
    %35 = vector.shape_cast %34 : vector<1x12x4xbf16> to vector<12x4xbf16>
    %cst_15 = arith.constant dense<0.000000e+00> : vector<160x4xf32>
    %36 = tpu.matmul %33, %35, %cst_15 {dimension_numbers = #tpu.dot_dimension_numbers<[1], [0], [0], [1], [0, 0, 1, 1], [], []>} : vector<160x12xbf16>, vector<12x4xbf16>, vector<160x4xf32> -> vector<160x4xf32>
    %37 = arith.addf %31, %36 : vector<160x4xf32>
    %38 = vector.shape_cast %37 : vector<160x4xf32> to vector<10x16x4xf32>
    %c0_16 = arith.constant 0 : index
    %c0_17 = arith.constant 0 : index
    %39 = vector.load %arg4[%c0_16, %c0_17] : memref<1x4xf32, #tpu.memory_space<vmem>>, vector<1x4xf32>
    %40 = vector.shape_cast %39 : vector<1x4xf32> to vector<1x1x4xf32>
    %41 = vector.broadcast %40 : vector<1x1x4xf32> to vector<10x16x4xf32>
    %42 = arith.addf %38, %41 : vector<10x16x4xf32>
    %cst_18 = arith.constant 0.000000e+00 : f32
    %43 = vector.broadcast %cst_18 : f32 to vector<10x16x4xf32>
    %44 = arith.maximumf %42, %43 : vector<10x16x4xf32>
    %c8_i32 = arith.constant 8 : i32
    %45 = arith.muli %arg1, %c8_i32 : i32
    %c1_i32_19 = arith.constant 1 : i32
    %46 = arith.subi %45, %c1_i32_19 : i32
    %47 = tpu.iota {dimensions = array<i32: 0>} : vector<10x1x1xi32>
    %48 = vector.broadcast %46 : i32 to vector<10x1x1xi32>
    %49 = arith.addi %48, %47 : vector<10x1x1xi32>
    %c0_i32_20 = arith.constant 0 : i32
    %50 = vector.broadcast %c0_i32_20 : i32 to vector<10x1x1xi32>
    %51 = arith.cmpi sge, %49, %50 : vector<10x1x1xi32>
    %c16_i32 = arith.constant 16 : i32
    %52 = vector.broadcast %c16_i32 : i32 to vector<10x1x1xi32>
    %53 = arith.cmpi slt, %49, %52 : vector<10x1x1xi32>
    %54 = arith.andi %51, %53 : vector<10x1x1xi1>
    %cst_21 = arith.constant 0.000000e+00 : f32
    %55 = vector.shape_cast %54 : vector<10x1x1xi1> to vector<10x1x1xi1>
    %56 = vector.broadcast %55 : vector<10x1x1xi1> to vector<10x16x4xi1>
    %57 = vector.broadcast %cst_21 : f32 to vector<10x16x4xf32>
    %58 = arith.select %56, %44, %57 : vector<10x16x4xi1>, vector<10x16x4xf32>
    %59 = tpu.iota {dimensions = array<i32: 1>} : vector<1x16x1xi32>
    %c0_i32_22 = arith.constant 0 : i32
    %60 = vector.broadcast %c0_i32_22 : i32 to vector<1x16x1xi32>
    %61 = arith.cmpi sgt, %59, %60 : vector<1x16x1xi32>
    %c1_i32_23 = arith.constant 1 : i32
    %62 = tpu.dynamic_rotate %58 by %c1_i32_23 dim 1 : vector<10x16x4xf32>, i32 -> vector<10x16x4xf32>
    %cst_24 = arith.constant 0.000000e+00 : f32
    %63 = vector.shape_cast %61 : vector<1x16x1xi1> to vector<1x16x1xi1>
    %64 = vector.broadcast %63 : vector<1x16x1xi1> to vector<10x16x4xi1>
    %65 = vector.broadcast %cst_24 : f32 to vector<10x16x4xf32>
    %66 = arith.select %64, %62, %65 : vector<10x16x4xi1>, vector<10x16x4xf32>
    %c15_i32_25 = arith.constant 15 : i32
    %67 = vector.broadcast %c15_i32_25 : i32 to vector<1x16x1xi32>
    %68 = arith.cmpi slt, %59, %67 : vector<1x16x1xi32>
    %c15_i32_26 = arith.constant 15 : i32
    %69 = tpu.dynamic_rotate %58 by %c15_i32_26 dim 1 : vector<10x16x4xf32>, i32 -> vector<10x16x4xf32>
    %cst_27 = arith.constant 0.000000e+00 : f32
    %70 = vector.shape_cast %68 : vector<1x16x1xi1> to vector<1x16x1xi1>
    %71 = vector.broadcast %70 : vector<1x16x1xi1> to vector<10x16x4xi1>
    %72 = vector.broadcast %cst_27 : f32 to vector<10x16x4xf32>
    %73 = arith.select %71, %69, %72 : vector<10x16x4xi1>, vector<10x16x4xf32>
    %74 = arith.truncf %66 : vector<10x16x4xf32> to vector<10x16x4xbf16>
    %75 = arith.truncf %58 : vector<10x16x4xf32> to vector<10x16x4xbf16>
    %76 = arith.truncf %73 : vector<10x16x4xf32> to vector<10x16x4xbf16>
    %77 = tpu.concatenate %74, %75, %76 in 2 : vector<10x16x4xbf16>, vector<10x16x4xbf16>, vector<10x16x4xbf16> -> vector<10x16x12xbf16>
    %78 = vector.extract_strided_slice %77 {offsets = [0, 0, 0], sizes = [8, 16, 12], strides = [1, 1, 1]} : vector<10x16x12xbf16> to vector<8x16x12xbf16>
    %79 = vector.shape_cast %78 : vector<8x16x12xbf16> to vector<128x12xbf16>
    %c0_28 = arith.constant 0 : index
    %c0_29 = arith.constant 0 : index
    %c0_30 = arith.constant 0 : index
    %80 = vector.load %arg5[%c0_28, %c0_29, %c0_30] : memref<3x12x4xbf16, #tpu.memory_space<vmem>>, vector<1x12x4xbf16>
    %81 = vector.shape_cast %80 : vector<1x12x4xbf16> to vector<12x4xbf16>
    %cst_31 = arith.constant dense<0.000000e+00> : vector<128x4xf32>
    %82 = tpu.matmul %79, %81, %cst_31 {dimension_numbers = #tpu.dot_dimension_numbers<[1], [0], [0], [1], [0, 0, 1, 1], [], []>} : vector<128x12xbf16>, vector<12x4xbf16>, vector<128x4xf32> -> vector<128x4xf32>
    %83 = vector.extract_strided_slice %77 {offsets = [1, 0, 0], sizes = [8, 16, 12], strides = [1, 1, 1]} : vector<10x16x12xbf16> to vector<8x16x12xbf16>
    %84 = vector.shape_cast %83 : vector<8x16x12xbf16> to vector<128x12xbf16>
    %c1_32 = arith.constant 1 : index
    %c0_33 = arith.constant 0 : index
    %c0_34 = arith.constant 0 : index
    %85 = vector.load %arg5[%c1_32, %c0_33, %c0_34] : memref<3x12x4xbf16, #tpu.memory_space<vmem>>, vector<1x12x4xbf16>
    %86 = vector.shape_cast %85 : vector<1x12x4xbf16> to vector<12x4xbf16>
    %cst_35 = arith.constant dense<0.000000e+00> : vector<128x4xf32>
    %87 = tpu.matmul %84, %86, %cst_35 {dimension_numbers = #tpu.dot_dimension_numbers<[1], [0], [0], [1], [0, 0, 1, 1], [], []>} : vector<128x12xbf16>, vector<12x4xbf16>, vector<128x4xf32> -> vector<128x4xf32>
    %88 = arith.addf %82, %87 : vector<128x4xf32>
    %89 = vector.extract_strided_slice %77 {offsets = [2, 0, 0], sizes = [8, 16, 12], strides = [1, 1, 1]} : vector<10x16x12xbf16> to vector<8x16x12xbf16>
    %90 = vector.shape_cast %89 : vector<8x16x12xbf16> to vector<128x12xbf16>
    %c2_36 = arith.constant 2 : index
    %c0_37 = arith.constant 0 : index
    %c0_38 = arith.constant 0 : index
    %91 = vector.load %arg5[%c2_36, %c0_37, %c0_38] : memref<3x12x4xbf16, #tpu.memory_space<vmem>>, vector<1x12x4xbf16>
    %92 = vector.shape_cast %91 : vector<1x12x4xbf16> to vector<12x4xbf16>
    %cst_39 = arith.constant dense<0.000000e+00> : vector<128x4xf32>
    %93 = tpu.matmul %90, %92, %cst_39 {dimension_numbers = #tpu.dot_dimension_numbers<[1], [0], [0], [1], [0, 0, 1, 1], [], []>} : vector<128x12xbf16>, vector<12x4xbf16>, vector<128x4xf32> -> vector<128x4xf32>
    %94 = arith.addf %88, %93 : vector<128x4xf32>
    %95 = vector.shape_cast %94 : vector<128x4xf32> to vector<8x16x4xf32>
    %c0_40 = arith.constant 0 : index
    %c0_41 = arith.constant 0 : index
    %96 = vector.load %arg6[%c0_40, %c0_41] : memref<1x4xf32, #tpu.memory_space<vmem>>, vector<1x4xf32>
    %97 = vector.shape_cast %96 : vector<1x4xf32> to vector<1x1x4xf32>
    %98 = vector.broadcast %97 : vector<1x1x4xf32> to vector<8x16x4xf32>
    %99 = arith.addf %95, %98 : vector<8x16x4xf32>
    %100 = vector.extract_strided_slice %1 {offsets = [2, 0, 0], sizes = [8, 16, 4], strides = [1, 1, 1]} : vector<12x16x4xf32> to vector<8x16x4xf32>
    %101 = arith.addf %99, %100 : vector<8x16x4xf32>
    %c0_42 = arith.constant 0 : index
    %c0_43 = arith.constant 0 : index
    %c0_44 = arith.constant 0 : index
    %c0_45 = arith.constant 0 : index
    %102 = vector.load %arg7[%c0_42, %c0_43, %c0_44, %c0_45] : memref<1x8x16x4xf32, #tpu.memory_space<vmem>>, vector<1x8x16x4xf32>
    %103 = vector.shape_cast %102 : vector<1x8x16x4xf32> to vector<8x16x4xf32>
    %104 = vector.shape_cast %101 : vector<8x16x4xf32> to vector<1x8x16x4xf32>
    tpu.vector_store %arg7[%c0_42, %c0_43, %c0_44, %c0_45], %104 {strides = array<i32>} : memref<1x8x16x4xf32, #tpu.memory_space<vmem>>, vector<1x8x16x4xf32>,
    return
  }
  func.func @transform_0(%arg0: i32, %arg1: i32) -> (i32, i32, i32, i32, i32) {
    %c0_i32 = arith.constant 0 : i32
    %c0_i32_0 = arith.constant 0 : i32
    %c0_i32_1 = arith.constant 0 : i32
    %c0_i32_2 = arith.constant 0 : i32
    return %arg0, %arg1, %c0_i32, %c0_i32_0, %c0_i32_1 : i32, i32, i32, i32, i32
  }
  func.func @transform_1(%arg0: i32, %arg1: i32) -> (i32, i32, i32) {
    %c0_i32 = arith.constant 0 : i32
    %c0_i32_0 = arith.constant 0 : i32
    %c0_i32_1 = arith.constant 0 : i32
    %c0_i32_2 = arith.constant 0 : i32
    return %c0_i32, %c0_i32_0, %c0_i32_1 : i32, i32, i32
  }
  func.func @transform_2(%arg0: i32, %arg1: i32) -> (i32, i32) {
    %c0_i32 = arith.constant 0 : i32
    %c0_i32_0 = arith.constant 0 : i32
    %c0_i32_1 = arith.constant 0 : i32
    return %c0_i32, %c0_i32_0 : i32, i32
  }
  func.func @transform_3(%arg0: i32, %arg1: i32) -> (i32, i32, i32) {
    %c0_i32 = arith.constant 0 : i32
    %c0_i32_0 = arith.constant 0 : i32
    %c0_i32_1 = arith.constant 0 : i32
    %c0_i32_2 = arith.constant 0 : i32
    return %c0_i32, %c0_i32_0, %c0_i32_1 : i32, i32, i32
  }
  func.func @transform_4(%arg0: i32, %arg1: i32) -> (i32, i32) {
    %c0_i32 = arith.constant 0 : i32
    %c0_i32_0 = arith.constant 0 : i32
    %c0_i32_1 = arith.constant 0 : i32
    return %c0_i32, %c0_i32_0 : i32, i32
  }
  func.func @transform_5(%arg0: i32, %arg1: i32) -> (i32, i32, i32, i32) {
    %c0_i32 = arith.constant 0 : i32
    %c0_i32_0 = arith.constant 0 : i32
    %c0_i32_1 = arith.constant 0 : i32
    return %arg0, %arg1, %c0_i32, %c0_i32_0 : i32, i32, i32, i32
  }
}

module attributes {stable_mosaic.version = 11 : i64} {
  func.func @_resblock_kernel(%arg0: i32, %arg1: i32, %arg2: memref<1x1x12x16x4xf32, #tpu.memory_space<vmem>>, %arg3: memref<3x12x4xbf16, #tpu.memory_space<vmem>>, %arg4: memref<1x4xf32, #tpu.memory_space<vmem>>, %arg5: memref<3x12x4xbf16, #tpu.memory_space<vmem>>, %arg6: memref<1x4xf32, #tpu.memory_space<vmem>>, %arg7: memref<1x8x16x4xf32, #tpu.memory_space<vmem>>) attributes {dimension_semantics = [#tpu.dimension_semantics<parallel>, #tpu.dimension_semantics<parallel>], iteration_bounds = array<i64: 2, 2>, scalar_prefetch = 0 : i64, scratch_operands = 0 : i64, tpu.core_type = #tpu.core_type<tc>, window_params = [{transform_indices = @transform_0, window_bounds = array<i64: 1, 1, 12, 16, 4>}, {pipeline_mode = #tpu.pipeline_mode<synchronous>, transform_indices = @transform_1, window_bounds = array<i64: 3, 12, 4>}, {pipeline_mode = #tpu.pipeline_mode<synchronous>, transform_indices = @transform_2, window_bounds = array<i64: 1, 4>}, {pipeline_mode = #tpu.pipeline_mode<synchronous>, transform_indices = @transform_3, window_bounds = array<i64: 3, 12, 4>}, {pipeline_mode = #tpu.pipeline_mode<synchronous>, transform_indices = @transform_4, window_bounds = array<i64: 1, 4>}, {transform_indices = @transform_5, window_bounds = array<i64: 1, 8, 16, 4>}]} {
    %c0 = arith.constant 0 : index
    %c0_0 = arith.constant 0 : index
    %c0_1 = arith.constant 0 : index
    %c0_2 = arith.constant 0 : index
    %c0_3 = arith.constant 0 : index
    %0 = vector.load %arg2[%c0, %c0_0, %c0_1, %c0_2, %c0_3] : memref<1x1x12x16x4xf32, #tpu.memory_space<vmem>>, vector<1x1x12x16x4xf32>
    %1 = vector.shape_cast %0 : vector<1x1x12x16x4xf32> to vector<12x16x4xf32>
    %2 = tpu.iota {dimensions = array<i32: 1>} : vector<1x16x1xi32>
    %c0_i32 = arith.constant 0 : i32
    %3 = vector.broadcast %c0_i32 : i32 to vector<1x16x1xi32>
    %4 = arith.cmpi sgt, %2, %3 : vector<1x16x1xi32>
    %c1_i32 = arith.constant 1 : i32
    %5 = tpu.dynamic_rotate %1 by %c1_i32 dim 1 : vector<12x16x4xf32>, i32 -> vector<12x16x4xf32>
    %cst = arith.constant 0.000000e+00 : f32
    %6 = vector.shape_cast %4 : vector<1x16x1xi1> to vector<1x16x1xi1>
    %7 = vector.broadcast %6 : vector<1x16x1xi1> to vector<12x16x4xi1>
    %8 = vector.broadcast %cst : f32 to vector<12x16x4xf32>
    %9 = arith.select %7, %5, %8 : vector<12x16x4xi1>, vector<12x16x4xf32>
    %c15_i32 = arith.constant 15 : i32
    %10 = vector.broadcast %c15_i32 : i32 to vector<1x16x1xi32>
    %11 = arith.cmpi slt, %2, %10 : vector<1x16x1xi32>
    %c15_i32_4 = arith.constant 15 : i32
    %12 = tpu.dynamic_rotate %1 by %c15_i32_4 dim 1 : vector<12x16x4xf32>, i32 -> vector<12x16x4xf32>
    %cst_5 = arith.constant 0.000000e+00 : f32
    %13 = vector.shape_cast %11 : vector<1x16x1xi1> to vector<1x16x1xi1>
    %14 = vector.broadcast %13 : vector<1x16x1xi1> to vector<12x16x4xi1>
    %15 = vector.broadcast %cst_5 : f32 to vector<12x16x4xf32>
    %16 = arith.select %14, %12, %15 : vector<12x16x4xi1>, vector<12x16x4xf32>
    %17 = arith.truncf %9 : vector<12x16x4xf32> to vector<12x16x4xbf16>
    %18 = arith.truncf %1 : vector<12x16x4xf32> to vector<12x16x4xbf16>
    %19 = arith.truncf %16 : vector<12x16x4xf32> to vector<12x16x4xbf16>
    %20 = tpu.concatenate %17, %18, %19 in 2 : vector<12x16x4xbf16>, vector<12x16x4xbf16>, vector<12x16x4xbf16> -> vector<12x16x12xbf16>
    %21 = vector.extract_strided_slice %20 {offsets = [0, 0, 0], sizes = [10, 16, 12], strides = [1, 1, 1]} : vector<12x16x12xbf16> to vector<10x16x12xbf16>
    %22 = vector.shape_cast %21 : vector<10x16x12xbf16> to vector<160x12xbf16>
    %c0_6 = arith.constant 0 : index
    %c0_7 = arith.constant 0 : index
    %c0_8 = arith.constant 0 : index
    %23 = vector.load %arg3[%c0_6, %c0_7, %c0_8] : memref<3x12x4xbf16, #tpu.memory_space<vmem>>, vector<1x12x4xbf16>
    %24 = vector.shape_cast %23 : vector<1x12x4xbf16> to vector<12x4xbf16>
    %cst_9 = arith.constant dense<0.000000e+00> : vector<160x4xf32>
    %25 = tpu.matmul %22, %24, %cst_9 {dimension_numbers = #tpu.dot_dimension_numbers<[1], [0], [0], [1], [0, 0, 1, 1], [], []>} : vector<160x12xbf16>, vector<12x4xbf16>, vector<160x4xf32> -> vector<160x4xf32>
    %26 = vector.extract_strided_slice %20 {offsets = [1, 0, 0], sizes = [10, 16, 12], strides = [1, 1, 1]} : vector<12x16x12xbf16> to vector<10x16x12xbf16>
    %27 = vector.shape_cast %26 : vector<10x16x12xbf16> to vector<160x12xbf16>
    %c1 = arith.constant 1 : index
    %c0_10 = arith.constant 0 : index
    %c0_11 = arith.constant 0 : index
    %28 = vector.load %arg3[%c1, %c0_10, %c0_11] : memref<3x12x4xbf16, #tpu.memory_space<vmem>>, vector<1x12x4xbf16>
    %29 = vector.shape_cast %28 : vector<1x12x4xbf16> to vector<12x4xbf16>
    %cst_12 = arith.constant dense<0.000000e+00> : vector<160x4xf32>
    %30 = tpu.matmul %27, %29, %cst_12 {dimension_numbers = #tpu.dot_dimension_numbers<[1], [0], [0], [1], [0, 0, 1, 1], [], []>} : vector<160x12xbf16>, vector<12x4xbf16>, vector<160x4xf32> -> vector<160x4xf32>
    %31 = arith.addf %25, %30 : vector<160x4xf32>
    %32 = vector.extract_strided_slice %20 {offsets = [2, 0, 0], sizes = [10, 16, 12], strides = [1, 1, 1]} : vector<12x16x12xbf16> to vector<10x16x12xbf16>
    %33 = vector.shape_cast %32 : vector<10x16x12xbf16> to vector<160x12xbf16>
    %c2 = arith.constant 2 : index
    %c0_13 = arith.constant 0 : index
    %c0_14 = arith.constant 0 : index
    %34 = vector.load %arg3[%c2, %c0_13, %c0_14] : memref<3x12x4xbf16, #tpu.memory_space<vmem>>, vector<1x12x4xbf16>
    %35 = vector.shape_cast %34 : vector<1x12x4xbf16> to vector<12x4xbf16>
    %cst_15 = arith.constant dense<0.000000e+00> : vector<160x4xf32>
    %36 = tpu.matmul %33, %35, %cst_15 {dimension_numbers = #tpu.dot_dimension_numbers<[1], [0], [0], [1], [0, 0, 1, 1], [], []>} : vector<160x12xbf16>, vector<12x4xbf16>, vector<160x4xf32> -> vector<160x4xf32>
    %37 = arith.addf %31, %36 : vector<160x4xf32>
    %38 = vector.shape_cast %37 : vector<160x4xf32> to vector<10x16x4xf32>
    %c0_16 = arith.constant 0 : index
    %c0_17 = arith.constant 0 : index
    %39 = vector.load %arg4[%c0_16, %c0_17] : memref<1x4xf32, #tpu.memory_space<vmem>>, vector<1x4xf32>
    %40 = vector.shape_cast %39 : vector<1x4xf32> to vector<1x1x4xf32>
    %41 = vector.broadcast %40 : vector<1x1x4xf32> to vector<10x16x4xf32>
    %42 = arith.addf %38, %41 : vector<10x16x4xf32>
    %cst_18 = arith.constant 0.000000e+00 : f32
    %43 = vector.broadcast %cst_18 : f32 to vector<10x16x4xf32>
    %44 = arith.maximumf %42, %43 : vector<10x16x4xf32>
    %c8_i32 = arith.constant 8 : i32
    %45 = arith.muli %arg1, %c8_i32 : i32
    %c1_i32_19 = arith.constant 1 : i32
    %46 = arith.subi %45, %c1_i32_19 : i32
    %47 = tpu.iota {dimensions = array<i32: 0>} : vector<10x1x1xi32>
    %48 = vector.broadcast %46 : i32 to vector<10x1x1xi32>
    %49 = arith.addi %48, %47 : vector<10x1x1xi32>
    %c0_i32_20 = arith.constant 0 : i32
    %50 = vector.broadcast %c0_i32_20 : i32 to vector<10x1x1xi32>
    %51 = arith.cmpi sge, %49, %50 : vector<10x1x1xi32>
    %c16_i32 = arith.constant 16 : i32
    %52 = vector.broadcast %c16_i32 : i32 to vector<10x1x1xi32>
    %53 = arith.cmpi slt, %49, %52 : vector<10x1x1xi32>
    %54 = arith.andi %51, %53 : vector<10x1x1xi1>
    %cst_21 = arith.constant 0.000000e+00 : f32
    %55 = vector.shape_cast %54 : vector<10x1x1xi1> to vector<10x1x1xi1>
    %56 = vector.broadcast %55 : vector<10x1x1xi1> to vector<10x16x4xi1>
    %57 = vector.broadcast %cst_21 : f32 to vector<10x16x4xf32>
    %58 = arith.select %56, %44, %57 : vector<10x16x4xi1>, vector<10x16x4xf32>
    %59 = tpu.iota {dimensions = array<i32: 1>} : vector<1x16x1xi32>
    %c0_i32_22 = arith.constant 0 : i32
    %60 = vector.broadcast %c0_i32_22 : i32 to vector<1x16x1xi32>
    %61 = arith.cmpi sgt, %59, %60 : vector<1x16x1xi32>
    %c1_i32_23 = arith.constant 1 : i32
    %62 = tpu.dynamic_rotate %58 by %c1_i32_23 dim 1 : vector<10x16x4xf32>, i32 -> vector<10x16x4xf32>
    %cst_24 = arith.constant 0.000000e+00 : f32
    %63 = vector.shape_cast %61 : vector<1x16x1xi1> to vector<1x16x1xi1>
    %64 = vector.broadcast %63 : vector<1x16x1xi1> to vector<10x16x4xi1>
    %65 = vector.broadcast %cst_24 : f32 to vector<10x16x4xf32>
    %66 = arith.select %64, %62, %65 : vector<10x16x4xi1>, vector<10x16x4xf32>
    %c15_i32_25 = arith.constant 15 : i32
    %67 = vector.broadcast %c15_i32_25 : i32 to vector<1x16x1xi32>
    %68 = arith.cmpi slt, %59, %67 : vector<1x16x1xi32>
    %c15_i32_26 = arith.constant 15 : i32
    %69 = tpu.dynamic_rotate %58 by %c15_i32_26 dim 1 : vector<10x16x4xf32>, i32 -> vector<10x16x4xf32>
    %cst_27 = arith.constant 0.000000e+00 : f32
    %70 = vector.shape_cast %68 : vector<1x16x1xi1> to vector<1x16x1xi1>
    %71 = vector.broadcast %70 : vector<1x16x1xi1> to vector<10x16x4xi1>
    %72 = vector.broadcast %cst_27 : f32 to vector<10x16x4xf32>
    %73 = arith.select %71, %69, %72 : vector<10x16x4xi1>, vector<10x16x4xf32>
    %74 = arith.truncf %66 : vector<10x16x4xf32> to vector<10x16x4xbf16>
    %75 = arith.truncf %58 : vector<10x16x4xf32> to vector<10x16x4xbf16>
    %76 = arith.truncf %73 : vector<10x16x4xf32> to vector<10x16x4xbf16>
    %77 = tpu.concatenate %74, %75, %76 in 2 : vector<10x16x4xbf16>, vector<10x16x4xbf16>, vector<10x16x4xbf16> -> vector<10x16x12xbf16>
    %78 = vector.extract_strided_slice %77 {offsets = [0, 0, 0], sizes = [8, 16, 12], strides = [1, 1, 1]} : vector<10x16x12xbf16> to vector<8x16x12xbf16>
    %79 = vector.shape_cast %78 : vector<8x16x12xbf16> to vector<128x12xbf16>
    %c0_28 = arith.constant 0 : index
    %c0_29 = arith.constant 0 : index
    %c0_30 = arith.constant 0 : index
    %80 = vector.load %arg5[%c0_28, %c0_29, %c0_30] : memref<3x12x4xbf16, #tpu.memory_space<vmem>>, vector<1x12x4xbf16>
    %81 = vector.shape_cast %80 : vector<1x12x4xbf16> to vector<12x4xbf16>
    %cst_31 = arith.constant dense<0.000000e+00> : vector<128x4xf32>
    %82 = tpu.matmul %79, %81, %cst_31 {dimension_numbers = #tpu.dot_dimension_numbers<[1], [0], [0], [1], [0, 0, 1, 1], [], []>} : vector<128x12xbf16>, vector<12x4xbf16>, vector<128x4xf32> -> vector<128x4xf32>
    %83 = vector.extract_strided_slice %77 {offsets = [1, 0, 0], sizes = [8, 16, 12], strides = [1, 1, 1]} : vector<10x16x12xbf16> to vector<8x16x12xbf16>
    %84 = vector.shape_cast %83 : vector<8x16x12xbf16> to vector<128x12xbf16>
    %c1_32 = arith.constant 1 : index
    %c0_33 = arith.constant 0 : index
    %c0_34 = arith.constant 0 : index
    %85 = vector.load %arg5[%c1_32, %c0_33, %c0_34] : memref<3x12x4xbf16, #tpu.memory_space<vmem>>, vector<1x12x4xbf16>
    %86 = vector.shape_cast %85 : vector<1x12x4xbf16> to vector<12x4xbf16>
    %cst_35 = arith.constant dense<0.000000e+00> : vector<128x4xf32>
    %87 = tpu.matmul %84, %86, %cst_35 {dimension_numbers = #tpu.dot_dimension_numbers<[1], [0], [0], [1], [0, 0, 1, 1], [], []>} : vector<128x12xbf16>, vector<12x4xbf16>, vector<128x4xf32> -> vector<128x4xf32>
    %88 = arith.addf %82, %87 : vector<128x4xf32>
    %89 = vector.extract_strided_slice %77 {offsets = [2, 0, 0], sizes = [8, 16, 12], strides = [1, 1, 1]} : vector<10x16x12xbf16> to vector<8x16x12xbf16>
    %90 = vector.shape_cast %89 : vector<8x16x12xbf16> to vector<128x12xbf16>
    %c2_36 = arith.constant 2 : index
    %c0_37 = arith.constant 0 : index
    %c0_38 = arith.constant 0 : index
    %91 = vector.load %arg5[%c2_36, %c0_37, %c0_38] : memref<3x12x4xbf16, #tpu.memory_space<vmem>>, vector<1x12x4xbf16>
    %92 = vector.shape_cast %91 : vector<1x12x4xbf16> to vector<12x4xbf16>
    %cst_39 = arith.constant dense<0.000000e+00> : vector<128x4xf32>
    %93 = tpu.matmul %90, %92, %cst_39 {dimension_numbers = #tpu.dot_dimension_numbers<[1], [0], [0], [1], [0, 0, 1, 1], [], []>} : vector<128x12xbf16>, vector<12x4xbf16>, vector<128x4xf32> -> vector<128x4xf32>
    %94 = arith.addf %88, %93 : vector<128x4xf32>
    %95 = vector.shape_cast %94 : vector<128x4xf32> to vector<8x16x4xf32>
    %c0_40 = arith.constant 0 : index
    %c0_41 = arith.constant 0 : index
    %96 = vector.load %arg6[%c0_40, %c0_41] : memref<1x4xf32, #tpu.memory_space<vmem>>, vector<1x4xf32>
    %97 = vector.shape_cast %96 : vector<1x4xf32> to vector<1x1x4xf32>
    %98 = vector.broadcast %97 : vector<1x1x4xf32> to vector<8x16x4xf32>
    %99 = arith.addf %95, %98 : vector<8x16x4xf32>
    %100 = vector.extract_strided_slice %1 {offsets = [2, 0, 0], sizes = [8, 16, 4], strides = [1, 1, 1]} : vector<12x16x4xf32> to vector<8x16x4xf32>
    %101 = arith.addf %99, %100 : vector<8x16x4xf32>
    %c0_42 = arith.constant 0 : index
    %c0_43 = arith.constant 0 : index
    %c0_44 = arith.constant 0 : index
    %c0_45 = arith.constant 0 : index
    %102 = vector.load %arg7[%c0_42, %c0_43, %c0_44, %c0_45] : memref<1x8x16x4xf32, #tpu.memory_space<vmem>>, vector<1x8x16x4xf32>
    %103 = vector.shape_cast %102 : vector<1x8x16x4xf32> to vector<8x16x4xf32>
    %104 = vector.shape_cast %101 : vector<8x16x4xf32> to vector<1x8x16x4xf32>
    tpu.vector_store %arg7[%c0_42, %c0_43, %c0_44, %c0_45], %104 {strides = array<i32>} : memref<1x8x16x4xf32, #tpu.memory_space<vmem>>, vector<1x8x16x4xf32>,
    return
  }
  func.func @transform_0(%arg0: i32, %arg1: i32) -> (i32, i32, i32, i32, i32) {
    %c0_i32 = arith.constant 0 : i32
    %c0_i32_0 = arith.constant 0 : i32
    %c0_i32_1 = arith.constant 0 : i32
    %c0_i32_2 = arith.constant 0 : i32
    return %arg0, %arg1, %c0_i32, %c0_i32_0, %c0_i32_1 : i32, i32, i32, i32, i32
  }
  func.func @transform_1(%arg0: i32, %arg1: i32) -> (i32, i32, i32) {
    %c0_i32 = arith.constant 0 : i32
    %c0_i32_0 = arith.constant 0 : i32
    %c0_i32_1 = arith.constant 0 : i32
    %c0_i32_2 = arith.constant 0 : i32
    return %c0_i32, %c0_i32_0, %c0_i32_1 : i32, i32, i32
  }
  func.func @transform_2(%arg0: i32, %arg1: i32) -> (i32, i32) {
    %c0_i32 = arith.constant 0 : i32
    %c0_i32_0 = arith.constant 0 : i32
    %c0_i32_1 = arith.constant 0 : i32
    return %c0_i32, %c0_i32_0 : i32, i32
  }
  func.func @transform_3(%arg0: i32, %arg1: i32) -> (i32, i32, i32) {
    %c0_i32 = arith.constant 0 : i32
    %c0_i32_0 = arith.constant 0 : i32
    %c0_i32_1 = arith.constant 0 : i32
    %c0_i32_2 = arith.constant 0 : i32
    return %c0_i32, %c0_i32_0, %c0_i32_1 : i32, i32, i32
  }
  func.func @transform_4(%arg0: i32, %arg1: i32) -> (i32, i32) {
    %c0_i32 = arith.constant 0 : i32
    %c0_i32_0 = arith.constant 0 : i32
    %c0_i32_1 = arith.constant 0 : i32
    return %c0_i32, %c0_i32_0 : i32, i32
  }
  func.func @transform_5(%arg0: i32, %arg1: i32) -> (i32, i32, i32, i32) {
    %c0_i32 = arith.constant 0 : i32
    %c0_i32_0 = arith.constant 0 : i32
    %c0_i32_1 = arith.constant 0 : i32
    return %arg0, %arg1, %c0_i32, %c0_i32_0 : i32, i32, i32, i32
  }
}

</mosaic_0001>

<bundles_post_ra>
// kernel: tpu_custom_call.1
= control target key start
LH: loop header
LB: loop body
LE: loop exit
PB: predicated region body
PF: predicated region fallthrough
CT: control target
= control target key end

     0   :  { %s2347_s18 = smov 0   ;;  %s2349_s19 = smov 0   ;;  %s3570_s0 = inlined_call_operand.vmem [shape: f32[2,2,12,16,4], index: 0, kind: input, shape index: {}]   ;;  %s3571_s1 = inlined_call_operand.vmem [shape: bf16[3,12,4], index: 1, kind: input, shape index: {}]   ;;  %s3572_s2 = inlined_call_operand.vmem [shape: f32[1,4], index: 2, kind: input, shape index: {}]   ;;  %s3573_s3 = inlined_call_operand.vmem [shape: bf16[3,12,4], index: 3, kind: input, shape index: {}]   ;;  %s3574_s4 = inlined_call_operand.vmem [shape: f32[1,4], index: 4, kind: input, shape index: {}]   ;;  %s3575_s5 = inlined_call_operand.vmem [shape: f32[2,16,16,4], index: 5, kind: output, shape index: {}]  }
   0x1   :  { %s2351_s20 = smov 0   ;;  %s2353_s21 = smov 0  }
   0x2   :  { %s2355_s22 = smov 0  }
   0x3 LB: > { %s24_s23 = sadd.s32 1, %s2305_s20  ;;  %s27_s24 = sadd.s32 1, %s2309_s21  ;;  %s2313_s22 = sphi %s2355_s22, %s15_s22   ;;  %s2309_s21 = sphi %s2353_s21, %s3661_s21   ;;  %s2305_s20 = sphi %s2351_s20, %s3660_s20   ;;  %s2301_s19 = sphi %s2349_s19, %s3659_s19   ;;  %s2297_s18 = sphi %s2347_s18, %s3658_s18  }
   0x4   : > { %p25_p0 = scmp.ge.s32.totalorder %s24_s23, 2  ;;  %p1943_p1 = scmp.ge.s32.totalorder %s2313_s22, 1 }
   0x5   : > { %p207_p2 = scmp.lt.s32.totalorder %s2313_s22, 5 }
   0x6   : > { %s3663_s23 = smov (%p25_p0, %s24_s23), 0  ;;  %s3665_s24 = smov (!%p25_p0, %s27_s24), %s2309_s21 }
   0x7   : > { %p208_p3 = pnand %p1943_p1, %p207_p2  ;;  %p29_p4 = scmp.ge.s32.totalorder %s3665_s24, 2 }
   0x8   : > { %p244_p5 = scmp.lt.s32.totalorder (!%p208_p3), %s2301_s19, 1  ;;  %p246_p6 = scmp.lt.s32.totalorder (!%p208_p3), %s2297_s18, 1 }
   0x9   : > { %s3667_s24 = smov (%p29_p4, %s3665_s24), 0  ;;  %211 = sbr.rel (%p208_p3) target bundleno = 799 (0x31f), region = 40 }
   0xa   : > { %s2315_s12 = smov (!%p208_p3), 4   ;;  %s2316_s13 = smov (!%p208_p3), 8  }
   0xe   : > { %v289_v0 = vlaneseq  ;;  %s3669_s19 = smov (!%p244_p5, %s2301_s19), 1  ;;  %v2253_v2 = vld [vmem:[%s3571_s1 + $0x8] sm:$0x3f]   ;;  %vm651_vm0 = vcmask 1045504   ;;  %v2402_v5 = vld [vmem:[%s3571_s1 + $0x10] sm:$0x3f]  }
   0xf   : > { %s247_s25 = scalar_select %p246_p6, %s2297_s18, 1  ;;  %2203 = vmatprep.subr.msk.bf16.mxu0 %vm651_vm0, %v2253_v2  ;;  %v653_v3 = vsel %vm651_vm0, %v2253_v2, 0  ;;  %vm3578_vm5 = vcmask 31744   ;;  %vm3577_vm6 = vcmask 64512   ;;  %vm3576_vm7 = vcmask 97280  }
  0x10   : > { %s2210_s26 = smul.u32 48, %s3669_s19  ;;  %v2384_v1 = vshrl.u32 %v289_v0, 7  ;;  %2084 = vmatpush3.bf16.msra.mxu0 %v653_v3  ;;  %s1947_s8 = sshll.u32 %s3669_s19, 5 }
  0x11   : > { %s2209_s27 = smul.u32 24, %s247_s25  ;;  %2205 = vmatprep.subr.msk.bf16.mxu0 %vm651_vm0, %v2402_v5  ;;  %s2829_s25 = sshll.u32 %s2297_s18, 3 }
  0x12   : > { %v2392_v4 = vadd.s32 8, %v2384_v1  ;;  %vm397_vm1 = vcmp.lt.s32.totalorder %v2384_v1, 7  ;;  %vm318_vm3 = vcmp.lt.s32.totalorder %v2384_v1, 1  ;;  %vm292_vm4 = vcmp.gt.s32.totalorder %v2384_v1, 0  ;;  %p256_p7 = scmp.lt.s32.totalorder %s2829_s25, 15 }
  0x13   : > { %s250_s30 = sadd.s32 %s2210_s26, %s2209_s27  ;;  %s1988_s26 = sadd.s32 4294967295, %s2829_s25 }
  0x14   : > { %s1944_s6 = sshll.u32 %s250_s30, 3  ;;  %vm372_vm2 = vcmp.lt.s32.totalorder %v2392_v4, 15  ;;  %s3671_s25 = smov (!%p256_p7, %s2829_s25), 15 }
  0x15   : > { %s2397_s9 = scalar_lea.vmem %s3570_s0, %s1944_s6  ;;  %s1946_s7 = sshll.u32 %s3671_s25, 1 }
  0x16   : > { %v2405_v6 = vld [vmem:[%s2397_s9 + $0x10] sm:$0xff]  ;;  %v2408_v7 = vld [vmem:[%s2397_s9 + $0x18] sm:$0xff]  ;;  %v2411_v8 = vld [vmem:[%s2397_s9 + $0x20] sm:$0xff]  ;;  %s260_s10 = sadd.s32 %s1947_s8, %s1946_s7 }
  0x17   : > { %v386_v9 = vrot.slane %v2408_v7, 1  ;;  %v463_v10 = vpack.c.bf16 %v2408_v7, %v2405_v6  ;;  %v2417_v11 = vld [vmem:[%s2397_s9 + $0x28] sm:$0xff]  ;;  %v2421_v12 = vld [vmem:[%s2397_s9 + $0x30] sm:$0xff]  ;;  %v2424_v13 = vld [vmem:[%s2397_s9 + $0x38] sm:$0xff]  ;;  %v374_v14 = vrot.slane %v2405_v6, 1  ;;  %v375_v15 = vrot.slane %v2411_v8, 1 }
  0x18   : > { %v2432_v16 = vld [vmem:[%s2397_s9 + $0x40] sm:$0xff]  ;;  %v464_v17 = vpack.c.bf16 %v2417_v11, %v2411_v8  ;;  %v387_v18 = vrot.slane %v2417_v11, 1  ;;  %v376_v19 = vrot.slane %v2421_v12, 1  ;;  %v388_v20 = vrot.slane %v2424_v13, 1  ;;  %v2441_v21 = vld [vmem:[%s2397_s9 + $0x48] sm:$0xff]  ;;  %v2459_v31 = vld [vmem:[%s2397_s9 + $0x50] sm:$0xff] }
  0x19   : > { %500 = vrot.lane.b32.xlu0 %v463_v10, %s2315_s12  ;;  %v399_v22 = vsel %vm397_vm1, %v374_v14, %v386_v9  ;;  %v411_v23 = vsel %vm397_vm1, %v386_v9, %v374_v14  ;;  %v377_v27 = vrot.slane %v2432_v16, 1  ;;  %v2462_v32 = vld [vmem:[%s2397_s9 + $0x58] sm:$0xff]  ;;  %v389_v33 = vrot.slane %v2441_v21, 1  ;;  %v2479_v42 = vld [vmem:[%s2397_s9 + $0x60] sm:$0xff]  ;;  %v2482_v43 = vld [vmem:[%s2397_s9 + $0x68] sm:$0xff] }
  0x1a   : > { %v429_v24 = vsel %vm372_vm2, %v411_v23, 0.0  ;;  %v400_v25 = vsel %vm397_vm1, %v375_v15, %v387_v18  ;;  %v412_v26 = vsel %vm397_vm1, %v387_v18, %v375_v15  ;;  %v413_v30 = vsel %vm397_vm1, %v388_v20, %v376_v19  ;;  %v2494_v48 = vld [vmem:[%s2397_s9 + $0x70] sm:$0xff]  ;;  %v2497_v49 = vld [vmem:[%s2397_s9 + $0x78] sm:$0xff]  ;;  %v2518_v62 = vld [vmem:[%s2397_s9 + $0x80] sm:$0xff] }
  0x1b   : > { %v475_v28 = vpack.c.bf16 %v429_v24, %v399_v22  ;;  %v431_v29 = vsel %vm372_vm2, %v412_v26, 0.0  ;;  %v465_v34 = vpack.c.bf16 %v2424_v13, %v2421_v12  ;;  %v401_v36 = vsel %vm397_vm1, %v376_v19, %v388_v20  ;;  %v2521_v63 = vld [vmem:[%s2397_s9 + $0x88] sm:$0xff]  ;;  %v2537_v9 = vld [vmem:[%s2397_s9 + $0x98] sm:$0xff] }
  0x1c   : > { %v476_v35 = vpack.c.bf16 %v431_v29, %v400_v25  ;;  %v433_v37 = vsel %vm372_vm2, %v413_v30, 0.0  ;;  %v378_v38 = vrot.slane %v2459_v31, 1  ;;  %v390_v39 = vrot.slane %v2462_v32, 1  ;;  %v286_v29 = vld [vmem:[%s2397_s9 + $0xa8] sm:$0xff] }
  0x1d   : > { %502 = vrot.lane.b32.xlu0 %v464_v17, %s2315_s12  ;;  %536 = vrot.lane.b32.xlu1 %v475_v28, %s2316_s13  ;;  %v414_v40 = vsel %vm397_vm1, %v389_v33, %v377_v27  ;;  %v477_v41 = vpack.c.bf16 %v433_v37, %v401_v36  ;;  %v466_v44 = vpack.c.bf16 %v2441_v21, %v2432_v16  ;;  %v379_v50 = vrot.slane %v2479_v42, 1  ;;  %v285_v28 = vld [vmem:[%s2397_s9 + $0xa0] sm:$0xff] }
  0x1e   : > { %v402_v45 = vsel %vm397_vm1, %v377_v27, %v389_v33  ;;  %v435_v46 = vsel %vm372_vm2, %v414_v40, 0.0  ;;  %v415_v47 = vsel %vm397_vm1, %v390_v39, %v378_v38  ;;  %v391_v51 = vrot.slane %v2482_v43, 1 }
  0x1f   : > { %v467_v52 = vpack.c.bf16 %v2462_v32, %v2459_v31  ;;  %v478_v53 = vpack.c.bf16 %v435_v46, %v402_v45  ;;  %v403_v54 = vsel %vm397_vm1, %v378_v38, %v390_v39  ;;  %v437_v55 = vsel %vm372_vm2, %v415_v47, 0.0  ;;  %v265_v45 = vld [vmem:[%s2397_s9] sm:$0xff]  ;;  %v266_v46 = vld [vmem:[%s2397_s9 + $0x8] sm:$0xff] }
  0x20   : > { %v380_v56 = vrot.slane %v2494_v48, 1  ;;  %v392_v57 = vrot.slane %v2497_v49, 1  ;;  %v307_v58 = vrot.slane %v2408_v7, 7  ;;  %v295_v59 = vrot.slane %v2405_v6, 7  ;;  %v2534_v7 = vld [vmem:[%s2397_s9 + $0x90] sm:$0xff] }
  0x21   : > { %504 = vrot.lane.b32.xlu0 %v465_v34, %s2315_s12  ;;  %538 = vrot.lane.b32.xlu1 %v476_v35, %s2316_s13  ;;  %v416_v60 = vsel %vm397_vm1, %v391_v51, %v379_v50  ;;  %v479_v61 = vpack.c.bf16 %v437_v55, %v403_v54  ;;  %v468_v0 = vpack.c.bf16 %v2482_v43, %v2479_v42  ;;  %v381_v10 = vrot.slane %v2518_v62, 1  ;;  %v2255_v47 = vld [vmem:[%s3571_s1] sm:$0x3f]  }
  0x22   : > { %v404_v2 = vsel %vm397_vm1, %v379_v50, %v391_v51  ;;  %v439_v3 = vsel %vm372_vm2, %v416_v60, 0.0  ;;  %v417_v6 = vsel %vm397_vm1, %v392_v57, %v380_v56  ;;  %v393_v14 = vrot.slane %v2521_v63, 1  ;;  %2204 = vmatprep.subr.msk.bf16.mxu1 %vm651_vm0, %v2255_v47 }
  0x23   : > { %v2543_v15 = vsel %vm318_vm3, %v295_v59, %v307_v58  ;;  %v332_v17 = vsel %vm318_vm3, %v307_v58, %v295_v59  ;;  %v469_v18 = vpack.c.bf16 %v2497_v49, %v2494_v48  ;;  %v480_v20 = vpack.c.bf16 %v439_v3, %v404_v2  ;;  %v288_v58 = vld [vmem:[%s2397_s9 + $0xb8] sm:$0xff] }
  0x24   : > { %v2552_v19 = vsel %vm292_vm4, %v332_v17, 0.0  ;;  %v405_v22 = vsel %vm397_vm1, %v380_v56, %v392_v57  ;;  %v441_v23 = vsel %vm372_vm2, %v417_v6, 0.0  ;;  %v382_v25 = vrot.slane %v2534_v7, 1  ;;  %v287_v57 = vld [vmem:[%s2397_s9 + $0xb0] sm:$0xff] }
  0x25   : > { %540 = vrot.lane.b32.xlu0 %v477_v41, %s2316_s13  ;;  %506 = vrot.lane.b32.xlu1 %v466_v44, %s2315_s12  ;;  %v451_v24 = vpack.c.bf16 %v2543_v15, %v2552_v19  ;;  %v394_v26 = vrot.slane %v2537_v9, 1  ;;  %v418_v27 = vsel %vm397_vm1, %v393_v14, %v381_v10  ;;  %v481_v30 = vpack.c.bf16 %v441_v23, %v405_v22 }
  0x26   : > { %v470_v33 = vpack.c.bf16 %v2521_v63, %v2518_v62  ;;  %v406_v34 = vsel %vm397_vm1, %v381_v10, %v393_v14  ;;  %v443_v35 = vsel %vm372_vm2, %v418_v27, 0.0  ;;  %v383_v37 = vrot.slane %v285_v28, 1 }
  0x27   : > { %v419_v36 = vsel %vm397_vm1, %v394_v26, %v382_v25  ;;  %v395_v38 = vrot.slane %v286_v29, 1  ;;  %v471_v39 = vpack.c.bf16 %v2537_v9, %v2534_v7  ;;  %v407_v40 = vsel %vm397_vm1, %v382_v25, %v394_v26 }
  0x28   : > { %v304_v41 = vrot.slane %v285_v28, 7  ;;  %v316_v44 = vrot.slane %v286_v29, 7  ;;  %v482_v50 = vpack.c.bf16 %v443_v35, %v406_v34  ;;  %v445_v51 = vsel %vm372_vm2, %v419_v36, 0.0 }
  0x29   : > { %508 = vrot.lane.b32.xlu0 %v467_v52, %s2315_s12  ;;  %542 = vrot.lane.b32.xlu1 %v478_v53, %s2316_s13  ;;  %v306_v52 = vrot.slane %v266_v46, 7  ;;  %v294_v53 = vrot.slane %v265_v45, 7  ;;  %v420_v54 = vsel %vm397_vm1, %v395_v38, %v383_v37  ;;  %v385_v55 = vrot.slane %v266_v46, 1 }
  0x2a   : > { %v373_v56 = vrot.slane %v265_v45, 1  ;;  %v483_v59 = vpack.c.bf16 %v445_v51, %v407_v40  ;;  %v472_v60 = vpack.c.bf16 %v286_v29, %v285_v28  ;;  %v2603_v2 = vsel %vm318_vm3, %v304_v41, %v316_v44 }
  0x2b   : > { %v341_v3 = vsel %vm318_vm3, %v316_v44, %v304_v41  ;;  %v2609_v6 = vsel %vm318_vm3, %v294_v53, %v306_v52  ;;  %v384_v10 = vrot.slane %v287_v57, 1  ;;  %v396_v14 = vrot.slane %v288_v58, 1 }
  0x2c   : > { %v2613_v17 = vsel %vm292_vm4, %v341_v3, 0.0  ;;  %v776_v25 = vsel %vm651_vm0, %v2255_v47, 0  ;;  %v462_v26 = vpack.c.bf16 %v266_v46, %v265_v45  ;;  %v398_v29 = vsel %vm397_vm1, %v373_v56, %v385_v55 }
  0x2d   : > { %544 = vrot.lane.b32.xlu0 %v479_v61, %s2316_s13  ;;  %510 = vrot.lane.b32.xlu1 %v468_v0, %s2315_s12  ;;  %v408_v61 = vsel %vm397_vm1, %v383_v37, %v395_v38  ;;  %v447_v0 = vsel %vm372_vm2, %v420_v54, 0.0  ;;  %v460_v22 = vpack.c.bf16 %v2603_v2, %v2613_v17  ;;  %v473_v34 = vpack.c.bf16 %v288_v58, %v287_v57 }
  0x2e   : > { %2106 = vmatpush3.bf16.msra.mxu1 %v776_v25  ;;  %v484_v28 = vpack.c.bf16 %v447_v0, %v408_v61  ;;  %v409_v36 = vsel %vm397_vm1, %v384_v10, %v396_v14  ;;  %v317_v40 = vrot.slane %v288_v58, 7  ;;  %v296_v47 = vrot.slane %v2411_v8, 7 }
  0x2f   : > { %v297_v51 = vrot.slane %v2421_v12, 7  ;;  %v310_v12 = vrot.slane %v2441_v21, 7  ;;  %v299_v61 = vrot.slane %v2459_v31, 7 }
  0x31   : > { %512 = vrot.lane.b32.xlu0 %v469_v18, %s2315_s12  ;;  %546 = vrot.lane.b32.xlu1 %v480_v20, %s2316_s13  ;;  %v331_v18 = vsel %vm318_vm3, %v306_v52, %v294_v53  ;;  %v410_v20 = vsel %vm397_vm1, %v385_v55, %v373_v56  ;;  %v309_v52 = vrot.slane %v2424_v13, 7 }
  0x32   : > { %v2623_v23 = vsel %vm292_vm4, %v331_v18, 0.0 }
  0x33   : > { %v450_v27 = vpack.c.bf16 %v2609_v6, %v2623_v23  ;;  %v334_v8 = vsel %vm318_vm3, %v309_v52, %v297_v51  ;;  %v322_v58 = vsel %vm318_vm3, %v297_v51, %v309_v52  ;;  %v2256_v23 = vld [vmem:[%s3573_s3 + $0x8] sm:$0x3f]  }
  0x34   : > { %2206 = vmatprep.subr.msk.bf16.mxu1 %vm651_vm0, %v2256_v23 }
  0x35   : > { %548 = vrot.lane.b32.xlu0 %v481_v30, %s2316_s13  ;;  %514 = vrot.lane.b32.xlu1 %v470_v33, %s2315_s12  ;;  %v427_v30 = vsel %vm372_vm2, %v410_v20, 0.0  ;;  %v421_v33 = vsel %vm397_vm1, %v396_v14, %v384_v10 }
  0x36   : > { %v474_v35 = vpack.c.bf16 %v427_v30, %v398_v29  ;;  %v449_v37 = vsel %vm372_vm2, %v421_v33, 0.0  ;;  %v312_v29 = vrot.slane %v2482_v43, 7  ;;  %v301_v33 = vrot.slane %v2494_v48, 7 }
  0x37   : > { %v485_v38 = vpack.c.bf16 %v449_v37, %v409_v36 }
  0x39   : > { %516 = vrot.lane.b32.xlu0 %v471_v39, %s2315_s12  ;;  %550 = vrot.lane.b32.xlu1 %v482_v50, %s2316_s13  ;;  %v305_v39 = vrot.slane %v287_v57, 7  ;;  %v308_v50 = vrot.slane %v2417_v11, 7  ;;  %v298_v11 = vrot.slane %v2432_v16, 7  ;;  %v311_v16 = vrot.slane %v2462_v32, 7 }
  0x3a   : > { %v902_v32 = vsel %vm651_vm0, %v2402_v5, 0 }
  0x3b   : > { %v2647_v41 = vsel %vm318_vm3, %v305_v39, %v317_v40  ;;  %v342_v44 = vsel %vm318_vm3, %v317_v40, %v305_v39  ;;  %v333_v53 = vsel %vm318_vm3, %v308_v50, %v296_v47  ;;  %v321_v55 = vsel %vm318_vm3, %v296_v47, %v308_v50 }
  0x3c   : > { %v2653_v45 = vsel %vm292_vm4, %v342_v44, 0.0  ;;  %v351_v56 = vsel %vm292_vm4, %v333_v53, 0.0  ;;  %v336_v10 = vsel %vm318_vm3, %v311_v16, %v299_v61  ;;  %v323_v20 = vsel %vm318_vm3, %v298_v11, %v310_v12 }
  0x3d   : > { %552 = vrot.lane.b32.xlu0 %v483_v59, %s2316_s13  ;;  %518 = vrot.lane.b32.xlu1 %v472_v60, %s2315_s12  ;;  %v461_v46 = vpack.c.bf16 %v2647_v41, %v2653_v45  ;;  %v452_v57 = vpack.c.bf16 %v321_v55, %v351_v56  ;;  %v353_v59 = vsel %vm292_vm4, %v334_v8, 0.0  ;;  %v357_v5 = vsel %vm292_vm4, %v336_v10, 0.0 }
  0x3e   : > { %v453_v15 = vpack.c.bf16 %v322_v58, %v353_v59  ;;  %v302_v53 = vrot.slane %v2518_v62, 7  ;;  %v303_v56 = vrot.slane %v2534_v7, 7  ;;  %v315_v8 = vrot.slane %v2537_v9, 7 }
  0x40   : > { %v340_v62 = vsel %vm318_vm3, %v315_v8, %v303_v56 }
  0x41   : > { %498 = vrot.lane.b32.xlu0 %v462_v26, %s2315_s12  ;;  %554 = vrot.lane.b32.xlu1 %v484_v28, %s2316_s13  ;;  %v324_v26 = vsel %vm318_vm3, %v299_v61, %v311_v16  ;;  %v300_v28 = vrot.slane %v2479_v42, 7 }
  0x43   : > { %v337_v42 = vsel %vm318_vm3, %v312_v29, %v300_v28  ;;  %v325_v47 = vsel %vm318_vm3, %v300_v28, %v312_v29 }
  0x44   : > { %v359_v50 = vsel %vm292_vm4, %v337_v42, 0.0 }
  0x45   : > { %520 = vrot.lane.b32.xlu0 %v473_v34, %s2315_s12  ;;  %534 = vrot.lane.b32.xlu1 %v474_v35, %s2316_s13  ;;  %v313_v34 = vrot.slane %v2497_v49, 7 }
  0x47   : > { %v338_v43 = vsel %vm318_vm3, %v313_v34, %v301_v33  ;;  %v326_v51 = vsel %vm318_vm3, %v301_v33, %v313_v34 }
  0x48   : > { %v361_v52 = vsel %vm292_vm4, %v338_v43, 0.0 }
  0x49   : > { %556 = vrot.lane.b32.xlu1 %v485_v38, %s2316_s13  ;;  %v455_v38 = vpack.c.bf16 %v324_v26, %v357_v5 }
  0x8b   : > { %v501_v54 = vpop.permute.xlu0 %500 }
  0x8c   : > { %v564_v13 = vsel %vm3578_vm5, %v451_v24, %v501_v54  ;;  %v335_v24 = vsel %vm318_vm3, %v310_v12, %v298_v11  ;;  %v314_v54 = vrot.slane %v2521_v63, 7  ;;  %v456_v12 = vpack.c.bf16 %v325_v47, %v359_v50 }
  0x8d   : > { %v355_v25 = vsel %vm292_vm4, %v335_v24, 0.0 }
  0x8e   : > { %v454_v36 = vpack.c.bf16 %v323_v20, %v355_v25  ;;  %v339_v58 = vsel %vm318_vm3, %v314_v54, %v302_v53  ;;  %v327_v61 = vsel %vm318_vm3, %v302_v53, %v314_v54 }
  0x8f   : > { %v503_v60 = vpop.permute.xlu0 %502  ;;  %v537_v0 = vpop.permute.xlu1 %536  ;;  %v363_v16 = vsel %vm292_vm4, %v339_v58, 0.0 }
  0x90   : > { %v2682_v21 = vsel %vm3577_vm6, %v564_v13, %v537_v0  ;;  %v567_v19 = vsel %vm3578_vm5, %v452_v57, %v503_v60  ;;  %v457_v57 = vpack.c.bf16 %v326_v51, %v361_v52  ;;  %v328_v0 = vsel %vm318_vm3, %v303_v56, %v315_v8 }
  0x91   : > { %2085 = vmatprep.mubr.msk.bf16.mxu0 %vm3576_vm7, %v2682_v21  ;;  %v2838_v56 = vstv %s1988_s26 }
  0x92   : > { %vm1096_vm10 = vcmp.ge.s32.totalorder %v2838_v56, 0  ;;  %vm1106_vm11 = vcmp.lt.s32.totalorder %v2838_v56, 16 }
  0x93   : > { %v505_v3 = vpop.permute.xlu0 %504  ;;  %v539_v31 = vpop.permute.xlu1 %538 }
  0x94   : > { %v570_v14 = vsel %vm3578_vm5, %v453_v15, %v505_v3  ;;  %v2695_v18 = vsel %vm3577_vm6, %v567_v19, %v539_v31  ;;  %v365_v15 = vsel %vm292_vm4, %v340_v62, 0.0  ;;  %v458_v3 = vpack.c.bf16 %v327_v61, %v363_v16  ;;  %v2846_v62 = vld [vmem:[%s3572_s2] ss:$0 sm:$0xff] }
  0x95   : > { %2086 = vmatmul.mubr.msk.bf16.vlgmr.msra.gmra.mxu0 %vm3576_vm7, %v2695_v18  ;;  %v459_v31 = vpack.c.bf16 %v328_v0, %v365_v15  ;;  %v2852_v16 = vadd.s32 2, %v2838_v56 }
  0x96   : > { %2128 = vmatpush3.bf16.msra.mxu0 %v902_v32 }
  0x97   : > { %v541_v30 = vpop.permute.xlu0 %540  ;;  %v507_v37 = vpop.permute.xlu1 %506  ;;  %vm1098_vm15 = vcmp.ge.s32.totalorder %v2852_v16, 0 }
  0x98   : > { %v2712_v35 = vsel %vm3577_vm6, %v570_v14, %v541_v30  ;;  %v573_v48 = vsel %vm3578_vm5, %v454_v36, %v507_v37 }
  0x99   : > { %2089 = vmatprep.mubr.msk.bf16.mxu0 %vm3576_vm7, %v2712_v35 }
  0x9b   : > { %v509_v39 = vpop.permute.xlu0 %508  ;;  %v543_v40 = vpop.permute.xlu1 %542 }
  0x9c   : > { %v576_v49 = vsel %vm3578_vm5, %v455_v38, %v509_v39  ;;  %v605_v44 = vsel %vm3577_vm6, %v573_v48, %v543_v40 }
  0x9d   : > { %2090 = vmatmul.mubr.msk.bf16.gmra.mxu0 %vm3576_vm7, %v605_v44 }
  0x9f   : > { %v545_v55 = vpop.permute.xlu0 %544  ;;  %v511_v13 = vpop.permute.xlu1 %510 }
  0xa0   : > { %v607_v11 = vsel %vm3577_vm6, %v576_v49, %v545_v55  ;;  %v579_v63 = vsel %vm3578_vm5, %v456_v12, %v511_v13 }
  0xa1   : > { %2093 = vmatprep.mubr.msk.bf16.mxu0 %vm3576_vm7, %v607_v11 }
  0xa3   : > { %v513_v59 = vpop.permute.xlu0 %512  ;;  %v547_v60 = vpop.permute.xlu1 %546 }
  0xa4   : > { %v582_v7 = vsel %vm3578_vm5, %v457_v57, %v513_v59  ;;  %v609_v9 = vsel %vm3577_vm6, %v579_v63, %v547_v60  ;;  %v1087_v57 = vadd.s32 1, %v2838_v56 }
  0xa5   : > { %2094 = vmatmul.mubr.msk.bf16.gmra.mxu0 %vm3576_vm7, %v609_v9 }
  0xa6   : > { %vm1097_vm8 = vcmp.ge.s32.totalorder %v1087_v57, 0  ;;  %vm1107_vm9 = vcmp.lt.s32.totalorder %v1087_v57, 16 }
  0xa7   : > { %v549_v19 = vpop.permute.xlu0 %548  ;;  %v515_v10 = vpop.permute.xlu1 %514  ;;  %vm2859_vm13 = vmand %vm1097_vm8, %vm1107_vm9  ;;  %vm1108_vm8 = vcmp.lt.s32.totalorder %v2852_v16, 16 }
  0xa8   : > { %v611_v24 = vsel %vm3577_vm6, %v582_v7, %v549_v19  ;;  %v585_v14 = vsel %vm3578_vm5, %v458_v3, %v515_v10  ;;  %v2849_v7 = vadd.s32 3, %v2838_v56 }
  0xa9   : > { %2097 = vmatprep.mubr.msk.bf16.mxu0 %vm3576_vm7, %v611_v24 }
  0xaa   : > { %vm1099_vm12 = vcmp.ge.s32.totalorder %v2849_v7, 0  ;;  %vm1109_vm14 = vcmp.lt.s32.totalorder %v2849_v7, 16 }
  0xab   : > { %v517_v32 = vpop.permute.xlu0 %516  ;;  %v551_v20 = vpop.permute.xlu1 %550 }
  0xac   : > { %v588_v25 = vsel %vm3578_vm5, %v459_v31, %v517_v32  ;;  %v613_v26 = vsel %vm3577_vm6, %v585_v14, %v551_v20 }
  0xad   : > { %2098 = vmatmul.mubr.msk.bf16.gmra.mxu0 %vm3576_vm7, %v613_v26 }
  0xaf   : > { %v553_v5 = vpop.permute.xlu0 %552  ;;  %v519_v29 = vpop.permute.xlu1 %518 }
  0xb0   : > { %v615_v28 = vsel %vm3577_vm6, %v588_v25, %v553_v5  ;;  %v591_v33 = vsel %vm3578_vm5, %v460_v22, %v519_v29 }
  0xb1   : > { %2101 = vmatprep.mubr.msk.bf16.mxu0 %vm3576_vm7, %v615_v28 }
  0xb3   : > { %v499_v30 = vpop.permute.xlu0 %498  ;;  %v555_v34 = vpop.permute.xlu1 %554 }
  0xb4   : > { %v617_v36 = vsel %vm3577_vm6, %v591_v33, %v555_v34  ;;  %v561_v37 = vsel %vm3578_vm5, %v450_v27, %v499_v30  ;;  %v1453_v27 = vsel %vm651_vm0, %v2256_v23, 0  ;;  %v2873_v34 = vadd.s32 5, %v2838_v56 }
  0xb5   : > { %2102 = vmatmul.mubr.msk.bf16.gmra.mxu0 %vm3576_vm7, %v617_v36  ;;  %v2884_v23 = vadd.s32 6, %v2838_v56 }
  0xb6   : > { %2129 = vmatprep.mubr.msk.bf16.mxu0 %vm3576_vm7, %v2695_v18  ;;  %vm1101_vm9 = vcmp.ge.s32.totalorder %v2873_v34, 0 }
  0xb7   : > { %v535_v38 = vpop.permute.xlu1 %534  ;;  %v521_v2 = vpop.permute.xlu0 %520 }
  0xb8   : > { %v597_v42 = vsel %vm3577_vm6, %v561_v37, %v535_v38  ;;  %v594_v6 = vsel %vm3578_vm5, %v461_v46, %v521_v2  ;;  %v2877_v38 = vadd.s32 4, %v2838_v56  ;;  %vm2942_vm5 = vmand %vm1098_vm15, %vm1108_vm8  ;;  %vm1112_vm15 = vcmp.lt.s32.totalorder %v2884_v23, 16 }
  0xb9   : > { %2107 = vmatprep.mubr.msk.bf16.mxu1 %vm3576_vm7, %v597_v42  ;;  %v2880_v42 = vadd.s32 7, %v2838_v56 }
  0xba   : > { %2108 = vmatmul.mubr.msk.bf16.vlgmr.msra.gmra.mxu1 %vm3576_vm7, %v2682_v21 }
  0xbb   : > { %2111 = vmatprep.mubr.msk.bf16.mxu1 %vm3576_vm7, %v2695_v18  ;;  %v557_v17 = vpop.permute.xlu1 %556  ;;  %2150 = vmatpush3.bf16.msra.mxu1 %v1453_v27 }
  0xbc   : > { %v619_v22 = vsel %vm3577_vm6, %v594_v6, %v557_v17  ;;  %vm2928_vm6 = vmand %vm1099_vm12, %vm1109_vm14  ;;  %vm1113_vm12 = vcmp.lt.s32.totalorder %v2880_v42, 16  ;;  %vm1102_vm14 = vcmp.ge.s32.totalorder %v2884_v23, 0 }
  0xbd   : > { %2130 = vmatmul.mubr.msk.bf16.vlgmr.msra.gmra.mxu0 %vm3576_vm7, %v2712_v35 }
  0xbe   : > { %2133 = vmatprep.mubr.msk.bf16.mxu0 %vm3576_vm7, %v605_v44 }
  0xc2   : > { %2112 = vmatmul.mubr.msk.bf16.gmra.mxu1 %vm3576_vm7, %v2712_v35 }
  0xc3   : > { %2115 = vmatprep.mubr.msk.bf16.mxu1 %vm3576_vm7, %v605_v44 }
  0xc5   : > { %2134 = vmatmul.mubr.msk.bf16.gmra.mxu0 %vm3576_vm7, %v607_v11 }
  0xc6   : > { %2137 = vmatprep.mubr.msk.bf16.mxu0 %vm3576_vm7, %v609_v9 }
  0xca   : > { %2116 = vmatmul.mubr.msk.bf16.gmra.mxu1 %vm3576_vm7, %v607_v11 }
  0xcb   : > { %2119 = vmatprep.mubr.msk.bf16.mxu1 %vm3576_vm7, %v609_v9 }
  0xcd   : > { %2138 = vmatmul.mubr.msk.bf16.gmra.mxu0 %vm3576_vm7, %v611_v24 }
  0xce   : > { %2141 = vmatprep.mubr.msk.bf16.mxu0 %vm3576_vm7, %v613_v26 }
  0xd2   : > { %2120 = vmatmul.mubr.msk.bf16.gmra.mxu1 %vm3576_vm7, %v611_v24 }
  0xd3   : > { %2123 = vmatprep.mubr.msk.bf16.mxu1 %vm3576_vm7, %v613_v26 }
  0xd5   : > { %2142 = vmatmul.mubr.msk.bf16.gmra.mxu0 %vm3576_vm7, %v615_v28 }
  0xd6   : > { %2145 = vmatprep.mubr.msk.bf16.mxu0 %vm3576_vm7, %v617_v36 }
  0xda   : > { %2124 = vmatmul.mubr.msk.bf16.gmra.mxu1 %vm3576_vm7, %v615_v28 }
  0xdd   : > { %2146 = vmatmul.mubr.msk.bf16.gmra.mxu0 %vm3576_vm7, %v619_v22  ;;  %vm2867_vm7 = vmand %vm1096_vm10, %vm1106_vm11  ;;  %vm1111_vm10 = vcmp.lt.s32.totalorder %v2873_v34, 16  ;;  %vm1100_vm11 = vcmp.ge.s32.totalorder %v2877_v38, 0 }
 0x155   : > { %v2087_v21 = vpop.f32.mrf.mxu0 }
 0x157   : > { %v689_v41 = vpop.f32.mrf.mxu0 }
 0x159   : > { %v2088_v45 = vpop.f32.mrf.mxu0 }
 0x15b   : > { %v692_v46 = vpop.f32.mrf.mxu0 }
 0x15d   : > { %v2091_v18 = vpop.f32.mrf.mxu0 }
 0x15f   : > { %v705_v35 = vpop.f32.mrf.mxu0 }
 0x161   : > { %v2808_v39 = vpop.f32.mrf.mxu0 }
 0x163   : > { %v2810_v43 = vpop.f32.mrf.mxu0 }
 0x165   : > { %v2812_v48 = vpop.f32.mrf.mxu0 }
 0x167   : > { %v2814_v40 = vpop.f32.mrf.mxu0 }
 0x169   : > { %v2816_v49 = vpop.f32.mrf.mxu0 }
 0x16b   : > { %v2818_v44 = vpop.f32.mrf.mxu0 }
 0x16d   : > { %v2820_v47 = vpop.f32.mrf.mxu0 }
 0x16f   : > { %v2822_v50 = vpop.f32.mrf.mxu0 }
 0x171   : > { %v2824_v51 = vpop.f32.mrf.mxu0 }
 0x173   : > { %v2826_v52 = vpop.f32.mrf.mxu0 }
 0x175   : > { %v2831_v53 = vpop.f32.mrf.mxu0 }
 0x177   : > { %v2834_v54 = vpop.f32.mrf.mxu0 }
 0x179   : > { %v2836_v55 = vpop.f32.mrf.mxu0 }
 0x17a   : > { %v2109_v8 = vpop.f32.mrf.mxu1 }
 0x17b   : > { %v821_v11 = vadd.f32 %v2109_v8, %v2087_v21  ;;  %v2840_v12 = vpop.f32.mrf.mxu0 }
 0x17c   : > { %v812_v13 = vpop.f32.mrf.mxu1 }
 0x17d   : > { %v813_v58 = vadd.f32 %v812_v13, %v689_v41  ;;  %v2131_v59 = vpop.f32.mrf.mxu0 }
 0x17e   : > { %v1019_v63 = vadd.f32 %v2131_v59, %v821_v11  ;;  %v2110_v60 = vpop.f32.mrf.mxu1 }
 0x17f   : > { %v824_v9 = vadd.f32 %v2110_v60, %v2088_v45  ;;  %v938_v61 = vpop.f32.mrf.mxu0 }
 0x180   : > { %v1046_v0 = vadd.f32 %v2846_v62, %v1019_v63  ;;  %v1017_v15 = vadd.f32 %v938_v61, %v813_v58  ;;  %v815_v19 = vpop.f32.mrf.mxu1  ;;  %v2912_v63 = vadd.s32 8, %v2838_v56 }
 0x181   : > { %v816_v24 = vadd.f32 %v815_v19, %v692_v46  ;;  %v2132_v3 = vpop.f32.mrf.mxu0  ;;  %v2896_v46 = vadd.s32 9, %v2838_v56 }
 0x182   : > { %v1044_v10 = vadd.f32 %v2846_v62, %v1017_v15  ;;  %v1020_v31 = vadd.f32 %v2132_v3, %v824_v9  ;;  %v2113_v32 = vpop.f32.mrf.mxu1  ;;  %v1066_v14 = vmax.f32 %v1046_v0, 0.0 }
 0x183   : > { %v837_v25 = vadd.f32 %v2113_v32, %v2091_v18  ;;  %v941_v26 = vpop.f32.mrf.mxu0  ;;  %vm1105_vm8 = vcmp.ge.s32.totalorder %v2896_v46, 0 }
 0x184   : > { %v1064_v5 = vmax.f32 %v1044_v10, 0.0  ;;  %v1047_v29 = vadd.f32 %v2846_v62, %v1020_v31  ;;  %v1018_v30 = vadd.f32 %v941_v26, %v816_v24  ;;  %v828_v33 = vpop.f32.mrf.mxu1  ;;  %v2888_v27 = vsel %vm2859_vm13, %v1066_v14, 0.0 }
 0x185   : > { %v829_v36 = vadd.f32 %v828_v33, %v705_v35  ;;  %v2135_v37 = vpop.f32.mrf.mxu0  ;;  %v1167_v60 = vrot.slane %v2888_v27, 7  ;;  %v1227_v19 = vrot.slane %v2888_v27, 1 }
 0x186   : > { %v1067_v2 = vmax.f32 %v1047_v29, 0.0  ;;  %v1045_v6 = vadd.f32 %v2846_v62, %v1018_v30  ;;  %v1023_v17 = vadd.f32 %v2135_v37, %v837_v25  ;;  %v2114_v22 = vpop.f32.mrf.mxu1  ;;  %v2892_v21 = vsel %vm2867_vm7, %v1064_v5, 0.0 }
 0x187   : > { %v840_v41 = vadd.f32 %v2114_v22, %v2808_v39  ;;  %v954_v45 = vpop.f32.mrf.mxu0  ;;  %v1166_v24 = vrot.slane %v2892_v21, 7  ;;  %v1226_v3 = vrot.slane %v2892_v21, 1 }
 0x188   : > { %v2900_v18 = vsel %vm2859_vm13, %v1067_v2, 0.0  ;;  %v1065_v35 = vmax.f32 %v1045_v6, 0.0  ;;  %v1050_v8 = vadd.f32 %v2846_v62, %v1023_v17  ;;  %v1021_v11 = vadd.f32 %v954_v45, %v829_v36  ;;  %v831_v13 = vpop.f32.mrf.mxu1 }
 0x189   : > { %v1237_v57 = vrot.slane %v2900_v18, 1  ;;  %v832_v39 = vadd.f32 %v831_v13, %v2810_v43  ;;  %v2136_v58 = vpop.f32.mrf.mxu0  ;;  %v1297_v59 = vpack.c.bf16 %v2900_v18, %v2888_v27  ;;  %vm1110_vm13 = vcmp.lt.s32.totalorder %v2877_v38, 16  ;;  %v2919_v43 = vld [vmem:[%s3573_s3 + $0x10] sm:$0x3f]  }
 0x18a   : > { %v1070_v9 = vmax.f32 %v1050_v8, 0.0  ;;  %v1048_v61 = vadd.f32 %v2846_v62, %v1021_v11  ;;  %v1024_v0 = vadd.f32 %v2136_v58, %v840_v41  ;;  %v2117_v15 = vpop.f32.mrf.mxu1  ;;  %v2936_v32 = vsel %vm2867_vm7, %v1065_v35, 0.0  ;;  %2208 = vmatprep.subr.msk.bf16.mxu0 %vm651_vm0, %v2919_v43 }
 0x18b   : > { %v853_v10 = vadd.f32 %v2117_v15, %v2812_v48  ;;  %v957_v31 = vpop.f32.mrf.mxu0  ;;  %1328 = vrot.lane.b32.xlu0 %v1297_v59, %s2315_s12  ;;  %v1177_v26 = vrot.slane %v2900_v18, 7  ;;  %v1247_v29 = vsel %vm397_vm1, %v1227_v19, %v1237_v57  ;;  %v1257_v16 = vsel %vm397_vm1, %v1237_v57, %v1227_v19 }
 0x18c   : > { %v1068_v14 = vmax.f32 %v1048_v61, 0.0  ;;  %v1051_v20 = vadd.f32 %v2846_v62, %v1024_v0  ;;  %v1022_v25 = vadd.f32 %v957_v31, %v832_v39  ;;  %v844_v48 = vpop.f32.mrf.mxu1  ;;  %v2957_v30 = vsel %vm2928_vm6, %v1070_v9, 0.0 }
 0x18d   : > { %v845_v5 = vadd.f32 %v844_v48, %v2814_v40  ;;  %v2139_v28 = vpop.f32.mrf.mxu0  ;;  %v1176_v6 = vrot.slane %v2936_v32, 7  ;;  %v1269_v41 = vsel %vm372_vm2, %v1257_v16, 0.0  ;;  %vm1103_vm7 = vcmp.ge.s32.totalorder %v2880_v42, 0 }
 0x18e   : > { %v1071_v33 = vmax.f32 %v1051_v20, 0.0  ;;  %v1049_v36 = vadd.f32 %v2846_v62, %v1022_v25  ;;  %v1027_v37 = vadd.f32 %v2139_v28, %v853_v10  ;;  %v2118_v2 = vpop.f32.mrf.mxu1  ;;  %v2963_v40 = vsel %vm2942_vm5, %v1068_v14, 0.0  ;;  %v3000_v20 = vld [vmem:[%s3573_s3] sm:$0x3f]  }
 0x18f   : > { %v856_v17 = vadd.f32 %v2118_v2, %v2816_v49  ;;  %v970_v22 = vpop.f32.mrf.mxu0  ;;  %v1236_v57 = vrot.slane %v2936_v32, 1  ;;  %v1169_v49 = vrot.slane %v2957_v30, 7  ;;  %v1307_v39 = vpack.c.bf16 %v1269_v41, %v1247_v29  ;;  %2207 = vmatprep.subr.msk.bf16.mxu1 %vm651_vm0, %v3000_v20 }
 0x190   : > { %v2972_v45 = vsel %vm2928_vm6, %v1071_v33, 0.0  ;;  %v1069_v35 = vmax.f32 %v1049_v36, 0.0  ;;  %v1054_v8 = vadd.f32 %v2846_v62, %v1027_v37  ;;  %v1025_v11 = vadd.f32 %v970_v22, %v845_v5  ;;  %v847_v13 = vpop.f32.mrf.mxu1  ;;  %vm2989_vm6 = vmand %vm1101_vm9, %vm1111_vm10 }
 0x191   : > { %v848_v58 = vadd.f32 %v847_v13, %v2818_v44  ;;  %v2140_v59 = vpop.f32.mrf.mxu0  ;;  %v1229_v56 = vrot.slane %v2957_v30, 1  ;;  %v1168_v10 = vrot.slane %v2963_v40, 7  ;;  %1358 = vrot.lane.b32.xlu0 %v1307_v39, %s2316_s13  ;;  %v1299_v7 = vpack.c.bf16 %v2972_v45, %v2957_v30  ;;  %vm3052_vm10 = vmand %vm1103_vm7, %vm1113_vm12 }
 0x192   : > { %v2980_v9 = vsel %vm2942_vm5, %v1069_v35, 0.0  ;;  %v1074_v61 = vmax.f32 %v1054_v8, 0.0  ;;  %v1052_v0 = vadd.f32 %v2846_v62, %v1025_v11  ;;  %v1028_v15 = vadd.f32 %v2140_v59, %v856_v17  ;;  %v2121_v19 = vpop.f32.mrf.mxu1  ;;  %vm3007_vm5 = vmand %vm1100_vm11, %vm1110_vm13 }
 0x193   : > { %v869_v31 = vadd.f32 %v2121_v19, %v2820_v47  ;;  %v973_v14 = vpop.f32.mrf.mxu0  ;;  %v1239_v25 = vrot.slane %v2972_v45, 1  ;;  %v1228_v29 = vrot.slane %v2963_v40, 1  ;;  %v1179_v16 = vrot.slane %v2972_v45, 7  ;;  %vm3089_vm7 = vmand %vm1102_vm14, %vm1112_vm15 }
 0x194   : > { %v1072_v34 = vmax.f32 %v1052_v0, 0.0  ;;  %v1055_v47 = vadd.f32 %v2846_v62, %v1028_v15  ;;  %v1026_v5 = vadd.f32 %v973_v14, %v848_v58  ;;  %v860_v28 = vpop.f32.mrf.mxu1  ;;  %v1298_v38 = vpack.c.bf16 %v2980_v9, %v2963_v40 }
 0x195   : > { %v861_v33 = vadd.f32 %v860_v28, %v2822_v50  ;;  %v2143_v36 = vpop.f32.mrf.mxu0  ;;  %v3023_v37 = vsel %vm2989_vm6, %v1074_v61, 0.0  ;;  %v1178_v35 = vrot.slane %v2980_v9, 7  ;;  %v1238_v50 = vrot.slane %v2980_v9, 1  ;;  %1332 = vrot.lane.b32.xlu0 %v1299_v7, %s2315_s12 }
 0x196   : > { %v1075_v2 = vmax.f32 %v1055_v47, 0.0  ;;  %v1053_v17 = vadd.f32 %v2846_v62, %v1026_v5  ;;  %v1031_v22 = vadd.f32 %v2143_v36, %v869_v31  ;;  %v2122_v41 = vpop.f32.mrf.mxu1  ;;  %v3030_v8 = vsel %vm3007_vm5, %v1072_v34, 0.0  ;;  %1330 = vrot.lane.b32.xlu1 %v1298_v38, %s2315_s12 }
 0x197   : > { %v872_v11 = vadd.f32 %v2122_v41, %v2824_v51  ;;  %v986_v13 = vpop.f32.mrf.mxu0  ;;  %v1249_v61 = vsel %vm397_vm1, %v1229_v56, %v1239_v25  ;;  %v1171_v15 = vrot.slane %v3023_v37, 7  ;;  %v1231_v19 = vrot.slane %v3023_v37, 1 }
 0x198   : > { %v1073_v39 = vmax.f32 %v1053_v17, 0.0  ;;  %v1058_v58 = vadd.f32 %v2846_v62, %v1031_v22  ;;  %v1029_v59 = vadd.f32 %v986_v13, %v861_v33  ;;  %v863_v0 = vpop.f32.mrf.mxu1  ;;  %v3042_v31 = vsel %vm2989_vm6, %v1075_v2, 0.0 }
 0x199   : > { %v1259_v51 = vsel %vm397_vm1, %v1239_v25, %v1229_v56  ;;  %v2144_v14 = vpop.f32.mrf.mxu0  ;;  %vm1115_vm9 = vcmp.lt.s32.totalorder %v2896_v46, 16  ;;  %v864_v56 = vadd.f32 %v863_v0, %v2826_v52  ;;  %v1170_v5 = vrot.slane %v3030_v8, 7 }
 0x19a   : > { %v1078_v7 = vmax.f32 %v1058_v58, 0.0  ;;  %v1056_v44 = vadd.f32 %v2846_v62, %v1029_v59  ;;  %v1273_v47 = vsel %vm372_vm2, %v1259_v51, 0.0  ;;  %v2125_v25 = vpop.f32.mrf.mxu1  ;;  %v1230_v28 = vrot.slane %v3030_v8, 1  ;;  %vm3128_vm12 = vmand %vm1105_vm8, %vm1115_vm9 }
 0x19b   : > { %v1309_v33 = vpack.c.bf16 %v1273_v47, %v1249_v61  ;;  %v1032_v36 = vadd.f32 %v2144_v14, %v872_v11  ;;  %v989_v38 = vpop.f32.mrf.mxu0  ;;  %v1181_v42 = vrot.slane %v3042_v31, 7  ;;  %v3065_v2 = vsel %vm3007_vm5, %v1073_v39, 0.0 }
 0x19c   : > { %v1248_v17 = vsel %vm397_vm1, %v1228_v29, %v1238_v50  ;;  %v1258_v52 = vsel %vm397_vm1, %v1238_v50, %v1228_v29  ;;  %v876_v22 = vpop.f32.mrf.mxu1  ;;  %vm1104_vm11 = vcmp.ge.s32.totalorder %v2912_v63, 0  ;;  %vm1114_vm13 = vcmp.lt.s32.totalorder %v2912_v63, 16 }
 0x19d   : > { %v1241_v41 = vrot.slane %v3042_v31, 1  ;;  %v3076_v11 = vsel %vm3052_vm10, %v1078_v7, 0.0  ;;  %1362 = vrot.lane.b32.xlu0 %v1309_v33, %s2316_s13  ;;  %v1059_v48 = vadd.f32 %v2846_v62, %v1032_v36  ;;  %v1271_v13 = vsel %vm372_vm2, %v1258_v52, 0.0  ;;  %v2147_v39 = vpop.f32.mrf.mxu0  ;;  %vm3153_vm6 = vmand %vm1104_vm11, %vm1114_vm13 }
 0x19e   : > { %v1076_v29 = vmax.f32 %v1056_v44, 0.0  ;;  %v1308_v50 = vpack.c.bf16 %v1271_v13, %v1248_v17  ;;  %v885_v58 = vadd.f32 %v2125_v25, %v2831_v53  ;;  %v1030_v59 = vadd.f32 %v989_v38, %v864_v56  ;;  %v2126_v61 = vpop.f32.mrf.mxu1 }
 0x19f   : > { %v1180_v0 = vrot.slane %v3065_v2, 7  ;;  %v1240_v51 = vrot.slane %v3065_v2, 1  ;;  %v1079_v7 = vmax.f32 %v1059_v48, 0.0  ;;  %v1301_v44 = vpack.c.bf16 %v3042_v31, %v3023_v37  ;;  %v1002_v47 = vpop.f32.mrf.mxu0 }
 0x1a0   : > { %1360 = vrot.lane.b32.xlu1 %v1308_v50, %s2316_s13  ;;  %v1057_v53 = vadd.f32 %v2846_v62, %v1030_v59  ;;  %v877_v56 = vadd.f32 %v876_v22, %v2834_v54  ;;  %v1035_v25 = vadd.f32 %v2147_v39, %v885_v58  ;;  %v1300_v33 = vpack.c.bf16 %v3065_v2, %v3030_v8  ;;  %v879_v23 = vpop.f32.mrf.mxu1 }
 0x1a1   : > { %v1173_v36 = vrot.slane %v3076_v11, 7  ;;  %1336 = vrot.lane.b32.xlu0 %v1301_v44, %s2315_s12  ;;  %v888_v38 = vadd.f32 %v2126_v61, %v2836_v55  ;;  %v1251_v17 = vsel %vm397_vm1, %v1231_v19, %v1241_v41  ;;  %v1261_v52 = vsel %vm397_vm1, %v1241_v41, %v1231_v19  ;;  %v2148_v48 = vpop.f32.mrf.mxu0 }
 0x1a2   : > { %v3109_v54 = vsel %vm3089_vm7, %v1076_v29, 0.0  ;;  %v3113_v22 = vsel %vm3052_vm10, %v1079_v7, 0.0  ;;  %v1077_v13 = vmax.f32 %v1057_v53, 0.0  ;;  %v1062_v39 = vadd.f32 %v2846_v62, %v1035_v25 }
 0x1a3   : > { %v1033_v50 = vadd.f32 %v1002_v47, %v877_v56  ;;  %v1277_v55 = vsel %vm372_vm2, %v1261_v52, 0.0  ;;  %v880_v58 = vadd.f32 %v879_v23, %v2840_v12  ;;  %v1036_v59 = vadd.f32 %v2148_v48, %v888_v38  ;;  %v1005_v19 = vpop.f32.mrf.mxu0 }
 0x1a4   : > { %v1233_v41 = vrot.slane %v3076_v11, 1  ;;  %v3122_v29 = vsel %vm3089_vm7, %v1077_v13, 0.0  ;;  %v1082_v34 = vmax.f32 %v1062_v39, 0.0  ;;  %1334 = vrot.lane.b32.xlu1 %v1300_v33, %s2315_s12  ;;  %v1311_v12 = vpack.c.bf16 %v1277_v55, %v1251_v17 }
 0x1a5   : > { %v1172_v7 = vrot.slane %v3109_v54, 7  ;;  %v1243_v44 = vrot.slane %v3113_v22, 1  ;;  %v1060_v14 = vadd.f32 %v2846_v62, %v1033_v50  ;;  %v1063_v47 = vadd.f32 %v2846_v62, %v1036_v59 }
 0x1a6   : > { %1366 = vrot.lane.b32.xlu0 %v1311_v12, %s2316_s13  ;;  %v1250_v46 = vsel %vm397_vm1, %v1230_v28, %v1240_v51  ;;  %v1260_v53 = vsel %vm397_vm1, %v1240_v51, %v1230_v28  ;;  %v1034_v56 = vadd.f32 %v1005_v19, %v880_v58  ;;  %v1303_v25 = vpack.c.bf16 %v3113_v22, %v3076_v11 }
 0x1a7   : > { %v1242_v33 = vrot.slane %v3122_v29, 1  ;;  %v3147_v23 = vsel %vm3128_vm12, %v1082_v34, 0.0  ;;  %v1080_v38 = vmax.f32 %v1060_v14, 0.0  ;;  %v1083_v28 = vmax.f32 %v1063_v47, 0.0 }
 0x1a8   : > { %v1232_v51 = vrot.slane %v3109_v54, 1  ;;  %v1183_v52 = vrot.slane %v3113_v22, 7  ;;  %v1275_v48 = vsel %vm372_vm2, %v1260_v53, 0.0  ;;  %v1061_v13 = vadd.f32 %v2846_v62, %v1034_v56 }
 0x1a9   : > { %v1182_v39 = vrot.slane %v3122_v29, 7  ;;  %v1310_v50 = vpack.c.bf16 %v1275_v48, %v1250_v46  ;;  %v1253_v63 = vsel %vm397_vm1, %v1233_v41, %v1243_v44  ;;  %v1263_v55 = vsel %vm397_vm1, %v1243_v44, %v1233_v41 }
 0x1aa   : > { %v1175_v58 = vrot.slane %v3147_v23, 7  ;;  %v1235_v59 = vrot.slane %v3147_v23, 1  ;;  %v3171_v19 = vsel %vm3153_vm6, %v1080_v38, 0.0  ;;  %1340 = vrot.lane.b32.xlu0 %v1303_v25, %s2315_s12  ;;  %v1302_v62 = vpack.c.bf16 %v3122_v29, %v3109_v54 }
 0x1ab   : > { %v3178_v34 = vsel %vm3128_vm12, %v1083_v28, 0.0  ;;  %1364 = vrot.lane.b32.xlu1 %v1310_v50, %s2316_s13  ;;  %v1081_v41 = vmax.f32 %v1061_v13, 0.0  ;;  %v1281_v12 = vsel %vm372_vm2, %v1263_v55, 0.0  ;;  %v1262_v44 = vsel %vm397_vm1, %v1242_v33, %v1232_v51 }
 0x1ac   : > { %v1313_v14 = vpack.c.bf16 %v1281_v12, %v1253_v63  ;;  %v1252_v47 = vsel %vm397_vm1, %v1232_v51, %v1242_v33  ;;  %v1279_v46 = vsel %vm372_vm2, %v1262_v44, 0.0  ;;  %v1296_v61 = vpack.c.bf16 %v2936_v32, %v2892_v21 }
 0x1ad   : > { %v1174_v53 = vrot.slane %v3171_v19, 7  ;;  %v1163_v56 = vsel %vm3153_vm6, %v1081_v41, 0.0  ;;  %v3200_v25 = vsel %vm397_vm1, %v1226_v3, %v1236_v57  ;;  %v1256_v33 = vsel %vm397_vm1, %v1236_v57, %v1226_v3 }
 0x1ae   : > { %v1234_v38 = vrot.slane %v3171_v19, 1  ;;  %v1185_v17 = vrot.slane %v3178_v34, 7  ;;  %v1244_v28 = vrot.slane %v1163_v56, 1  ;;  %1370 = vrot.lane.b32.xlu0 %v1313_v14, %s2316_s13  ;;  %v1267_v51 = vsel %vm372_vm2, %v1256_v33, 0.0 }
 0x1af   : > { %v1245_v48 = vrot.slane %v3178_v34, 1  ;;  %1338 = vrot.lane.b32.xlu1 %v1302_v62, %s2315_s12  ;;  %v1312_v13 = vpack.c.bf16 %v1279_v46, %v1252_v47  ;;  %v1306_v50 = vpack.c.bf16 %v1267_v51, %v3200_v25  ;;  %v3222_v3 = vsel %vm318_vm3, %v1167_v60, %v1177_v26 }
 0x1b0   : > { %v1184_v57 = vrot.slane %v1163_v56, 7  ;;  %v1305_v63 = vpack.c.bf16 %v3178_v34, %v3147_v23  ;;  %v1264_v55 = vsel %vm397_vm1, %v1244_v28, %v1234_v38  ;;  %v1197_v62 = vsel %vm318_vm3, %v1177_v26, %v1167_v60 }
 0x1b1   : > { %v1254_v41 = vsel %vm397_vm1, %v1234_v38, %v1244_v28  ;;  %v1283_v12 = vsel %vm372_vm2, %v1264_v55, 0.0  ;;  %v1208_v44 = vsel %vm292_vm4, %v1197_v62, 0.0  ;;  %v3246_v27 = vsel %vm318_vm3, %v1169_v49, %v1179_v16 }
 0x1b2   : > { %1326 = vrot.lane.b32.xlu0 %v1296_v61, %s2315_s12  ;;  %v1304_v18 = vpack.c.bf16 %v1163_v56, %v3171_v19  ;;  %v1287_v60 = vpack.c.bf16 %v3222_v3, %v1208_v44  ;;  %v1199_v26 = vsel %vm318_vm3, %v1179_v16, %v1169_v49  ;;  %v1670_v34 = vsel %vm651_vm0, %v2919_v43, 0 }
 0x1b3   : > { %1368 = vrot.lane.b32.xlu1 %v1312_v13, %s2316_s13  ;;  %v1212_v14 = vsel %vm292_vm4, %v1199_v26, 0.0  ;;  %2186 = vmatpush3.bf16.msra.mxu0 %v1670_v34  ;;  %v1188_v30 = vsel %vm318_vm3, %v1168_v10, %v1178_v35  ;;  %v1198_v43 = vsel %vm318_vm3, %v1178_v35, %v1168_v10  ;;  %v3280_v45 = vsel %vm318_vm3, %v1171_v15, %v1181_v42 }
 0x1b4   : > { %v1314_v49 = vpack.c.bf16 %v1283_v12, %v1254_v41  ;;  %v1289_v16 = vpack.c.bf16 %v3246_v27, %v1212_v14  ;;  %v1210_v19 = vsel %vm292_vm4, %v1198_v43, 0.0  ;;  %v1201_v40 = vsel %vm318_vm3, %v1181_v42, %v1171_v15 }
 0x1b5   : > { %v1288_v9 = vpack.c.bf16 %v1188_v30, %v1210_v19  ;;  %v1216_v10 = vsel %vm292_vm4, %v1201_v40, 0.0  ;;  %v1190_v35 = vsel %vm318_vm3, %v1170_v5, %v1180_v0  ;;  %v1200_v37 = vsel %vm318_vm3, %v1180_v0, %v1170_v5 }
 0x1b6   : > { %1344 = vrot.lane.b32.xlu0 %v1305_v63, %s2315_s12  ;;  %v1291_v15 = vpack.c.bf16 %v3280_v45, %v1216_v10  ;;  %v1214_v31 = vsel %vm292_vm4, %v1200_v37, 0.0  ;;  %v3315_v42 = vsel %vm318_vm3, %v1173_v36, %v1183_v52  ;;  %v1203_v8 = vsel %vm318_vm3, %v1183_v52, %v1173_v36 }
 0x1b7   : > { %1342 = vrot.lane.b32.xlu1 %v1304_v18, %s2315_s12  ;;  %v1290_v5 = vpack.c.bf16 %v1190_v35, %v1214_v31  ;;  %v3326_v2 = vsel %vm292_vm4, %v1203_v8, 0.0  ;;  %v1192_v0 = vsel %vm318_vm3, %v1172_v7, %v1182_v39  ;;  %v1202_v11 = vsel %vm318_vm3, %v1182_v39, %v1172_v7 }
 0x1b8   : > { %v1293_v36 = vpack.c.bf16 %v3315_v42, %v3326_v2  ;;  %v1218_v22 = vsel %vm292_vm4, %v1202_v11, 0.0  ;;  %v3350_v52 = vsel %vm318_vm3, %v1166_v24, %v1176_v6  ;;  %v1196_v54 = vsel %vm318_vm3, %v1176_v6, %v1166_v24 }
 0x1b9   : > { %v1292_v29 = vpack.c.bf16 %v1192_v0, %v1218_v22  ;;  %v3360_v7 = vsel %vm292_vm4, %v1196_v54, 0.0  ;;  %v3364_v39 = vsel %vm318_vm3, %v1174_v53, %v1184_v57  ;;  %v1204_v47 = vsel %vm318_vm3, %v1184_v57, %v1174_v53 }
 0x1ba   : > { %v1286_v21 = vpack.c.bf16 %v3350_v52, %v3360_v7  ;;  %v1222_v32 = vsel %vm292_vm4, %v1204_v47, 0.0  ;;  %v3376_v24 = vsel %vm318_vm3, %v1175_v58, %v1185_v17  ;;  %v1205_v6 = vsel %vm318_vm3, %v1185_v17, %v1175_v58 }
 0x1bb   : > { %1372 = vrot.lane.b32.xlu1 %v1314_v49, %s2316_s13  ;;  %v1265_v46 = vsel %vm397_vm1, %v1245_v48, %v1235_v59  ;;  %v1294_v61 = vpack.c.bf16 %v3364_v39, %v1222_v32  ;;  %v3390_v53 = vsel %vm292_vm4, %v1205_v6, 0.0  ;;  %v1255_v58 = vsel %vm397_vm1, %v1235_v59, %v1245_v48 }
 0x1bc   : > { %v1295_v56 = vpack.c.bf16 %v3376_v24, %v3390_v53  ;;  %v1285_v25 = vsel %vm372_vm2, %v1265_v46, 0.0  ;;  %vm3599_vm3 = vcmask 31744   ;;  %vm3600_vm4 = vcmask 64512  }
 0x1bd   : > { %v1315_v33 = vpack.c.bf16 %v1285_v25, %v1255_v58  ;;  %vm3601_vm5 = vcmask 97280   ;;  %vm3602_vm1 = vmmov %vm3599_vm3  ;;  %v1560_v48 = vsel %vm651_vm0, %v3000_v20, 0 }
 0x1be   : > { %vm3603_vm2 = vmmov %vm3602_vm1 }
 0x1bf   : > { %1356 = vrot.lane.b32.xlu1 %v1306_v50, %s2316_s13  ;;  %vm3604_vm14 = vmmov %vm3600_vm4 }
 0x1c0   : > { %vm3605_vm15 = vmmov %vm3600_vm4 }
 0x1c1   : > { %vm3606_vm8 = vmmov %vm3601_vm5 }
 0x1c2   : > { %vm3607_vm9 = vmmov %vm3601_vm5 }
 0x1c3   : > { %1374 = vrot.lane.b32.xlu1 %v1315_v33, %s2316_s13  ;;  %vm3608_vm10 = vmmov %vm3601_vm5  ;;  %s1948_s13 = sshll.u32 %s260_s10, 3 }
 0x1c4   : > { %vm3609_vm11 = vmmov %vm3601_vm5  ;;  %s3481_s15 = scalar_lea.vmem %s3575_s5, %s1948_s13 }
 0x1c5   : > { %vm3610_vm13 = vmmov %vm3602_vm1 }
 0x1c6   : > { %vm3611_vm0 = vmmov %vm3602_vm1 }
 0x1c7   : > { %vm3612_vm7 = vmmov %vm3600_vm4 }
 0x1c8   : > { %vm3613_vm12 = vmmov %vm3600_vm4 }
 0x1c9   : > { %vm3614_vm6 = vmmov %vm3601_vm5 }
 0x1fd   : > { %v1329_v38 = vpop.permute.xlu0 %1328 }
 0x1fe   : > { %v1381_v17 = vsel %vm3599_vm3, %v1287_v60, %v1329_v38  ;;  %vm3615_vm3 = vmmov %vm3601_vm5 }
 0x203   : > { %v1359_v28 = vpop.permute.xlu0 %1358 }
 0x204   : > { %v1409_v51 = vsel %vm3600_vm4, %v1381_v17, %v1359_v28  ;;  %vm3616_vm4 = vmmov %vm3615_vm3 }
 0x205   : > { %2151 = vmatprep.mubr.msk.bf16.mxu1 %vm3601_vm5, %v1409_v51  ;;  %vm3617_vm5 = vmmov %vm3615_vm3 }
 0x207   : > { %v1333_v23 = vpop.permute.xlu0 %1332 }
 0x208   : > { %v1331_v13 = vpop.permute.xlu1 %1330  ;;  %v1387_v50 = vsel %vm3603_vm2, %v1289_v16, %v1333_v23  ;;  %vm3619_vm2 = vmmov %vm3611_vm0 }
 0x209   : > { %v1384_v59 = vsel %vm3602_vm1, %v1288_v9, %v1331_v13  ;;  %vm3618_vm1 = vmmov %vm3611_vm0 }
 0x20f   : > { %v1363_v1 = vpop.permute.xlu0 %1362 }
 0x210   : > { %v1413_v63 = vsel %vm3605_vm15, %v1387_v50, %v1363_v1  ;;  %vm3621_vm15 = vmmov %vm3612_vm7 }
 0x212   : > { %v1361_v4 = vpop.permute.xlu1 %1360 }
 0x213   : > { %v1411_v3 = vsel %vm3604_vm14, %v1384_v59, %v1361_v4  ;;  %v1337_v57 = vpop.permute.xlu0 %1336  ;;  %vm3620_vm14 = vmmov %vm3612_vm7 }
 0x214   : > { %2152 = vmatmul.mubr.msk.bf16.vlgmr.msra.gmra.mxu1 %vm3606_vm8, %v1411_v3  ;;  %2187 = vmatprep.mubr.msk.bf16.mxu0 %vm3607_vm9, %v1411_v3  ;;  %v1393_v12 = vsel %vm3611_vm0, %v1291_v15, %v1337_v57  ;;  %vm3622_vm8 = vmmov %vm3615_vm3 }
 0x215   : > { %2168 = vmatpush3.bf16.msra.mxu1 %v1560_v48  ;;  %2155 = vmatprep.mubr.msk.bf16.mxu1 %vm3608_vm10, %v1413_v63  ;;  %vm3623_vm9 = vmmov %vm3615_vm3 }
 0x216   : > { %2188 = vmatmul.mubr.msk.bf16.vlgmr.msra.gmra.mxu0 %vm3609_vm11, %v1413_v63  ;;  %v1335_v55 = vpop.permute.xlu1 %1334  ;;  %vm3624_vm10 = vmmov %vm3615_vm3 }
 0x217   : > { %v1390_v20 = vsel %vm3610_vm13, %v1290_v5, %v1335_v55  ;;  %vm3625_vm11 = vmmov %vm3615_vm3 }
 0x218   : > { %v1367_v62 = vpop.permute.xlu0 %1366  ;;  %vm3626_vm13 = vmmov %vm3611_vm0 }
 0x219   : > { %v1417_v18 = vsel %vm3613_vm12, %v1393_v12, %v1367_v62  ;;  %vm3627_vm0 = vmmov %vm3612_vm7 }
 0x21a   : > { %vm3629_vm12 = vmmov %vm3615_vm3 }
 0x21c   : > { %v1341_v27 = vpop.permute.xlu0 %1340 }
 0x21d   : > { %v1365_v41 = vpop.permute.xlu1 %1364  ;;  %v1399_v30 = vsel %vm3619_vm2, %v1293_v36, %v1341_v27  ;;  %vm3634_vm2 = vmmov %vm3616_vm4 }
 0x21e   : > { %v1415_v44 = vsel %vm3612_vm7, %v1390_v20, %v1365_v41  ;;  %vm3628_vm7 = vmmov %vm3615_vm3 }
 0x21f   : > { %2156 = vmatmul.mubr.msk.bf16.gmra.mxu1 %vm3614_vm6, %v1415_v44  ;;  %2191 = vmatprep.mubr.msk.bf16.mxu0 %vm3615_vm3, %v1415_v44  ;;  %vm3630_vm6 = vmmov %vm3618_vm1 }
 0x220   : > { %2159 = vmatprep.mubr.msk.bf16.mxu1 %vm3616_vm4, %v1417_v18  ;;  %2192 = vmatmul.mubr.msk.bf16.gmra.mxu0 %vm3617_vm5, %v1417_v18  ;;  %v1371_v26 = vpop.permute.xlu0 %1370  ;;  %vm3631_vm3 = vmmov %vm3627_vm0 }
 0x221   : > { %v1339_v60 = vpop.permute.xlu1 %1338  ;;  %v1421_v45 = vsel %vm3621_vm15, %v1399_v30, %v1371_v26  ;;  %vm3632_vm5 = vmmov %vm3618_vm1  ;;  %v2261_v30 = vld [vmem:[%s2397_s9 + $0x38] sm:$0xff] }
 0x222   : > { %v1396_v34 = vsel %vm3618_vm1, %v1292_v29, %v1339_v60  ;;  %vm3633_vm1 = vmmov %vm3627_vm0 }
 0x223   : > { %vm3636_vm15 = vmmov %vm3634_vm2 }
 0x224   : > { %v1327_v16 = vpop.permute.xlu0 %1326 }
 0x225   : > { %v1369_v14 = vpop.permute.xlu1 %1368  ;;  %v1378_v10 = vsel %vm3630_vm6, %v1286_v21, %v1327_v16 }
 0x226   : > { %v1419_v43 = vsel %vm3620_vm14, %v1396_v34, %v1369_v14  ;;  %vm3635_vm14 = vmmov %vm3634_vm2 }
 0x227   : > { %2160 = vmatmul.mubr.msk.bf16.gmra.mxu1 %vm3622_vm8, %v1419_v43  ;;  %2195 = vmatprep.mubr.msk.bf16.mxu0 %vm3623_vm9, %v1419_v43  ;;  %vm3637_vm8 = vmmov %vm3634_vm2 }
 0x228   : > { %2163 = vmatprep.mubr.msk.bf16.mxu1 %vm3624_vm10, %v1421_v45  ;;  %2196 = vmatmul.mubr.msk.bf16.gmra.mxu0 %vm3625_vm11, %v1421_v45  ;;  %v1345_v37 = vpop.permute.xlu0 %1344  ;;  %vm3638_vm9 = vmmov %vm3634_vm2 }
 0x229   : > { %v1343_v49 = vpop.permute.xlu1 %1342  ;;  %v1405_v31 = vsel %vm3632_vm5, %v1295_v56, %v1345_v37  ;;  %vm3639_vm10 = vmmov %vm3634_vm2 }
 0x22a   : > { %v1402_v19 = vsel %vm3626_vm13, %v1294_v61, %v1343_v49  ;;  %vm3640_vm11 = vmmov %vm3634_vm2 }
 0x22b   : > { %vm3641_vm13 = vmmov %vm3634_vm2 }
 0x22d   : > { %v1373_v40 = vpop.permute.xlu1 %1372 }
 0x22e   : > { %v1423_v9 = vsel %vm3627_vm0, %v1402_v19, %v1373_v40  ;;  %vm3642_vm0 = vmmov %vm3632_vm5  ;;  %v2262_v40 = vld [vmem:[%s2397_s9 + $0x28] sm:$0xff] }
 0x22f   : > { %2164 = vmatmul.mubr.msk.bf16.gmra.mxu1 %vm3628_vm7, %v1423_v9  ;;  %2199 = vmatprep.mubr.msk.bf16.mxu0 %vm3629_vm12, %v1423_v9  ;;  %vm3643_vm7 = vmmov %vm3642_vm0 }
 0x230   : > { %vm3644_vm12 = vmmov %vm3642_vm0 }
 0x231   : > { %v1357_v35 = vpop.permute.xlu1 %1356  ;;  %vm3645_vm6 = vmmov %vm3642_vm0 }
 0x232   : > { %v1407_v15 = vsel %vm3631_vm3, %v1378_v10, %v1357_v35  ;;  %vm3646_vm3 = vmmov %vm3642_vm0 }
 0x233   : > { %2169 = vmatprep.mubr.msk.bf16.mxu1 %vm3616_vm4, %v1407_v15  ;;  %vm3647_vm4 = vmmov %vm3642_vm0 }
 0x234   : > { %vm3648_vm5 = vmmov %vm3642_vm0 }
 0x235   : > { %v1375_v42 = vpop.permute.xlu1 %1374 }
 0x236   : > { %v1425_v8 = vsel %vm3633_vm1, %v1405_v31, %v1375_v42  ;;  %v2263_v42 = vld [vmem:[%s2397_s9 + $0x50] sm:$0xff]  ;;  %vm3649_vm1 = vmmov %vm3642_vm0 }
 0x237   : > { %2170 = vmatmul.mubr.msk.bf16.vlgmr.msra.gmra.mxu1 %vm3634_vm2, %v1409_v51  ;;  %2200 = vmatmul.mubr.msk.bf16.gmra.mxu0 %vm3635_vm14, %v1425_v8  ;;  %v3475_v51 = vld [vmem:[%s3574_s4] ss:$0 sm:$0xff]  ;;  %vm3650_vm2 = vmmov %vm3642_vm0 }
 0x238   : > { %2173 = vmatprep.mubr.msk.bf16.mxu1 %vm3636_vm15, %v1411_v3  ;;  %vm3651_vm14 = vmmov %vm3642_vm0 }
 0x239   : > { %vm3652_vm15 = vmmov %vm3642_vm0 }
 0x23f   : > { %2174 = vmatmul.mubr.msk.bf16.gmra.mxu1 %vm3637_vm8, %v1413_v63  ;;  %v2259_v63 = vld [vmem:[%s2397_s9 + $0x30] sm:$0xff]  ;;  %vm3653_vm8 = vmmov %vm3642_vm0 }
 0x240   : > { %2177 = vmatprep.mubr.msk.bf16.mxu1 %vm3638_vm9, %v1415_v44  ;;  %v2260_v44 = vld [vmem:[%s2397_s9 + $0x20] sm:$0xff]  ;;  %vm3654_vm9 = vmmov %vm3642_vm0 }
 0x247   : > { %2178 = vmatmul.mubr.msk.bf16.gmra.mxu1 %vm3639_vm10, %v1417_v18  ;;  %vm3655_vm10 = vmmov %vm3642_vm0 }
 0x248   : > { %2181 = vmatprep.mubr.msk.bf16.mxu1 %vm3640_vm11, %v1419_v43  ;;  %vm3656_vm11 = vmmov %vm3642_vm0 }
 0x24f   : > { %2182 = vmatmul.mubr.msk.bf16.gmra.mxu1 %vm3641_vm13, %v1421_v45  ;;  %vm3657_vm13 = vmmov %vm3642_vm0 }
 0x2d4   : > { %v2153_v5 = vpop.f32.mrf.mxu1 }
 0x2d6   : > { %v1489_v2 = vpop.f32.mrf.mxu1  ;;  %v2189_v36 = vpop.f32.mrf.mxu0 }
 0x2d8   : > { %v2154_v0 = vpop.f32.mrf.mxu1  ;;  %v1706_v52 = vpop.f32.mrf.mxu0 }
 0x2da   : > { %v1492_v11 = vpop.f32.mrf.mxu1  ;;  %v2190_v7 = vpop.f32.mrf.mxu0 }
 0x2dc   : > { %v1709_v21 = vpop.f32.mrf.mxu0 }
 0x2df   : > { %v2157_v22 = vpop.f32.mrf.mxu1 }
 0x2e0   : > { %v2193_v6 = vpop.f32.mrf.mxu0 }
 0x2e1   : > { %v1505_v54 = vpop.f32.mrf.mxu1 }
 0x2e2   : > { %v1722_v53 = vpop.f32.mrf.mxu0 }
 0x2e3   : > { %v2158_v29 = vpop.f32.mrf.mxu1 }
 0x2e4   : > { %v2194_v25 = vpop.f32.mrf.mxu0 }
 0x2e5   : > { %v3451_v39 = vpop.f32.mrf.mxu1 }
 0x2e6   : > { %v1725_v28 = vpop.f32.mrf.mxu0 }
 0x2e7   : > { %v3453_v47 = vpop.f32.mrf.mxu1 }
 0x2e8   : > { %v2197_v3 = vpop.f32.mrf.mxu0 }
 0x2e9   : > { %v3455_v32 = vpop.f32.mrf.mxu1 }
 0x2ea   : > { %v1738_v34 = vpop.f32.mrf.mxu0 }
 0x2eb   : > { %v3457_v24 = vpop.f32.mrf.mxu1 }
 0x2ec   : > { %v2198_v15 = vpop.f32.mrf.mxu0 }
 0x2ed   : > { %v3460_v46 = vpop.f32.mrf.mxu1 }
 0x2ef   : > { %v3462_v61 = vpop.f32.mrf.mxu1 }
 0x2f1   : > { %v3465_v56 = vpop.f32.mrf.mxu1 }
 0x2f3   : > { %v3467_v58 = vpop.f32.mrf.mxu1 }
 0x2f5   : > { %v3470_v33 = vpop.f32.mrf.mxu1 }
 0x2f7   : > { %v2171_v38 = vpop.f32.mrf.mxu1 }
 0x2f8   : > { %v1605_v17 = vadd.f32 %v2171_v38, %v2153_v5 }
 0x2f9   : > { %v1596_v23 = vpop.f32.mrf.mxu1 }
 0x2fa   : > { %v1771_v13 = vadd.f32 %v2189_v36, %v1605_v17  ;;  %v1597_v1 = vadd.f32 %v1596_v23, %v1489_v2  ;;  %v2264_v36 = vld [vmem:[%s2397_s9 + $0x40] sm:$0xff] }
 0x2fb   : > { %v2172_v59 = vpop.f32.mrf.mxu1 }
 0x2fc   : > { %v1794_v4 = vadd.f32 %v3475_v51, %v1771_v13  ;;  %v1769_v48 = vadd.f32 %v1706_v52, %v1597_v1  ;;  %v1608_v50 = vadd.f32 %v2172_v59, %v2154_v0 }
 0x2fd   : > { %v1599_v57 = vpop.f32.mrf.mxu1 }
 0x2fe   : > { %v1810_v55 = vadd.f32 %v2259_v63, %v1794_v4  ;;  %v1792_v62 = vadd.f32 %v3475_v51, %v1769_v48  ;;  %v1772_v20 = vadd.f32 %v2190_v7, %v1608_v50  ;;  %v1600_v41 = vadd.f32 %v1599_v57, %v1492_v11  ;;  %v1741_v7 = vpop.f32.mrf.mxu0  ;;  %v2267_v48 = vld [vmem:[%s2397_s9 + $0x70] sm:$0xff] }
 0x2ff   : > { %v2175_v12 = vpop.f32.mrf.mxu1 }
 0x300   : > { %1826 = vst.msk [vmem:[%s3481_s15 + $0x10] sm:$0xff] %vm3642_vm0, %v1810_v55  ;;  %v1808_v27 = vadd.f32 %v2260_v44, %v1792_v62  ;;  %v1795_v18 = vadd.f32 %v3475_v51, %v1772_v20  ;;  %v1770_v60 = vadd.f32 %v1709_v21, %v1600_v41  ;;  %v1621_v26 = vadd.f32 %v2175_v12, %v2157_v22  ;;  %v2201_v17 = vpop.f32.mrf.mxu0  ;;  %v2268_v62 = vld [vmem:[%s2397_s9 + $0x60] sm:$0xff] }
 0x301   : > { %v1612_v14 = vpop.f32.mrf.mxu1 }
 0x302   : > { %1824 = vst.msk [vmem:[%s3481_s15] sm:$0xff] %vm3643_vm7, %v1808_v27  ;;  %v1811_v43 = vadd.f32 %v2261_v30, %v1795_v18  ;;  %v1793_v45 = vadd.f32 %v3475_v51, %v1770_v60  ;;  %v1775_v49 = vadd.f32 %v2193_v6, %v1621_v26  ;;  %v1613_v16 = vadd.f32 %v1612_v14, %v1505_v54  ;;  %v2265_v6 = vld [vmem:[%s2397_s9 + $0x58] sm:$0xff]  ;;  %v1754_v63 = vpop.f32.mrf.mxu0  ;;  %v2270_v30 = vld [vmem:[%s2397_s9 + $0x68] sm:$0xff] }
 0x303   : > { %v2176_v19 = vpop.f32.mrf.mxu1  ;;  %v2269_v27 = vld [vmem:[%s2397_s9 + $0x78] sm:$0xff] }
 0x304   : > { %1827 = vst.msk [vmem:[%s3481_s15 + $0x18] sm:$0xff] %vm3644_vm12, %v1811_v43  ;;  %v1809_v9 = vadd.f32 %v2262_v40, %v1793_v45  ;;  %v1798_v10 = vadd.f32 %v3475_v51, %v1775_v49  ;;  %v1773_v35 = vadd.f32 %v1722_v53, %v1613_v16  ;;  %v1624_v37 = vadd.f32 %v2176_v19, %v2158_v29 }
 0x305   : > { %v1615_v31 = vpop.f32.mrf.mxu1 }
 0x306   : > { %1825 = vst.msk [vmem:[%s3481_s15 + $0x8] sm:$0xff] %vm3645_vm6, %v1809_v9  ;;  %v1814_v8 = vadd.f32 %v2263_v42, %v1798_v10  ;;  %v1796_v5 = vadd.f32 %v3475_v51, %v1773_v35  ;;  %v1776_v2 = vadd.f32 %v2194_v25, %v1624_v37  ;;  %v1616_v0 = vadd.f32 %v1615_v31, %v3451_v39  ;;  %v2272_v37 = vld [vmem:[%s2397_s9 + $0x80] sm:$0xff]  ;;  %v2273_v42 = vld [vmem:[%s2397_s9 + $0x98] sm:$0xff] }
 0x307   : > { %v2179_v11 = vpop.f32.mrf.mxu1 }
 0x308   : > { %1830 = vst.msk [vmem:[%s3481_s15 + $0x30] sm:$0xff] %vm3646_vm3, %v1814_v8  ;;  %v1812_v22 = vadd.f32 %v2264_v36, %v1796_v5  ;;  %v1799_v52 = vadd.f32 %v3475_v51, %v1776_v2  ;;  %v1774_v54 = vadd.f32 %v1725_v28, %v1616_v0  ;;  %v1637_v29 = vadd.f32 %v2179_v11, %v3453_v47  ;;  %v2266_v47 = vld [vmem:[%s2397_s9 + $0x48] sm:$0xff] }
 0x309   : > { %v1628_v21 = vpop.f32.mrf.mxu1  ;;  %v2274_v2 = vld [vmem:[%s2397_s9 + $0x88] sm:$0xff] }
 0x30a   : > { %1828 = vst.msk [vmem:[%s3481_s15 + $0x20] sm:$0xff] %vm3647_vm4, %v1812_v22  ;;  %v1815_v39 = vadd.f32 %v2265_v6, %v1799_v52  ;;  %v1797_v53 = vadd.f32 %v3475_v51, %v1774_v54  ;;  %v1779_v25 = vadd.f32 %v2197_v3, %v1637_v29  ;;  %v1629_v38 = vadd.f32 %v1628_v21, %v3455_v32 }
 0x30b   : > { %v2180_v23 = vpop.f32.mrf.mxu1 }
 0x30c   : > { %1831 = vst.msk [vmem:[%s3481_s15 + $0x38] sm:$0xff] %vm3648_vm5, %v1815_v39  ;;  %v1813_v28 = vadd.f32 %v2266_v47, %v1797_v53  ;;  %v1802_v13 = vadd.f32 %v3475_v51, %v1779_v25  ;;  %v1777_v1 = vadd.f32 %v1738_v34, %v1629_v38  ;;  %v1640_v59 = vadd.f32 %v2180_v23, %v3457_v24  ;;  %v2202_v34 = vpop.f32.mrf.mxu0 }
 0x30d   : > { %v1631_v4 = vpop.f32.mrf.mxu1 }
 0x30e   : > { %1829 = vst.msk [vmem:[%s3481_s15 + $0x28] sm:$0xff] %vm3649_vm1, %v1813_v28  ;;  %v1818_v32 = vadd.f32 %v2267_v48, %v1802_v13  ;;  %v1800_v50 = vadd.f32 %v3475_v51, %v1777_v1  ;;  %v1780_v3 = vadd.f32 %v2198_v15, %v1640_v59  ;;  %v1632_v57 = vadd.f32 %v1631_v4, %v3460_v46  ;;  %v1757_v35 = vpop.f32.mrf.mxu0 }
 0x30f   : > { %v2183_v55 = vpop.f32.mrf.mxu1 }
 0x310   : > { %1834 = vst.msk [vmem:[%s3481_s15 + $0x50] sm:$0xff] %vm3650_vm2, %v1818_v32  ;;  %v1816_v24 = vadd.f32 %v2268_v62, %v1800_v50  ;;  %v1803_v20 = vadd.f32 %v3475_v51, %v1780_v3  ;;  %v1778_v41 = vadd.f32 %v1741_v7, %v1632_v57  ;;  %v1653_v12 = vadd.f32 %v2183_v55, %v3462_v61 }
 0x311   : > { %v1644_v44 = vpop.f32.mrf.mxu1 }
 0x312   : > { %1832 = vst.msk [vmem:[%s3481_s15 + $0x40] sm:$0xff] %vm3651_vm14, %v1816_v24  ;;  %v1819_v46 = vadd.f32 %v2269_v27, %v1803_v20  ;;  %v1801_v18 = vadd.f32 %v3475_v51, %v1778_v41  ;;  %v1783_v60 = vadd.f32 %v2201_v17, %v1653_v12  ;;  %v1645_v26 = vadd.f32 %v1644_v44, %v3465_v56  ;;  %v2271_v56 = vld [vmem:[%s2397_s9 + $0x90] sm:$0xff] }
 0x313   : > { %v2184_v14 = vpop.f32.mrf.mxu1 }
 0x314   : > { %1835 = vst.msk [vmem:[%s3481_s15 + $0x58] sm:$0xff] %vm3652_vm15, %v1819_v46  ;;  %v1817_v61 = vadd.f32 %v2270_v30, %v1801_v18  ;;  %v1806_v43 = vadd.f32 %v3475_v51, %v1783_v60  ;;  %v1781_v45 = vadd.f32 %v1754_v63, %v1645_v26  ;;  %v1656_v49 = vadd.f32 %v2184_v14, %v3467_v58 }
 0x315   : > { %v1647_v16 = vpop.f32.mrf.mxu1 }
 0x316   : > { %1833 = vst.msk [vmem:[%s3481_s15 + $0x48] sm:$0xff] %vm3653_vm8, %v1817_v61  ;;  %v1822_v19 = vadd.f32 %v2271_v56, %v1806_v43  ;;  %v1804_v40 = vadd.f32 %v3475_v51, %v1781_v45  ;;  %v1784_v9 = vadd.f32 %v2202_v34, %v1656_v49  ;;  %v1648_v10 = vadd.f32 %v1647_v16, %v3470_v33 }
 0x318   : > { %1838 = vst.msk [vmem:[%s3481_s15 + $0x70] sm:$0xff] %vm3654_vm9, %v1822_v19  ;;  %v1820_v15 = vadd.f32 %v2272_v37, %v1804_v40  ;;  %v1807_v58 = vadd.f32 %v3475_v51, %v1784_v9  ;;  %v1782_v31 = vadd.f32 %v1757_v35, %v1648_v10 }
 0x31a   : > { %1836 = vst.msk [vmem:[%s3481_s15 + $0x60] sm:$0xff] %vm3655_vm10, %v1820_v15  ;;  %v1823_v8 = vadd.f32 %v2273_v42, %v1807_v58  ;;  %v1805_v5 = vadd.f32 %v3475_v51, %v1782_v31 }
 0x31c   : > { %1839 = vst.msk [vmem:[%s3481_s15 + $0x78] sm:$0xff] %vm3656_vm11, %v1823_v8  ;;  %v1821_v0 = vadd.f32 %v2274_v2, %v1805_v5 }
 0x31e   : > { %1837 = vst.msk [vmem:[%s3481_s15 + $0x68] sm:$0xff] %vm3657_vm13, %v1821_v0 }
 0x31f PF: > { %s15_s22 = sadd.s32 1, %s2313_s22   ;;  %s3658_s18 = smov %s2305_s20 }
 0x320   : > { %p12_p8 = scmp.ge.s32.totalorder %s15_s22, 6   ;;  %s3659_s19 = smov %s2309_s21 }
 0x321   : > { %s3660_s20 = smov %s3663_s23  ;;  %s3661_s21 = smov %s3667_s24 }
 0x322   :  { %14 = sbr.rel (!%p12_p8) target bundleno = 3 (0x3), region = 74 }

// kernel: tpu_custom_call.1
= control target key start
LH: loop header
LB: loop body
LE: loop exit
PB: predicated region body
PF: predicated region fallthrough
CT: control target
= control target key end

     0   :  { %s2347_s18 = smov 0   ;;  %s2349_s19 = smov 0   ;;  %s3570_s0 = inlined_call_operand.vmem [shape: f32[2,2,12,16,4], index: 0, kind: input, shape index: {}]   ;;  %s3571_s1 = inlined_call_operand.vmem [shape: bf16[3,12,4], index: 1, kind: input, shape index: {}]   ;;  %s3572_s2 = inlined_call_operand.vmem [shape: f32[1,4], index: 2, kind: input, shape index: {}]   ;;  %s3573_s3 = inlined_call_operand.vmem [shape: bf16[3,12,4], index: 3, kind: input, shape index: {}]   ;;  %s3574_s4 = inlined_call_operand.vmem [shape: f32[1,4], index: 4, kind: input, shape index: {}]   ;;  %s3575_s5 = inlined_call_operand.vmem [shape: f32[2,16,16,4], index: 5, kind: output, shape index: {}]  }
   0x1   :  { %s2351_s20 = smov 0   ;;  %s2353_s21 = smov 0  }
   0x2   :  { %s2355_s22 = smov 0  }
   0x3 LB: > { %s24_s23 = sadd.s32 1, %s2305_s20  ;;  %s27_s24 = sadd.s32 1, %s2309_s21  ;;  %s2313_s22 = sphi %s2355_s22, %s15_s22   ;;  %s2309_s21 = sphi %s2353_s21, %s3661_s21   ;;  %s2305_s20 = sphi %s2351_s20, %s3660_s20   ;;  %s2301_s19 = sphi %s2349_s19, %s3659_s19   ;;  %s2297_s18 = sphi %s2347_s18, %s3658_s18  }
   0x4   : > { %p25_p0 = scmp.ge.s32.totalorder %s24_s23, 2  ;;  %p1943_p1 = scmp.ge.s32.totalorder %s2313_s22, 1 }
   0x5   : > { %p207_p2 = scmp.lt.s32.totalorder %s2313_s22, 5 }
   0x6   : > { %s3663_s23 = smov (%p25_p0, %s24_s23), 0  ;;  %s3665_s24 = smov (!%p25_p0, %s27_s24), %s2309_s21 }
   0x7   : > { %p208_p3 = pnand %p1943_p1, %p207_p2  ;;  %p29_p4 = scmp.ge.s32.totalorder %s3665_s24, 2 }
   0x8   : > { %p244_p5 = scmp.lt.s32.totalorder (!%p208_p3), %s2301_s19, 1  ;;  %p246_p6 = scmp.lt.s32.totalorder (!%p208_p3), %s2297_s18, 1 }
   0x9   : > { %s3667_s24 = smov (%p29_p4, %s3665_s24), 0  ;;  %211 = sbr.rel (%p208_p3) target bundleno = 799 (0x31f), region = 40 }
   0xa   : > { %s2315_s12 = smov (!%p208_p3), 4   ;;  %s2316_s13 = smov (!%p208_p3), 8  }
   0xe   : > { %v289_v0 = vlaneseq  ;;  %s3669_s19 = smov (!%p244_p5, %s2301_s19), 1  ;;  %v2253_v2 = vld [vmem:[%s3571_s1 + $0x8] sm:$0x3f]   ;;  %vm651_vm0 = vcmask 1045504   ;;  %v2402_v5 = vld [vmem:[%s3571_s1 + $0x10] sm:$0x3f]  }
   0xf   : > { %s247_s25 = scalar_select %p246_p6, %s2297_s18, 1  ;;  %2203 = vmatprep.subr.msk.bf16.mxu0 %vm651_vm0, %v2253_v2  ;;  %v653_v3 = vsel %vm651_vm0, %v2253_v2, 0  ;;  %vm3578_vm5 = vcmask 31744   ;;  %vm3577_vm6 = vcmask 64512   ;;  %vm3576_vm7 = vcmask 97280  }
  0x10   : > { %s2210_s26 = smul.u32 48, %s3669_s19  ;;  %v2384_v1 = vshrl.u32 %v289_v0, 7  ;;  %2084 = vmatpush3.bf16.msra.mxu0 %v653_v3  ;;  %s1947_s8 = sshll.u32 %s3669_s19, 5 }
  0x11   : > { %s2209_s27 = smul.u32 24, %s247_s25  ;;  %2205 = vmatprep.subr.msk.bf16.mxu0 %vm651_vm0, %v2402_v5  ;;  %s2829_s25 = sshll.u32 %s2297_s18, 3 }
  0x12   : > { %v2392_v4 = vadd.s32 8, %v2384_v1  ;;  %vm397_vm1 = vcmp.lt.s32.totalorder %v2384_v1, 7  ;;  %vm318_vm3 = vcmp.lt.s32.totalorder %v2384_v1, 1  ;;  %vm292_vm4 = vcmp.gt.s32.totalorder %v2384_v1, 0  ;;  %p256_p7 = scmp.lt.s32.totalorder %s2829_s25, 15 }
  0x13   : > { %s250_s30 = sadd.s32 %s2210_s26, %s2209_s27  ;;  %s1988_s26 = sadd.s32 4294967295, %s2829_s25 }
  0x14   : > { %s1944_s6 = sshll.u32 %s250_s30, 3  ;;  %vm372_vm2 = vcmp.lt.s32.totalorder %v2392_v4, 15  ;;  %s3671_s25 = smov (!%p256_p7, %s2829_s25), 15 }
  0x15   : > { %s2397_s9 = scalar_lea.vmem %s3570_s0, %s1944_s6  ;;  %s1946_s7 = sshll.u32 %s3671_s25, 1 }
  0x16   : > { %v2405_v6 = vld [vmem:[%s2397_s9 + $0x10] sm:$0xff]  ;;  %v2408_v7 = vld [vmem:[%s2397_s9 + $0x18] sm:$0xff]  ;;  %v2411_v8 = vld [vmem:[%s2397_s9 + $0x20] sm:$0xff]  ;;  %s260_s10 = sadd.s32 %s1947_s8, %s1946_s7 }
  0x17   : > { %v386_v9 = vrot.slane %v2408_v7, 1  ;;  %v463_v10 = vpack.c.bf16 %v2408_v7, %v2405_v6  ;;  %v2417_v11 = vld [vmem:[%s2397_s9 + $0x28] sm:$0xff]  ;;  %v2421_v12 = vld [vmem:[%s2397_s9 + $0x30] sm:$0xff]  ;;  %v2424_v13 = vld [vmem:[%s2397_s9 + $0x38] sm:$0xff]  ;;  %v374_v14 = vrot.slane %v2405_v6, 1  ;;  %v375_v15 = vrot.slane %v2411_v8, 1 }
  0x18   : > { %v2432_v16 = vld [vmem:[%s2397_s9 + $0x40] sm:$0xff]  ;;  %v464_v17 = vpack.c.bf16 %v2417_v11, %v2411_v8  ;;  %v387_v18 = vrot.slane %v2417_v11, 1  ;;  %v376_v19 = vrot.slane %v2421_v12, 1  ;;  %v388_v20 = vrot.slane %v2424_v13, 1  ;;  %v2441_v21 = vld [vmem:[%s2397_s9 + $0x48] sm:$0xff]  ;;  %v2459_v31 = vld [vmem:[%s2397_s9 + $0x50] sm:$0xff] }
  0x19   : > { %500 = vrot.lane.b32.xlu0 %v463_v10, %s2315_s12  ;;  %v399_v22 = vsel %vm397_vm1, %v374_v14, %v386_v9  ;;  %v411_v23 = vsel %vm397_vm1, %v386_v9, %v374_v14  ;;  %v377_v27 = vrot.slane %v2432_v16, 1  ;;  %v2462_v32 = vld [vmem:[%s2397_s9 + $0x58] sm:$0xff]  ;;  %v389_v33 = vrot.slane %v2441_v21, 1  ;;  %v2479_v42 = vld [vmem:[%s2397_s9 + $0x60] sm:$0xff]  ;;  %v2482_v43 = vld [vmem:[%s2397_s9 + $0x68] sm:$0xff] }
  0x1a   : > { %v429_v24 = vsel %vm372_vm2, %v411_v23, 0.0  ;;  %v400_v25 = vsel %vm397_vm1, %v375_v15, %v387_v18  ;;  %v412_v26 = vsel %vm397_vm1, %v387_v18, %v375_v15  ;;  %v413_v30 = vsel %vm397_vm1, %v388_v20, %v376_v19  ;;  %v2494_v48 = vld [vmem:[%s2397_s9 + $0x70] sm:$0xff]  ;;  %v2497_v49 = vld [vmem:[%s2397_s9 + $0x78] sm:$0xff]  ;;  %v2518_v62 = vld [vmem:[%s2397_s9 + $0x80] sm:$0xff] }
  0x1b   : > { %v475_v28 = vpack.c.bf16 %v429_v24, %v399_v22  ;;  %v431_v29 = vsel %vm372_vm2, %v412_v26, 0.0  ;;  %v465_v34 = vpack.c.bf16 %v2424_v13, %v2421_v12  ;;  %v401_v36 = vsel %vm397_vm1, %v376_v19, %v388_v20  ;;  %v2521_v63 = vld [vmem:[%s2397_s9 + $0x88] sm:$0xff]  ;;  %v2537_v9 = vld [vmem:[%s2397_s9 + $0x98] sm:$0xff] }
  0x1c   : > { %v476_v35 = vpack.c.bf16 %v431_v29, %v400_v25  ;;  %v433_v37 = vsel %vm372_vm2, %v413_v30, 0.0  ;;  %v378_v38 = vrot.slane %v2459_v31, 1  ;;  %v390_v39 = vrot.slane %v2462_v32, 1  ;;  %v286_v29 = vld [vmem:[%s2397_s9 + $0xa8] sm:$0xff] }
  0x1d   : > { %502 = vrot.lane.b32.xlu0 %v464_v17, %s2315_s12  ;;  %536 = vrot.lane.b32.xlu1 %v475_v28, %s2316_s13  ;;  %v414_v40 = vsel %vm397_vm1, %v389_v33, %v377_v27  ;;  %v477_v41 = vpack.c.bf16 %v433_v37, %v401_v36  ;;  %v466_v44 = vpack.c.bf16 %v2441_v21, %v2432_v16  ;;  %v379_v50 = vrot.slane %v2479_v42, 1  ;;  %v285_v28 = vld [vmem:[%s2397_s9 + $0xa0] sm:$0xff] }
  0x1e   : > { %v402_v45 = vsel %vm397_vm1, %v377_v27, %v389_v33  ;;  %v435_v46 = vsel %vm372_vm2, %v414_v40, 0.0  ;;  %v415_v47 = vsel %vm397_vm1, %v390_v39, %v378_v38  ;;  %v391_v51 = vrot.slane %v2482_v43, 1 }
  0x1f   : > { %v467_v52 = vpack.c.bf16 %v2462_v32, %v2459_v31  ;;  %v478_v53 = vpack.c.bf16 %v435_v46, %v402_v45  ;;  %v403_v54 = vsel %vm397_vm1, %v378_v38, %v390_v39  ;;  %v437_v55 = vsel %vm372_vm2, %v415_v47, 0.0  ;;  %v265_v45 = vld [vmem:[%s2397_s9] sm:$0xff]  ;;  %v266_v46 = vld [vmem:[%s2397_s9 + $0x8] sm:$0xff] }
  0x20   : > { %v380_v56 = vrot.slane %v2494_v48, 1  ;;  %v392_v57 = vrot.slane %v2497_v49, 1  ;;  %v307_v58 = vrot.slane %v2408_v7, 7  ;;  %v295_v59 = vrot.slane %v2405_v6, 7  ;;  %v2534_v7 = vld [vmem:[%s2397_s9 + $0x90] sm:$0xff] }
  0x21   : > { %504 = vrot.lane.b32.xlu0 %v465_v34, %s2315_s12  ;;  %538 = vrot.lane.b32.xlu1 %v476_v35, %s2316_s13  ;;  %v416_v60 = vsel %vm397_vm1, %v391_v51, %v379_v50  ;;  %v479_v61 = vpack.c.bf16 %v437_v55, %v403_v54  ;;  %v468_v0 = vpack.c.bf16 %v2482_v43, %v2479_v42  ;;  %v381_v10 = vrot.slane %v2518_v62, 1  ;;  %v2255_v47 = vld [vmem:[%s3571_s1] sm:$0x3f]  }
  0x22   : > { %v404_v2 = vsel %vm397_vm1, %v379_v50, %v391_v51  ;;  %v439_v3 = vsel %vm372_vm2, %v416_v60, 0.0  ;;  %v417_v6 = vsel %vm397_vm1, %v392_v57, %v380_v56  ;;  %v393_v14 = vrot.slane %v2521_v63, 1  ;;  %2204 = vmatprep.subr.msk.bf16.mxu1 %vm651_vm0, %v2255_v47 }
  0x23   : > { %v2543_v15 = vsel %vm318_vm3, %v295_v59, %v307_v58  ;;  %v332_v17 = vsel %vm318_vm3, %v307_v58, %v295_v59  ;;  %v469_v18 = vpack.c.bf16 %v2497_v49, %v2494_v48  ;;  %v480_v20 = vpack.c.bf16 %v439_v3, %v404_v2  ;;  %v288_v58 = vld [vmem:[%s2397_s9 + $0xb8] sm:$0xff] }
  0x24   : > { %v2552_v19 = vsel %vm292_vm4, %v332_v17, 0.0  ;;  %v405_v22 = vsel %vm397_vm1, %v380_v56, %v392_v57  ;;  %v441_v23 = vsel %vm372_vm2, %v417_v6, 0.0  ;;  %v382_v25 = vrot.slane %v2534_v7, 1  ;;  %v287_v57 = vld [vmem:[%s2397_s9 + $0xb0] sm:$0xff] }
  0x25   : > { %540 = vrot.lane.b32.xlu0 %v477_v41, %s2316_s13  ;;  %506 = vrot.lane.b32.xlu1 %v466_v44, %s2315_s12  ;;  %v451_v24 = vpack.c.bf16 %v2543_v15, %v2552_v19  ;;  %v394_v26 = vrot.slane %v2537_v9, 1  ;;  %v418_v27 = vsel %vm397_vm1, %v393_v14, %v381_v10  ;;  %v481_v30 = vpack.c.bf16 %v441_v23, %v405_v22 }
  0x26   : > { %v470_v33 = vpack.c.bf16 %v2521_v63, %v2518_v62  ;;  %v406_v34 = vsel %vm397_vm1, %v381_v10, %v393_v14  ;;  %v443_v35 = vsel %vm372_vm2, %v418_v27, 0.0  ;;  %v383_v37 = vrot.slane %v285_v28, 1 }
  0x27   : > { %v419_v36 = vsel %vm397_vm1, %v394_v26, %v382_v25  ;;  %v395_v38 = vrot.slane %v286_v29, 1  ;;  %v471_v39 = vpack.c.bf16 %v2537_v9, %v2534_v7  ;;  %v407_v40 = vsel %vm397_vm1, %v382_v25, %v394_v26 }
  0x28   : > { %v304_v41 = vrot.slane %v285_v28, 7  ;;  %v316_v44 = vrot.slane %v286_v29, 7  ;;  %v482_v50 = vpack.c.bf16 %v443_v35, %v406_v34  ;;  %v445_v51 = vsel %vm372_vm2, %v419_v36, 0.0 }
  0x29   : > { %508 = vrot.lane.b32.xlu0 %v467_v52, %s2315_s12  ;;  %542 = vrot.lane.b32.xlu1 %v478_v53, %s2316_s13  ;;  %v306_v52 = vrot.slane %v266_v46, 7  ;;  %v294_v53 = vrot.slane %v265_v45, 7  ;;  %v420_v54 = vsel %vm397_vm1, %v395_v38, %v383_v37  ;;  %v385_v55 = vrot.slane %v266_v46, 1 }
  0x2a   : > { %v373_v56 = vrot.slane %v265_v45, 1  ;;  %v483_v59 = vpack.c.bf16 %v445_v51, %v407_v40  ;;  %v472_v60 = vpack.c.bf16 %v286_v29, %v285_v28  ;;  %v2603_v2 = vsel %vm318_vm3, %v304_v41, %v316_v44 }
  0x2b   : > { %v341_v3 = vsel %vm318_vm3, %v316_v44, %v304_v41  ;;  %v2609_v6 = vsel %vm318_vm3, %v294_v53, %v306_v52  ;;  %v384_v10 = vrot.slane %v287_v57, 1  ;;  %v396_v14 = vrot.slane %v288_v58, 1 }
  0x2c   : > { %v2613_v17 = vsel %vm292_vm4, %v341_v3, 0.0  ;;  %v776_v25 = vsel %vm651_vm0, %v2255_v47, 0  ;;  %v462_v26 = vpack.c.bf16 %v266_v46, %v265_v45  ;;  %v398_v29 = vsel %vm397_vm1, %v373_v56, %v385_v55 }
  0x2d   : > { %544 = vrot.lane.b32.xlu0 %v479_v61, %s2316_s13  ;;  %510 = vrot.lane.b32.xlu1 %v468_v0, %s2315_s12  ;;  %v408_v61 = vsel %vm397_vm1, %v383_v37, %v395_v38  ;;  %v447_v0 = vsel %vm372_vm2, %v420_v54, 0.0  ;;  %v460_v22 = vpack.c.bf16 %v2603_v2, %v2613_v17  ;;  %v473_v34 = vpack.c.bf16 %v288_v58, %v287_v57 }
  0x2e   : > { %2106 = vmatpush3.bf16.msra.mxu1 %v776_v25  ;;  %v484_v28 = vpack.c.bf16 %v447_v0, %v408_v61  ;;  %v409_v36 = vsel %vm397_vm1, %v384_v10, %v396_v14  ;;  %v317_v40 = vrot.slane %v288_v58, 7  ;;  %v296_v47 = vrot.slane %v2411_v8, 7 }
  0x2f   : > { %v297_v51 = vrot.slane %v2421_v12, 7  ;;  %v310_v12 = vrot.slane %v2441_v21, 7  ;;  %v299_v61 = vrot.slane %v2459_v31, 7 }
  0x31   : > { %512 = vrot.lane.b32.xlu0 %v469_v18, %s2315_s12  ;;  %546 = vrot.lane.b32.xlu1 %v480_v20, %s2316_s13  ;;  %v331_v18 = vsel %vm318_vm3, %v306_v52, %v294_v53  ;;  %v410_v20 = vsel %vm397_vm1, %v385_v55, %v373_v56  ;;  %v309_v52 = vrot.slane %v2424_v13, 7 }
  0x32   : > { %v2623_v23 = vsel %vm292_vm4, %v331_v18, 0.0 }
  0x33   : > { %v450_v27 = vpack.c.bf16 %v2609_v6, %v2623_v23  ;;  %v334_v8 = vsel %vm318_vm3, %v309_v52, %v297_v51  ;;  %v322_v58 = vsel %vm318_vm3, %v297_v51, %v309_v52  ;;  %v2256_v23 = vld [vmem:[%s3573_s3 + $0x8] sm:$0x3f]  }
  0x34   : > { %2206 = vmatprep.subr.msk.bf16.mxu1 %vm651_vm0, %v2256_v23 }
  0x35   : > { %548 = vrot.lane.b32.xlu0 %v481_v30, %s2316_s13  ;;  %514 = vrot.lane.b32.xlu1 %v470_v33, %s2315_s12  ;;  %v427_v30 = vsel %vm372_vm2, %v410_v20, 0.0  ;;  %v421_v33 = vsel %vm397_vm1, %v396_v14, %v384_v10 }
  0x36   : > { %v474_v35 = vpack.c.bf16 %v427_v30, %v398_v29  ;;  %v449_v37 = vsel %vm372_vm2, %v421_v33, 0.0  ;;  %v312_v29 = vrot.slane %v2482_v43, 7  ;;  %v301_v33 = vrot.slane %v2494_v48, 7 }
  0x37   : > { %v485_v38 = vpack.c.bf16 %v449_v37, %v409_v36 }
  0x39   : > { %516 = vrot.lane.b32.xlu0 %v471_v39, %s2315_s12  ;;  %550 = vrot.lane.b32.xlu1 %v482_v50, %s2316_s13  ;;  %v305_v39 = vrot.slane %v287_v57, 7  ;;  %v308_v50 = vrot.slane %v2417_v11, 7  ;;  %v298_v11 = vrot.slane %v2432_v16, 7  ;;  %v311_v16 = vrot.slane %v2462_v32, 7 }
  0x3a   : > { %v902_v32 = vsel %vm651_vm0, %v2402_v5, 0 }
  0x3b   : > { %v2647_v41 = vsel %vm318_vm3, %v305_v39, %v317_v40  ;;  %v342_v44 = vsel %vm318_vm3, %v317_v40, %v305_v39  ;;  %v333_v53 = vsel %vm318_vm3, %v308_v50, %v296_v47  ;;  %v321_v55 = vsel %vm318_vm3, %v296_v47, %v308_v50 }
  0x3c   : > { %v2653_v45 = vsel %vm292_vm4, %v342_v44, 0.0  ;;  %v351_v56 = vsel %vm292_vm4, %v333_v53, 0.0  ;;  %v336_v10 = vsel %vm318_vm3, %v311_v16, %v299_v61  ;;  %v323_v20 = vsel %vm318_vm3, %v298_v11, %v310_v12 }
  0x3d   : > { %552 = vrot.lane.b32.xlu0 %v483_v59, %s2316_s13  ;;  %518 = vrot.lane.b32.xlu1 %v472_v60, %s2315_s12  ;;  %v461_v46 = vpack.c.bf16 %v2647_v41, %v2653_v45  ;;  %v452_v57 = vpack.c.bf16 %v321_v55, %v351_v56  ;;  %v353_v59 = vsel %vm292_vm4, %v334_v8, 0.0  ;;  %v357_v5 = vsel %vm292_vm4, %v336_v10, 0.0 }
  0x3e   : > { %v453_v15 = vpack.c.bf16 %v322_v58, %v353_v59  ;;  %v302_v53 = vrot.slane %v2518_v62, 7  ;;  %v303_v56 = vrot.slane %v2534_v7, 7  ;;  %v315_v8 = vrot.slane %v2537_v9, 7 }
  0x40   : > { %v340_v62 = vsel %vm318_vm3, %v315_v8, %v303_v56 }
  0x41   : > { %498 = vrot.lane.b32.xlu0 %v462_v26, %s2315_s12  ;;  %554 = vrot.lane.b32.xlu1 %v484_v28, %s2316_s13  ;;  %v324_v26 = vsel %vm318_vm3, %v299_v61, %v311_v16  ;;  %v300_v28 = vrot.slane %v2479_v42, 7 }
  0x43   : > { %v337_v42 = vsel %vm318_vm3, %v312_v29, %v300_v28  ;;  %v325_v47 = vsel %vm318_vm3, %v300_v28, %v312_v29 }
  0x44   : > { %v359_v50 = vsel %vm292_vm4, %v337_v42, 0.0 }
  0x45   : > { %520 = vrot.lane.b32.xlu0 %v473_v34, %s2315_s12  ;;  %534 = vrot.lane.b32.xlu1 %v474_v35, %s2316_s13  ;;  %v313_v34 = vrot.slane %v2497_v49, 7 }
  0x47   : > { %v338_v43 = vsel %vm318_vm3, %v313_v34, %v301_v33  ;;  %v326_v51 = vsel %vm318_vm3, %v301_v33, %v313_v34 }
  0x48   : > { %v361_v52 = vsel %vm292_vm4, %v338_v43, 0.0 }
  0x49   : > { %556 = vrot.lane.b32.xlu1 %v485_v38, %s2316_s13  ;;  %v455_v38 = vpack.c.bf16 %v324_v26, %v357_v5 }
  0x8b   : > { %v501_v54 = vpop.permute.xlu0 %500 }
  0x8c   : > { %v564_v13 = vsel %vm3578_vm5, %v451_v24, %v501_v54  ;;  %v335_v24 = vsel %vm318_vm3, %v310_v12, %v298_v11  ;;  %v314_v54 = vrot.slane %v2521_v63, 7  ;;  %v456_v12 = vpack.c.bf16 %v325_v47, %v359_v50 }
  0x8d   : > { %v355_v25 = vsel %vm292_vm4, %v335_v24, 0.0 }
  0x8e   : > { %v454_v36 = vpack.c.bf16 %v323_v20, %v355_v25  ;;  %v339_v58 = vsel %vm318_vm3, %v314_v54, %v302_v53  ;;  %v327_v61 = vsel %vm318_vm3, %v302_v53, %v314_v54 }
  0x8f   : > { %v503_v60 = vpop.permute.xlu0 %502  ;;  %v537_v0 = vpop.permute.xlu1 %536  ;;  %v363_v16 = vsel %vm292_vm4, %v339_v58, 0.0 }
  0x90   : > { %v2682_v21 = vsel %vm3577_vm6, %v564_v13, %v537_v0  ;;  %v567_v19 = vsel %vm3578_vm5, %v452_v57, %v503_v60  ;;  %v457_v57 = vpack.c.bf16 %v326_v51, %v361_v52  ;;  %v328_v0 = vsel %vm318_vm3, %v303_v56, %v315_v8 }
  0x91   : > { %2085 = vmatprep.mubr.msk.bf16.mxu0 %vm3576_vm7, %v2682_v21  ;;  %v2838_v56 = vstv %s1988_s26 }
  0x92   : > { %vm1096_vm10 = vcmp.ge.s32.totalorder %v2838_v56, 0  ;;  %vm1106_vm11 = vcmp.lt.s32.totalorder %v2838_v56, 16 }
  0x93   : > { %v505_v3 = vpop.permute.xlu0 %504  ;;  %v539_v31 = vpop.permute.xlu1 %538 }
  0x94   : > { %v570_v14 = vsel %vm3578_vm5, %v453_v15, %v505_v3  ;;  %v2695_v18 = vsel %vm3577_vm6, %v567_v19, %v539_v31  ;;  %v365_v15 = vsel %vm292_vm4, %v340_v62, 0.0  ;;  %v458_v3 = vpack.c.bf16 %v327_v61, %v363_v16  ;;  %v2846_v62 = vld [vmem:[%s3572_s2] ss:$0 sm:$0xff] }
  0x95   : > { %2086 = vmatmul.mubr.msk.bf16.vlgmr.msra.gmra.mxu0 %vm3576_vm7, %v2695_v18  ;;  %v459_v31 = vpack.c.bf16 %v328_v0, %v365_v15  ;;  %v2852_v16 = vadd.s32 2, %v2838_v56 }
  0x96   : > { %2128 = vmatpush3.bf16.msra.mxu0 %v902_v32 }
  0x97   : > { %v541_v30 = vpop.permute.xlu0 %540  ;;  %v507_v37 = vpop.permute.xlu1 %506  ;;  %vm1098_vm15 = vcmp.ge.s32.totalorder %v2852_v16, 0 }
  0x98   : > { %v2712_v35 = vsel %vm3577_vm6, %v570_v14, %v541_v30  ;;  %v573_v48 = vsel %vm3578_vm5, %v454_v36, %v507_v37 }
  0x99   : > { %2089 = vmatprep.mubr.msk.bf16.mxu0 %vm3576_vm7, %v2712_v35 }
  0x9b   : > { %v509_v39 = vpop.permute.xlu0 %508  ;;  %v543_v40 = vpop.permute.xlu1 %542 }
  0x9c   : > { %v576_v49 = vsel %vm3578_vm5, %v455_v38, %v509_v39  ;;  %v605_v44 = vsel %vm3577_vm6, %v573_v48, %v543_v40 }
  0x9d   : > { %2090 = vmatmul.mubr.msk.bf16.gmra.mxu0 %vm3576_vm7, %v605_v44 }
  0x9f   : > { %v545_v55 = vpop.permute.xlu0 %544  ;;  %v511_v13 = vpop.permute.xlu1 %510 }
  0xa0   : > { %v607_v11 = vsel %vm3577_vm6, %v576_v49, %v545_v55  ;;  %v579_v63 = vsel %vm3578_vm5, %v456_v12, %v511_v13 }
  0xa1   : > { %2093 = vmatprep.mubr.msk.bf16.mxu0 %vm3576_vm7, %v607_v11 }
  0xa3   : > { %v513_v59 = vpop.permute.xlu0 %512  ;;  %v547_v60 = vpop.permute.xlu1 %546 }
  0xa4   : > { %v582_v7 = vsel %vm3578_vm5, %v457_v57, %v513_v59  ;;  %v609_v9 = vsel %vm3577_vm6, %v579_v63, %v547_v60  ;;  %v1087_v57 = vadd.s32 1, %v2838_v56 }
  0xa5   : > { %2094 = vmatmul.mubr.msk.bf16.gmra.mxu0 %vm3576_vm7, %v609_v9 }
  0xa6   : > { %vm1097_vm8 = vcmp.ge.s32.totalorder %v1087_v57, 0  ;;  %vm1107_vm9 = vcmp.lt.s32.totalorder %v1087_v57, 16 }
  0xa7   : > { %v549_v19 = vpop.permute.xlu0 %548  ;;  %v515_v10 = vpop.permute.xlu1 %514  ;;  %vm2859_vm13 = vmand %vm1097_vm8, %vm1107_vm9  ;;  %vm1108_vm8 = vcmp.lt.s32.totalorder %v2852_v16, 16 }
  0xa8   : > { %v611_v24 = vsel %vm3577_vm6, %v582_v7, %v549_v19  ;;  %v585_v14 = vsel %vm3578_vm5, %v458_v3, %v515_v10  ;;  %v2849_v7 = vadd.s32 3, %v2838_v56 }
  0xa9   : > { %2097 = vmatprep.mubr.msk.bf16.mxu0 %vm3576_vm7, %v611_v24 }
  0xaa   : > { %vm1099_vm12 = vcmp.ge.s32.totalorder %v2849_v7, 0  ;;  %vm1109_vm14 = vcmp.lt.s32.totalorder %v2849_v7, 16 }
  0xab   : > { %v517_v32 = vpop.permute.xlu0 %516  ;;  %v551_v20 = vpop.permute.xlu1 %550 }
  0xac   : > { %v588_v25 = vsel %vm3578_vm5, %v459_v31, %v517_v32  ;;  %v613_v26 = vsel %vm3577_vm6, %v585_v14, %v551_v20 }
  0xad   : > { %2098 = vmatmul.mubr.msk.bf16.gmra.mxu0 %vm3576_vm7, %v613_v26 }
  0xaf   : > { %v553_v5 = vpop.permute.xlu0 %552  ;;  %v519_v29 = vpop.permute.xlu1 %518 }
  0xb0   : > { %v615_v28 = vsel %vm3577_vm6, %v588_v25, %v553_v5  ;;  %v591_v33 = vsel %vm3578_vm5, %v460_v22, %v519_v29 }
  0xb1   : > { %2101 = vmatprep.mubr.msk.bf16.mxu0 %vm3576_vm7, %v615_v28 }
  0xb3   : > { %v499_v30 = vpop.permute.xlu0 %498  ;;  %v555_v34 = vpop.permute.xlu1 %554 }
  0xb4   : > { %v617_v36 = vsel %vm3577_vm6, %v591_v33, %v555_v34  ;;  %v561_v37 = vsel %vm3578_vm5, %v450_v27, %v499_v30  ;;  %v1453_v27 = vsel %vm651_vm0, %v2256_v23, 0  ;;  %v2873_v34 = vadd.s32 5, %v2838_v56 }
  0xb5   : > { %2102 = vmatmul.mubr.msk.bf16.gmra.mxu0 %vm3576_vm7, %v617_v36  ;;  %v2884_v23 = vadd.s32 6, %v2838_v56 }
  0xb6   : > { %2129 = vmatprep.mubr.msk.bf16.mxu0 %vm3576_vm7, %v2695_v18  ;;  %vm1101_vm9 = vcmp.ge.s32.totalorder %v2873_v34, 0 }
  0xb7   : > { %v535_v38 = vpop.permute.xlu1 %534  ;;  %v521_v2 = vpop.permute.xlu0 %520 }
  0xb8   : > { %v597_v42 = vsel %vm3577_vm6, %v561_v37, %v535_v38  ;;  %v594_v6 = vsel %vm3578_vm5, %v461_v46, %v521_v2  ;;  %v2877_v38 = vadd.s32 4, %v2838_v56  ;;  %vm2942_vm5 = vmand %vm1098_vm15, %vm1108_vm8  ;;  %vm1112_vm15 = vcmp.lt.s32.totalorder %v2884_v23, 16 }
  0xb9   : > { %2107 = vmatprep.mubr.msk.bf16.mxu1 %vm3576_vm7, %v597_v42  ;;  %v2880_v42 = vadd.s32 7, %v2838_v56 }
  0xba   : > { %2108 = vmatmul.mubr.msk.bf16.vlgmr.msra.gmra.mxu1 %vm3576_vm7, %v2682_v21 }
  0xbb   : > { %2111 = vmatprep.mubr.msk.bf16.mxu1 %vm3576_vm7, %v2695_v18  ;;  %v557_v17 = vpop.permute.xlu1 %556  ;;  %2150 = vmatpush3.bf16.msra.mxu1 %v1453_v27 }
  0xbc   : > { %v619_v22 = vsel %vm3577_vm6, %v594_v6, %v557_v17  ;;  %vm2928_vm6 = vmand %vm1099_vm12, %vm1109_vm14  ;;  %vm1113_vm12 = vcmp.lt.s32.totalorder %v2880_v42, 16  ;;  %vm1102_vm14 = vcmp.ge.s32.totalorder %v2884_v23, 0 }
  0xbd   : > { %2130 = vmatmul.mubr.msk.bf16.vlgmr.msra.gmra.mxu0 %vm3576_vm7, %v2712_v35 }
  0xbe   : > { %2133 = vmatprep.mubr.msk.bf16.mxu0 %vm3576_vm7, %v605_v44 }
  0xc2   : > { %2112 = vmatmul.mubr.msk.bf16.gmra.mxu1 %vm3576_vm7, %v2712_v35 }
  0xc3   : > { %2115 = vmatprep.mubr.msk.bf16.mxu1 %vm3576_vm7, %v605_v44 }
  0xc5   : > { %2134 = vmatmul.mubr.msk.bf16.gmra.mxu0 %vm3576_vm7, %v607_v11 }
  0xc6   : > { %2137 = vmatprep.mubr.msk.bf16.mxu0 %vm3576_vm7, %v609_v9 }
  0xca   : > { %2116 = vmatmul.mubr.msk.bf16.gmra.mxu1 %vm3576_vm7, %v607_v11 }
  0xcb   : > { %2119 = vmatprep.mubr.msk.bf16.mxu1 %vm3576_vm7, %v609_v9 }
  0xcd   : > { %2138 = vmatmul.mubr.msk.bf16.gmra.mxu0 %vm3576_vm7, %v611_v24 }
  0xce   : > { %2141 = vmatprep.mubr.msk.bf16.mxu0 %vm3576_vm7, %v613_v26 }
  0xd2   : > { %2120 = vmatmul.mubr.msk.bf16.gmra.mxu1 %vm3576_vm7, %v611_v24 }
  0xd3   : > { %2123 = vmatprep.mubr.msk.bf16.mxu1 %vm3576_vm7, %v613_v26 }
  0xd5   : > { %2142 = vmatmul.mubr.msk.bf16.gmra.mxu0 %vm3576_vm7, %v615_v28 }
  0xd6   : > { %2145 = vmatprep.mubr.msk.bf16.mxu0 %vm3576_vm7, %v617_v36 }
  0xda   : > { %2124 = vmatmul.mubr.msk.bf16.gmra.mxu1 %vm3576_vm7, %v615_v28 }
  0xdd   : > { %2146 = vmatmul.mubr.msk.bf16.gmra.mxu0 %vm3576_vm7, %v619_v22  ;;  %vm2867_vm7 = vmand %vm1096_vm10, %vm1106_vm11  ;;  %vm1111_vm10 = vcmp.lt.s32.totalorder %v2873_v34, 16  ;;  %vm1100_vm11 = vcmp.ge.s32.totalorder %v2877_v38, 0 }
 0x155   : > { %v2087_v21 = vpop.f32.mrf.mxu0 }
 0x157   : > { %v689_v41 = vpop.f32.mrf.mxu0 }
 0x159   : > { %v2088_v45 = vpop.f32.mrf.mxu0 }
 0x15b   : > { %v692_v46 = vpop.f32.mrf.mxu0 }
 0x15d   : > { %v2091_v18 = vpop.f32.mrf.mxu0 }
 0x15f   : > { %v705_v35 = vpop.f32.mrf.mxu0 }
 0x161   : > { %v2808_v39 = vpop.f32.mrf.mxu0 }
 0x163   : > { %v2810_v43 = vpop.f32.mrf.mxu0 }
 0x165   : > { %v2812_v48 = vpop.f32.mrf.mxu0 }
 0x167   : > { %v2814_v40 = vpop.f32.mrf.mxu0 }
 0x169   : > { %v2816_v49 = vpop.f32.mrf.mxu0 }
 0x16b   : > { %v2818_v44 = vpop.f32.mrf.mxu0 }
 0x16d   : > { %v2820_v47 = vpop.f32.mrf.mxu0 }
 0x16f   : > { %v2822_v50 = vpop.f32.mrf.mxu0 }
 0x171   : > { %v2824_v51 = vpop.f32.mrf.mxu0 }
 0x173   : > { %v2826_v52 = vpop.f32.mrf.mxu0 }
 0x175   : > { %v2831_v53 = vpop.f32.mrf.mxu0 }
 0x177   : > { %v2834_v54 = vpop.f32.mrf.mxu0 }
 0x179   : > { %v2836_v55 = vpop.f32.mrf.mxu0 }
 0x17a   : > { %v2109_v8 = vpop.f32.mrf.mxu1 }
 0x17b   : > { %v821_v11 = vadd.f32 %v2109_v8, %v2087_v21  ;;  %v2840_v12 = vpop.f32.mrf.mxu0 }
 0x17c   : > { %v812_v13 = vpop.f32.mrf.mxu1 }
 0x17d   : > { %v813_v58 = vadd.f32 %v812_v13, %v689_v41  ;;  %v2131_v59 = vpop.f32.mrf.mxu0 }
 0x17e   : > { %v1019_v63 = vadd.f32 %v2131_v59, %v821_v11  ;;  %v2110_v60 = vpop.f32.mrf.mxu1 }
 0x17f   : > { %v824_v9 = vadd.f32 %v2110_v60, %v2088_v45  ;;  %v938_v61 = vpop.f32.mrf.mxu0 }
 0x180   : > { %v1046_v0 = vadd.f32 %v2846_v62, %v1019_v63  ;;  %v1017_v15 = vadd.f32 %v938_v61, %v813_v58  ;;  %v815_v19 = vpop.f32.mrf.mxu1  ;;  %v2912_v63 = vadd.s32 8, %v2838_v56 }
 0x181   : > { %v816_v24 = vadd.f32 %v815_v19, %v692_v46  ;;  %v2132_v3 = vpop.f32.mrf.mxu0  ;;  %v2896_v46 = vadd.s32 9, %v2838_v56 }
 0x182   : > { %v1044_v10 = vadd.f32 %v2846_v62, %v1017_v15  ;;  %v1020_v31 = vadd.f32 %v2132_v3, %v824_v9  ;;  %v2113_v32 = vpop.f32.mrf.mxu1  ;;  %v1066_v14 = vmax.f32 %v1046_v0, 0.0 }
 0x183   : > { %v837_v25 = vadd.f32 %v2113_v32, %v2091_v18  ;;  %v941_v26 = vpop.f32.mrf.mxu0  ;;  %vm1105_vm8 = vcmp.ge.s32.totalorder %v2896_v46, 0 }
 0x184   : > { %v1064_v5 = vmax.f32 %v1044_v10, 0.0  ;;  %v1047_v29 = vadd.f32 %v2846_v62, %v1020_v31  ;;  %v1018_v30 = vadd.f32 %v941_v26, %v816_v24  ;;  %v828_v33 = vpop.f32.mrf.mxu1  ;;  %v2888_v27 = vsel %vm2859_vm13, %v1066_v14, 0.0 }
 0x185   : > { %v829_v36 = vadd.f32 %v828_v33, %v705_v35  ;;  %v2135_v37 = vpop.f32.mrf.mxu0  ;;  %v1167_v60 = vrot.slane %v2888_v27, 7  ;;  %v1227_v19 = vrot.slane %v2888_v27, 1 }
 0x186   : > { %v1067_v2 = vmax.f32 %v1047_v29, 0.0  ;;  %v1045_v6 = vadd.f32 %v2846_v62, %v1018_v30  ;;  %v1023_v17 = vadd.f32 %v2135_v37, %v837_v25  ;;  %v2114_v22 = vpop.f32.mrf.mxu1  ;;  %v2892_v21 = vsel %vm2867_vm7, %v1064_v5, 0.0 }
 0x187   : > { %v840_v41 = vadd.f32 %v2114_v22, %v2808_v39  ;;  %v954_v45 = vpop.f32.mrf.mxu0  ;;  %v1166_v24 = vrot.slane %v2892_v21, 7  ;;  %v1226_v3 = vrot.slane %v2892_v21, 1 }
 0x188   : > { %v2900_v18 = vsel %vm2859_vm13, %v1067_v2, 0.0  ;;  %v1065_v35 = vmax.f32 %v1045_v6, 0.0  ;;  %v1050_v8 = vadd.f32 %v2846_v62, %v1023_v17  ;;  %v1021_v11 = vadd.f32 %v954_v45, %v829_v36  ;;  %v831_v13 = vpop.f32.mrf.mxu1 }
 0x189   : > { %v1237_v57 = vrot.slane %v2900_v18, 1  ;;  %v832_v39 = vadd.f32 %v831_v13, %v2810_v43  ;;  %v2136_v58 = vpop.f32.mrf.mxu0  ;;  %v1297_v59 = vpack.c.bf16 %v2900_v18, %v2888_v27  ;;  %vm1110_vm13 = vcmp.lt.s32.totalorder %v2877_v38, 16  ;;  %v2919_v43 = vld [vmem:[%s3573_s3 + $0x10] sm:$0x3f]  }
 0x18a   : > { %v1070_v9 = vmax.f32 %v1050_v8, 0.0  ;;  %v1048_v61 = vadd.f32 %v2846_v62, %v1021_v11  ;;  %v1024_v0 = vadd.f32 %v2136_v58, %v840_v41  ;;  %v2117_v15 = vpop.f32.mrf.mxu1  ;;  %v2936_v32 = vsel %vm2867_vm7, %v1065_v35, 0.0  ;;  %2208 = vmatprep.subr.msk.bf16.mxu0 %vm651_vm0, %v2919_v43 }
 0x18b   : > { %v853_v10 = vadd.f32 %v2117_v15, %v2812_v48  ;;  %v957_v31 = vpop.f32.mrf.mxu0  ;;  %1328 = vrot.lane.b32.xlu0 %v1297_v59, %s2315_s12  ;;  %v1177_v26 = vrot.slane %v2900_v18, 7  ;;  %v1247_v29 = vsel %vm397_vm1, %v1227_v19, %v1237_v57  ;;  %v1257_v16 = vsel %vm397_vm1, %v1237_v57, %v1227_v19 }
 0x18c   : > { %v1068_v14 = vmax.f32 %v1048_v61, 0.0  ;;  %v1051_v20 = vadd.f32 %v2846_v62, %v1024_v0  ;;  %v1022_v25 = vadd.f32 %v957_v31, %v832_v39  ;;  %v844_v48 = vpop.f32.mrf.mxu1  ;;  %v2957_v30 = vsel %vm2928_vm6, %v1070_v9, 0.0 }
 0x18d   : > { %v845_v5 = vadd.f32 %v844_v48, %v2814_v40  ;;  %v2139_v28 = vpop.f32.mrf.mxu0  ;;  %v1176_v6 = vrot.slane %v2936_v32, 7  ;;  %v1269_v41 = vsel %vm372_vm2, %v1257_v16, 0.0  ;;  %vm1103_vm7 = vcmp.ge.s32.totalorder %v2880_v42, 0 }
 0x18e   : > { %v1071_v33 = vmax.f32 %v1051_v20, 0.0  ;;  %v1049_v36 = vadd.f32 %v2846_v62, %v1022_v25  ;;  %v1027_v37 = vadd.f32 %v2139_v28, %v853_v10  ;;  %v2118_v2 = vpop.f32.mrf.mxu1  ;;  %v2963_v40 = vsel %vm2942_vm5, %v1068_v14, 0.0  ;;  %v3000_v20 = vld [vmem:[%s3573_s3] sm:$0x3f]  }
 0x18f   : > { %v856_v17 = vadd.f32 %v2118_v2, %v2816_v49  ;;  %v970_v22 = vpop.f32.mrf.mxu0  ;;  %v1236_v57 = vrot.slane %v2936_v32, 1  ;;  %v1169_v49 = vrot.slane %v2957_v30, 7  ;;  %v1307_v39 = vpack.c.bf16 %v1269_v41, %v1247_v29  ;;  %2207 = vmatprep.subr.msk.bf16.mxu1 %vm651_vm0, %v3000_v20 }
 0x190   : > { %v2972_v45 = vsel %vm2928_vm6, %v1071_v33, 0.0  ;;  %v1069_v35 = vmax.f32 %v1049_v36, 0.0  ;;  %v1054_v8 = vadd.f32 %v2846_v62, %v1027_v37  ;;  %v1025_v11 = vadd.f32 %v970_v22, %v845_v5  ;;  %v847_v13 = vpop.f32.mrf.mxu1  ;;  %vm2989_vm6 = vmand %vm1101_vm9, %vm1111_vm10 }
 0x191   : > { %v848_v58 = vadd.f32 %v847_v13, %v2818_v44  ;;  %v2140_v59 = vpop.f32.mrf.mxu0  ;;  %v1229_v56 = vrot.slane %v2957_v30, 1  ;;  %v1168_v10 = vrot.slane %v2963_v40, 7  ;;  %1358 = vrot.lane.b32.xlu0 %v1307_v39, %s2316_s13  ;;  %v1299_v7 = vpack.c.bf16 %v2972_v45, %v2957_v30  ;;  %vm3052_vm10 = vmand %vm1103_vm7, %vm1113_vm12 }
 0x192   : > { %v2980_v9 = vsel %vm2942_vm5, %v1069_v35, 0.0  ;;  %v1074_v61 = vmax.f32 %v1054_v8, 0.0  ;;  %v1052_v0 = vadd.f32 %v2846_v62, %v1025_v11  ;;  %v1028_v15 = vadd.f32 %v2140_v59, %v856_v17  ;;  %v2121_v19 = vpop.f32.mrf.mxu1  ;;  %vm3007_vm5 = vmand %vm1100_vm11, %vm1110_vm13 }
 0x193   : > { %v869_v31 = vadd.f32 %v2121_v19, %v2820_v47  ;;  %v973_v14 = vpop.f32.mrf.mxu0  ;;  %v1239_v25 = vrot.slane %v2972_v45, 1  ;;  %v1228_v29 = vrot.slane %v2963_v40, 1  ;;  %v1179_v16 = vrot.slane %v2972_v45, 7  ;;  %vm3089_vm7 = vmand %vm1102_vm14, %vm1112_vm15 }
 0x194   : > { %v1072_v34 = vmax.f32 %v1052_v0, 0.0  ;;  %v1055_v47 = vadd.f32 %v2846_v62, %v1028_v15  ;;  %v1026_v5 = vadd.f32 %v973_v14, %v848_v58  ;;  %v860_v28 = vpop.f32.mrf.mxu1  ;;  %v1298_v38 = vpack.c.bf16 %v2980_v9, %v2963_v40 }
 0x195   : > { %v861_v33 = vadd.f32 %v860_v28, %v2822_v50  ;;  %v2143_v36 = vpop.f32.mrf.mxu0  ;;  %v3023_v37 = vsel %vm2989_vm6, %v1074_v61, 0.0  ;;  %v1178_v35 = vrot.slane %v2980_v9, 7  ;;  %v1238_v50 = vrot.slane %v2980_v9, 1  ;;  %1332 = vrot.lane.b32.xlu0 %v1299_v7, %s2315_s12 }
 0x196   : > { %v1075_v2 = vmax.f32 %v1055_v47, 0.0  ;;  %v1053_v17 = vadd.f32 %v2846_v62, %v1026_v5  ;;  %v1031_v22 = vadd.f32 %v2143_v36, %v869_v31  ;;  %v2122_v41 = vpop.f32.mrf.mxu1  ;;  %v3030_v8 = vsel %vm3007_vm5, %v1072_v34, 0.0  ;;  %1330 = vrot.lane.b32.xlu1 %v1298_v38, %s2315_s12 }
 0x197   : > { %v872_v11 = vadd.f32 %v2122_v41, %v2824_v51  ;;  %v986_v13 = vpop.f32.mrf.mxu0  ;;  %v1249_v61 = vsel %vm397_vm1, %v1229_v56, %v1239_v25  ;;  %v1171_v15 = vrot.slane %v3023_v37, 7  ;;  %v1231_v19 = vrot.slane %v3023_v37, 1 }
 0x198   : > { %v1073_v39 = vmax.f32 %v1053_v17, 0.0  ;;  %v1058_v58 = vadd.f32 %v2846_v62, %v1031_v22  ;;  %v1029_v59 = vadd.f32 %v986_v13, %v861_v33  ;;  %v863_v0 = vpop.f32.mrf.mxu1  ;;  %v3042_v31 = vsel %vm2989_vm6, %v1075_v2, 0.0 }
 0x199   : > { %v1259_v51 = vsel %vm397_vm1, %v1239_v25, %v1229_v56  ;;  %v2144_v14 = vpop.f32.mrf.mxu0  ;;  %vm1115_vm9 = vcmp.lt.s32.totalorder %v2896_v46, 16  ;;  %v864_v56 = vadd.f32 %v863_v0, %v2826_v52  ;;  %v1170_v5 = vrot.slane %v3030_v8, 7 }
 0x19a   : > { %v1078_v7 = vmax.f32 %v1058_v58, 0.0  ;;  %v1056_v44 = vadd.f32 %v2846_v62, %v1029_v59  ;;  %v1273_v47 = vsel %vm372_vm2, %v1259_v51, 0.0  ;;  %v2125_v25 = vpop.f32.mrf.mxu1  ;;  %v1230_v28 = vrot.slane %v3030_v8, 1  ;;  %vm3128_vm12 = vmand %vm1105_vm8, %vm1115_vm9 }
 0x19b   : > { %v1309_v33 = vpack.c.bf16 %v1273_v47, %v1249_v61  ;;  %v1032_v36 = vadd.f32 %v2144_v14, %v872_v11  ;;  %v989_v38 = vpop.f32.mrf.mxu0  ;;  %v1181_v42 = vrot.slane %v3042_v31, 7  ;;  %v3065_v2 = vsel %vm3007_vm5, %v1073_v39, 0.0 }
 0x19c   : > { %v1248_v17 = vsel %vm397_vm1, %v1228_v29, %v1238_v50  ;;  %v1258_v52 = vsel %vm397_vm1, %v1238_v50, %v1228_v29  ;;  %v876_v22 = vpop.f32.mrf.mxu1  ;;  %vm1104_vm11 = vcmp.ge.s32.totalorder %v2912_v63, 0  ;;  %vm1114_vm13 = vcmp.lt.s32.totalorder %v2912_v63, 16 }
 0x19d   : > { %v1241_v41 = vrot.slane %v3042_v31, 1  ;;  %v3076_v11 = vsel %vm3052_vm10, %v1078_v7, 0.0  ;;  %1362 = vrot.lane.b32.xlu0 %v1309_v33, %s2316_s13  ;;  %v1059_v48 = vadd.f32 %v2846_v62, %v1032_v36  ;;  %v1271_v13 = vsel %vm372_vm2, %v1258_v52, 0.0  ;;  %v2147_v39 = vpop.f32.mrf.mxu0  ;;  %vm3153_vm6 = vmand %vm1104_vm11, %vm1114_vm13 }
 0x19e   : > { %v1076_v29 = vmax.f32 %v1056_v44, 0.0  ;;  %v1308_v50 = vpack.c.bf16 %v1271_v13, %v1248_v17  ;;  %v885_v58 = vadd.f32 %v2125_v25, %v2831_v53  ;;  %v1030_v59 = vadd.f32 %v989_v38, %v864_v56  ;;  %v2126_v61 = vpop.f32.mrf.mxu1 }
 0x19f   : > { %v1180_v0 = vrot.slane %v3065_v2, 7  ;;  %v1240_v51 = vrot.slane %v3065_v2, 1  ;;  %v1079_v7 = vmax.f32 %v1059_v48, 0.0  ;;  %v1301_v44 = vpack.c.bf16 %v3042_v31, %v3023_v37  ;;  %v1002_v47 = vpop.f32.mrf.mxu0 }
 0x1a0   : > { %1360 = vrot.lane.b32.xlu1 %v1308_v50, %s2316_s13  ;;  %v1057_v53 = vadd.f32 %v2846_v62, %v1030_v59  ;;  %v877_v56 = vadd.f32 %v876_v22, %v2834_v54  ;;  %v1035_v25 = vadd.f32 %v2147_v39, %v885_v58  ;;  %v1300_v33 = vpack.c.bf16 %v3065_v2, %v3030_v8  ;;  %v879_v23 = vpop.f32.mrf.mxu1 }
 0x1a1   : > { %v1173_v36 = vrot.slane %v3076_v11, 7  ;;  %1336 = vrot.lane.b32.xlu0 %v1301_v44, %s2315_s12  ;;  %v888_v38 = vadd.f32 %v2126_v61, %v2836_v55  ;;  %v1251_v17 = vsel %vm397_vm1, %v1231_v19, %v1241_v41  ;;  %v1261_v52 = vsel %vm397_vm1, %v1241_v41, %v1231_v19  ;;  %v2148_v48 = vpop.f32.mrf.mxu0 }
 0x1a2   : > { %v3109_v54 = vsel %vm3089_vm7, %v1076_v29, 0.0  ;;  %v3113_v22 = vsel %vm3052_vm10, %v1079_v7, 0.0  ;;  %v1077_v13 = vmax.f32 %v1057_v53, 0.0  ;;  %v1062_v39 = vadd.f32 %v2846_v62, %v1035_v25 }
 0x1a3   : > { %v1033_v50 = vadd.f32 %v1002_v47, %v877_v56  ;;  %v1277_v55 = vsel %vm372_vm2, %v1261_v52, 0.0  ;;  %v880_v58 = vadd.f32 %v879_v23, %v2840_v12  ;;  %v1036_v59 = vadd.f32 %v2148_v48, %v888_v38  ;;  %v1005_v19 = vpop.f32.mrf.mxu0 }
 0x1a4   : > { %v1233_v41 = vrot.slane %v3076_v11, 1  ;;  %v3122_v29 = vsel %vm3089_vm7, %v1077_v13, 0.0  ;;  %v1082_v34 = vmax.f32 %v1062_v39, 0.0  ;;  %1334 = vrot.lane.b32.xlu1 %v1300_v33, %s2315_s12  ;;  %v1311_v12 = vpack.c.bf16 %v1277_v55, %v1251_v17 }
 0x1a5   : > { %v1172_v7 = vrot.slane %v3109_v54, 7  ;;  %v1243_v44 = vrot.slane %v3113_v22, 1  ;;  %v1060_v14 = vadd.f32 %v2846_v62, %v1033_v50  ;;  %v1063_v47 = vadd.f32 %v2846_v62, %v1036_v59 }
 0x1a6   : > { %1366 = vrot.lane.b32.xlu0 %v1311_v12, %s2316_s13  ;;  %v1250_v46 = vsel %vm397_vm1, %v1230_v28, %v1240_v51  ;;  %v1260_v53 = vsel %vm397_vm1, %v1240_v51, %v1230_v28  ;;  %v1034_v56 = vadd.f32 %v1005_v19, %v880_v58  ;;  %v1303_v25 = vpack.c.bf16 %v3113_v22, %v3076_v11 }
 0x1a7   : > { %v1242_v33 = vrot.slane %v3122_v29, 1  ;;  %v3147_v23 = vsel %vm3128_vm12, %v1082_v34, 0.0  ;;  %v1080_v38 = vmax.f32 %v1060_v14, 0.0  ;;  %v1083_v28 = vmax.f32 %v1063_v47, 0.0 }
 0x1a8   : > { %v1232_v51 = vrot.slane %v3109_v54, 1  ;;  %v1183_v52 = vrot.slane %v3113_v22, 7  ;;  %v1275_v48 = vsel %vm372_vm2, %v1260_v53, 0.0  ;;  %v1061_v13 = vadd.f32 %v2846_v62, %v1034_v56 }
 0x1a9   : > { %v1182_v39 = vrot.slane %v3122_v29, 7  ;;  %v1310_v50 = vpack.c.bf16 %v1275_v48, %v1250_v46  ;;  %v1253_v63 = vsel %vm397_vm1, %v1233_v41, %v1243_v44  ;;  %v1263_v55 = vsel %vm397_vm1, %v1243_v44, %v1233_v41 }
 0x1aa   : > { %v1175_v58 = vrot.slane %v3147_v23, 7  ;;  %v1235_v59 = vrot.slane %v3147_v23, 1  ;;  %v3171_v19 = vsel %vm3153_vm6, %v1080_v38, 0.0  ;;  %1340 = vrot.lane.b32.xlu0 %v1303_v25, %s2315_s12  ;;  %v1302_v62 = vpack.c.bf16 %v3122_v29, %v3109_v54 }
 0x1ab   : > { %v3178_v34 = vsel %vm3128_vm12, %v1083_v28, 0.0  ;;  %1364 = vrot.lane.b32.xlu1 %v1310_v50, %s2316_s13  ;;  %v1081_v41 = vmax.f32 %v1061_v13, 0.0  ;;  %v1281_v12 = vsel %vm372_vm2, %v1263_v55, 0.0  ;;  %v1262_v44 = vsel %vm397_vm1, %v1242_v33, %v1232_v51 }
 0x1ac   : > { %v1313_v14 = vpack.c.bf16 %v1281_v12, %v1253_v63  ;;  %v1252_v47 = vsel %vm397_vm1, %v1232_v51, %v1242_v33  ;;  %v1279_v46 = vsel %vm372_vm2, %v1262_v44, 0.0  ;;  %v1296_v61 = vpack.c.bf16 %v2936_v32, %v2892_v21 }
 0x1ad   : > { %v1174_v53 = vrot.slane %v3171_v19, 7  ;;  %v1163_v56 = vsel %vm3153_vm6, %v1081_v41, 0.0  ;;  %v3200_v25 = vsel %vm397_vm1, %v1226_v3, %v1236_v57  ;;  %v1256_v33 = vsel %vm397_vm1, %v1236_v57, %v1226_v3 }
 0x1ae   : > { %v1234_v38 = vrot.slane %v3171_v19, 1  ;;  %v1185_v17 = vrot.slane %v3178_v34, 7  ;;  %v1244_v28 = vrot.slane %v1163_v56, 1  ;;  %1370 = vrot.lane.b32.xlu0 %v1313_v14, %s2316_s13  ;;  %v1267_v51 = vsel %vm372_vm2, %v1256_v33, 0.0 }
 0x1af   : > { %v1245_v48 = vrot.slane %v3178_v34, 1  ;;  %1338 = vrot.lane.b32.xlu1 %v1302_v62, %s2315_s12  ;;  %v1312_v13 = vpack.c.bf16 %v1279_v46, %v1252_v47  ;;  %v1306_v50 = vpack.c.bf16 %v1267_v51, %v3200_v25  ;;  %v3222_v3 = vsel %vm318_vm3, %v1167_v60, %v1177_v26 }
 0x1b0   : > { %v1184_v57 = vrot.slane %v1163_v56, 7  ;;  %v1305_v63 = vpack.c.bf16 %v3178_v34, %v3147_v23  ;;  %v1264_v55 = vsel %vm397_vm1, %v1244_v28, %v1234_v38  ;;  %v1197_v62 = vsel %vm318_vm3, %v1177_v26, %v1167_v60 }
 0x1b1   : > { %v1254_v41 = vsel %vm397_vm1, %v1234_v38, %v1244_v28  ;;  %v1283_v12 = vsel %vm372_vm2, %v1264_v55, 0.0  ;;  %v1208_v44 = vsel %vm292_vm4, %v1197_v62, 0.0  ;;  %v3246_v27 = vsel %vm318_vm3, %v1169_v49, %v1179_v16 }
 0x1b2   : > { %1326 = vrot.lane.b32.xlu0 %v1296_v61, %s2315_s12  ;;  %v1304_v18 = vpack.c.bf16 %v1163_v56, %v3171_v19  ;;  %v1287_v60 = vpack.c.bf16 %v3222_v3, %v1208_v44  ;;  %v1199_v26 = vsel %vm318_vm3, %v1179_v16, %v1169_v49  ;;  %v1670_v34 = vsel %vm651_vm0, %v2919_v43, 0 }
 0x1b3   : > { %1368 = vrot.lane.b32.xlu1 %v1312_v13, %s2316_s13  ;;  %v1212_v14 = vsel %vm292_vm4, %v1199_v26, 0.0  ;;  %2186 = vmatpush3.bf16.msra.mxu0 %v1670_v34  ;;  %v1188_v30 = vsel %vm318_vm3, %v1168_v10, %v1178_v35  ;;  %v1198_v43 = vsel %vm318_vm3, %v1178_v35, %v1168_v10  ;;  %v3280_v45 = vsel %vm318_vm3, %v1171_v15, %v1181_v42 }
 0x1b4   : > { %v1314_v49 = vpack.c.bf16 %v1283_v12, %v1254_v41  ;;  %v1289_v16 = vpack.c.bf16 %v3246_v27, %v1212_v14  ;;  %v1210_v19 = vsel %vm292_vm4, %v1198_v43, 0.0  ;;  %v1201_v40 = vsel %vm318_vm3, %v1181_v42, %v1171_v15 }
 0x1b5   : > { %v1288_v9 = vpack.c.bf16 %v1188_v30, %v1210_v19  ;;  %v1216_v10 = vsel %vm292_vm4, %v1201_v40, 0.0  ;;  %v1190_v35 = vsel %vm318_vm3, %v1170_v5, %v1180_v0  ;;  %v1200_v37 = vsel %vm318_vm3, %v1180_v0, %v1170_v5 }
 0x1b6   : > { %1344 = vrot.lane.b32.xlu0 %v1305_v63, %s2315_s12  ;;  %v1291_v15 = vpack.c.bf16 %v3280_v45, %v1216_v10  ;;  %v1214_v31 = vsel %vm292_vm4, %v1200_v37, 0.0  ;;  %v3315_v42 = vsel %vm318_vm3, %v1173_v36, %v1183_v52  ;;  %v1203_v8 = vsel %vm318_vm3, %v1183_v52, %v1173_v36 }
 0x1b7   : > { %1342 = vrot.lane.b32.xlu1 %v1304_v18, %s2315_s12  ;;  %v1290_v5 = vpack.c.bf16 %v1190_v35, %v1214_v31  ;;  %v3326_v2 = vsel %vm292_vm4, %v1203_v8, 0.0  ;;  %v1192_v0 = vsel %vm318_vm3, %v1172_v7, %v1182_v39  ;;  %v1202_v11 = vsel %vm318_vm3, %v1182_v39, %v1172_v7 }
 0x1b8   : > { %v1293_v36 = vpack.c.bf16 %v3315_v42, %v3326_v2  ;;  %v1218_v22 = vsel %vm292_vm4, %v1202_v11, 0.0  ;;  %v3350_v52 = vsel %vm318_vm3, %v1166_v24, %v1176_v6  ;;  %v1196_v54 = vsel %vm318_vm3, %v1176_v6, %v1166_v24 }
 0x1b9   : > { %v1292_v29 = vpack.c.bf16 %v1192_v0, %v1218_v22  ;;  %v3360_v7 = vsel %vm292_vm4, %v1196_v54, 0.0  ;;  %v3364_v39 = vsel %vm318_vm3, %v1174_v53, %v1184_v57  ;;  %v1204_v47 = vsel %vm318_vm3, %v1184_v57, %v1174_v53 }
 0x1ba   : > { %v1286_v21 = vpack.c.bf16 %v3350_v52, %v3360_v7  ;;  %v1222_v32 = vsel %vm292_vm4, %v1204_v47, 0.0  ;;  %v3376_v24 = vsel %vm318_vm3, %v1175_v58, %v1185_v17  ;;  %v1205_v6 = vsel %vm318_vm3, %v1185_v17, %v1175_v58 }
 0x1bb   : > { %1372 = vrot.lane.b32.xlu1 %v1314_v49, %s2316_s13  ;;  %v1265_v46 = vsel %vm397_vm1, %v1245_v48, %v1235_v59  ;;  %v1294_v61 = vpack.c.bf16 %v3364_v39, %v1222_v32  ;;  %v3390_v53 = vsel %vm292_vm4, %v1205_v6, 0.0  ;;  %v1255_v58 = vsel %vm397_vm1, %v1235_v59, %v1245_v48 }
 0x1bc   : > { %v1295_v56 = vpack.c.bf16 %v3376_v24, %v3390_v53  ;;  %v1285_v25 = vsel %vm372_vm2, %v1265_v46, 0.0  ;;  %vm3599_vm3 = vcmask 31744   ;;  %vm3600_vm4 = vcmask 64512  }
 0x1bd   : > { %v1315_v33 = vpack.c.bf16 %v1285_v25, %v1255_v58  ;;  %vm3601_vm5 = vcmask 97280   ;;  %vm3602_vm1 = vmmov %vm3599_vm3  ;;  %v1560_v48 = vsel %vm651_vm0, %v3000_v20, 0 }
 0x1be   : > { %vm3603_vm2 = vmmov %vm3602_vm1 }
 0x1bf   : > { %1356 = vrot.lane.b32.xlu1 %v1306_v50, %s2316_s13  ;;  %vm3604_vm14 = vmmov %vm3600_vm4 }
 0x1c0   : > { %vm3605_vm15 = vmmov %vm3600_vm4 }
 0x1c1   : > { %vm3606_vm8 = vmmov %vm3601_vm5 }
 0x1c2   : > { %vm3607_vm9 = vmmov %vm3601_vm5 }
 0x1c3   : > { %1374 = vrot.lane.b32.xlu1 %v1315_v33, %s2316_s13  ;;  %vm3608_vm10 = vmmov %vm3601_vm5  ;;  %s1948_s13 = sshll.u32 %s260_s10, 3 }
 0x1c4   : > { %vm3609_vm11 = vmmov %vm3601_vm5  ;;  %s3481_s15 = scalar_lea.vmem %s3575_s5, %s1948_s13 }
 0x1c5   : > { %vm3610_vm13 = vmmov %vm3602_vm1 }
 0x1c6   : > { %vm3611_vm0 = vmmov %vm3602_vm1 }
 0x1c7   : > { %vm3612_vm7 = vmmov %vm3600_vm4 }
 0x1c8   : > { %vm3613_vm12 = vmmov %vm3600_vm4 }
 0x1c9   : > { %vm3614_vm6 = vmmov %vm3601_vm5 }
 0x1fd   : > { %v1329_v38 = vpop.permute.xlu0 %1328 }
 0x1fe   : > { %v1381_v17 = vsel %vm3599_vm3, %v1287_v60, %v1329_v38  ;;  %vm3615_vm3 = vmmov %vm3601_vm5 }
 0x203   : > { %v1359_v28 = vpop.permute.xlu0 %1358 }
 0x204   : > { %v1409_v51 = vsel %vm3600_vm4, %v1381_v17, %v1359_v28  ;;  %vm3616_vm4 = vmmov %vm3615_vm3 }
 0x205   : > { %2151 = vmatprep.mubr.msk.bf16.mxu1 %vm3601_vm5, %v1409_v51  ;;  %vm3617_vm5 = vmmov %vm3615_vm3 }
 0x207   : > { %v1333_v23 = vpop.permute.xlu0 %1332 }
 0x208   : > { %v1331_v13 = vpop.permute.xlu1 %1330  ;;  %v1387_v50 = vsel %vm3603_vm2, %v1289_v16, %v1333_v23  ;;  %vm3619_vm2 = vmmov %vm3611_vm0 }
 0x209   : > { %v1384_v59 = vsel %vm3602_vm1, %v1288_v9, %v1331_v13  ;;  %vm3618_vm1 = vmmov %vm3611_vm0 }
 0x20f   : > { %v1363_v1 = vpop.permute.xlu0 %1362 }
 0x210   : > { %v1413_v63 = vsel %vm3605_vm15, %v1387_v50, %v1363_v1  ;;  %vm3621_vm15 = vmmov %vm3612_vm7 }
 0x212   : > { %v1361_v4 = vpop.permute.xlu1 %1360 }
 0x213   : > { %v1411_v3 = vsel %vm3604_vm14, %v1384_v59, %v1361_v4  ;;  %v1337_v57 = vpop.permute.xlu0 %1336  ;;  %vm3620_vm14 = vmmov %vm3612_vm7 }
 0x214   : > { %2152 = vmatmul.mubr.msk.bf16.vlgmr.msra.gmra.mxu1 %vm3606_vm8, %v1411_v3  ;;  %2187 = vmatprep.mubr.msk.bf16.mxu0 %vm3607_vm9, %v1411_v3  ;;  %v1393_v12 = vsel %vm3611_vm0, %v1291_v15, %v1337_v57  ;;  %vm3622_vm8 = vmmov %vm3615_vm3 }
 0x215   : > { %2168 = vmatpush3.bf16.msra.mxu1 %v1560_v48  ;;  %2155 = vmatprep.mubr.msk.bf16.mxu1 %vm3608_vm10, %v1413_v63  ;;  %vm3623_vm9 = vmmov %vm3615_vm3 }
 0x216   : > { %2188 = vmatmul.mubr.msk.bf16.vlgmr.msra.gmra.mxu0 %vm3609_vm11, %v1413_v63  ;;  %v1335_v55 = vpop.permute.xlu1 %1334  ;;  %vm3624_vm10 = vmmov %vm3615_vm3 }
 0x217   : > { %v1390_v20 = vsel %vm3610_vm13, %v1290_v5, %v1335_v55  ;;  %vm3625_vm11 = vmmov %vm3615_vm3 }
 0x218   : > { %v1367_v62 = vpop.permute.xlu0 %1366  ;;  %vm3626_vm13 = vmmov %vm3611_vm0 }
 0x219   : > { %v1417_v18 = vsel %vm3613_vm12, %v1393_v12, %v1367_v62  ;;  %vm3627_vm0 = vmmov %vm3612_vm7 }
 0x21a   : > { %vm3629_vm12 = vmmov %vm3615_vm3 }
 0x21c   : > { %v1341_v27 = vpop.permute.xlu0 %1340 }
 0x21d   : > { %v1365_v41 = vpop.permute.xlu1 %1364  ;;  %v1399_v30 = vsel %vm3619_vm2, %v1293_v36, %v1341_v27  ;;  %vm3634_vm2 = vmmov %vm3616_vm4 }
 0x21e   : > { %v1415_v44 = vsel %vm3612_vm7, %v1390_v20, %v1365_v41  ;;  %vm3628_vm7 = vmmov %vm3615_vm3 }
 0x21f   : > { %2156 = vmatmul.mubr.msk.bf16.gmra.mxu1 %vm3614_vm6, %v1415_v44  ;;  %2191 = vmatprep.mubr.msk.bf16.mxu0 %vm3615_vm3, %v1415_v44  ;;  %vm3630_vm6 = vmmov %vm3618_vm1 }
 0x220   : > { %2159 = vmatprep.mubr.msk.bf16.mxu1 %vm3616_vm4, %v1417_v18  ;;  %2192 = vmatmul.mubr.msk.bf16.gmra.mxu0 %vm3617_vm5, %v1417_v18  ;;  %v1371_v26 = vpop.permute.xlu0 %1370  ;;  %vm3631_vm3 = vmmov %vm3627_vm0 }
 0x221   : > { %v1339_v60 = vpop.permute.xlu1 %1338  ;;  %v1421_v45 = vsel %vm3621_vm15, %v1399_v30, %v1371_v26  ;;  %vm3632_vm5 = vmmov %vm3618_vm1  ;;  %v2261_v30 = vld [vmem:[%s2397_s9 + $0x38] sm:$0xff] }
 0x222   : > { %v1396_v34 = vsel %vm3618_vm1, %v1292_v29, %v1339_v60  ;;  %vm3633_vm1 = vmmov %vm3627_vm0 }
 0x223   : > { %vm3636_vm15 = vmmov %vm3634_vm2 }
 0x224   : > { %v1327_v16 = vpop.permute.xlu0 %1326 }
 0x225   : > { %v1369_v14 = vpop.permute.xlu1 %1368  ;;  %v1378_v10 = vsel %vm3630_vm6, %v1286_v21, %v1327_v16 }
 0x226   : > { %v1419_v43 = vsel %vm3620_vm14, %v1396_v34, %v1369_v14  ;;  %vm3635_vm14 = vmmov %vm3634_vm2 }
 0x227   : > { %2160 = vmatmul.mubr.msk.bf16.gmra.mxu1 %vm3622_vm8, %v1419_v43  ;;  %2195 = vmatprep.mubr.msk.bf16.mxu0 %vm3623_vm9, %v1419_v43  ;;  %vm3637_vm8 = vmmov %vm3634_vm2 }
 0x228   : > { %2163 = vmatprep.mubr.msk.bf16.mxu1 %vm3624_vm10, %v1421_v45  ;;  %2196 = vmatmul.mubr.msk.bf16.gmra.mxu0 %vm3625_vm11, %v1421_v45  ;;  %v1345_v37 = vpop.permute.xlu0 %1344  ;;  %vm3638_vm9 = vmmov %vm3634_vm2 }
 0x229   : > { %v1343_v49 = vpop.permute.xlu1 %1342  ;;  %v1405_v31 = vsel %vm3632_vm5, %v1295_v56, %v1345_v37  ;;  %vm3639_vm10 = vmmov %vm3634_vm2 }
 0x22a   : > { %v1402_v19 = vsel %vm3626_vm13, %v1294_v61, %v1343_v49  ;;  %vm3640_vm11 = vmmov %vm3634_vm2 }
 0x22b   : > { %vm3641_vm13 = vmmov %vm3634_vm2 }
 0x22d   : > { %v1373_v40 = vpop.permute.xlu1 %1372 }
 0x22e   : > { %v1423_v9 = vsel %vm3627_vm0, %v1402_v19, %v1373_v40  ;;  %vm3642_vm0 = vmmov %vm3632_vm5  ;;  %v2262_v40 = vld [vmem:[%s2397_s9 + $0x28] sm:$0xff] }
 0x22f   : > { %2164 = vmatmul.mubr.msk.bf16.gmra.mxu1 %vm3628_vm7, %v1423_v9  ;;  %2199 = vmatprep.mubr.msk.bf16.mxu0 %vm3629_vm12, %v1423_v9  ;;  %vm3643_vm7 = vmmov %vm3642_vm0 }
 0x230   : > { %vm3644_vm12 = vmmov %vm3642_vm0 }
 0x231   : > { %v1357_v35 = vpop.permute.xlu1 %1356  ;;  %vm3645_vm6 = vmmov %vm3642_vm0 }
 0x232   : > { %v1407_v15 = vsel %vm3631_vm3, %v1378_v10, %v1357_v35  ;;  %vm3646_vm3 = vmmov %vm3642_vm0 }
 0x233   : > { %2169 = vmatprep.mubr.msk.bf16.mxu1 %vm3616_vm4, %v1407_v15  ;;  %vm3647_vm4 = vmmov %vm3642_vm0 }
 0x234   : > { %vm3648_vm5 = vmmov %vm3642_vm0 }
 0x235   : > { %v1375_v42 = vpop.permute.xlu1 %1374 }
 0x236   : > { %v1425_v8 = vsel %vm3633_vm1, %v1405_v31, %v1375_v42  ;;  %v2263_v42 = vld [vmem:[%s2397_s9 + $0x50] sm:$0xff]  ;;  %vm3649_vm1 = vmmov %vm3642_vm0 }
 0x237   : > { %2170 = vmatmul.mubr.msk.bf16.vlgmr.msra.gmra.mxu1 %vm3634_vm2, %v1409_v51  ;;  %2200 = vmatmul.mubr.msk.bf16.gmra.mxu0 %vm3635_vm14, %v1425_v8  ;;  %v3475_v51 = vld [vmem:[%s3574_s4] ss:$0 sm:$0xff]  ;;  %vm3650_vm2 = vmmov %vm3642_vm0 }
 0x238   : > { %2173 = vmatprep.mubr.msk.bf16.mxu1 %vm3636_vm15, %v1411_v3  ;;  %vm3651_vm14 = vmmov %vm3642_vm0 }
 0x239   : > { %vm3652_vm15 = vmmov %vm3642_vm0 }
 0x23f   : > { %2174 = vmatmul.mubr.msk.bf16.gmra.mxu1 %vm3637_vm8, %v1413_v63  ;;  %v2259_v63 = vld [vmem:[%s2397_s9 + $0x30] sm:$0xff]  ;;  %vm3653_vm8 = vmmov %vm3642_vm0 }
 0x240   : > { %2177 = vmatprep.mubr.msk.bf16.mxu1 %vm3638_vm9, %v1415_v44  ;;  %v2260_v44 = vld [vmem:[%s2397_s9 + $0x20] sm:$0xff]  ;;  %vm3654_vm9 = vmmov %vm3642_vm0 }
 0x247   : > { %2178 = vmatmul.mubr.msk.bf16.gmra.mxu1 %vm3639_vm10, %v1417_v18  ;;  %vm3655_vm10 = vmmov %vm3642_vm0 }
 0x248   : > { %2181 = vmatprep.mubr.msk.bf16.mxu1 %vm3640_vm11, %v1419_v43  ;;  %vm3656_vm11 = vmmov %vm3642_vm0 }
 0x24f   : > { %2182 = vmatmul.mubr.msk.bf16.gmra.mxu1 %vm3641_vm13, %v1421_v45  ;;  %vm3657_vm13 = vmmov %vm3642_vm0 }
 0x2d4   : > { %v2153_v5 = vpop.f32.mrf.mxu1 }
 0x2d6   : > { %v1489_v2 = vpop.f32.mrf.mxu1  ;;  %v2189_v36 = vpop.f32.mrf.mxu0 }
 0x2d8   : > { %v2154_v0 = vpop.f32.mrf.mxu1  ;;  %v1706_v52 = vpop.f32.mrf.mxu0 }
 0x2da   : > { %v1492_v11 = vpop.f32.mrf.mxu1  ;;  %v2190_v7 = vpop.f32.mrf.mxu0 }
 0x2dc   : > { %v1709_v21 = vpop.f32.mrf.mxu0 }
 0x2df   : > { %v2157_v22 = vpop.f32.mrf.mxu1 }
 0x2e0   : > { %v2193_v6 = vpop.f32.mrf.mxu0 }
 0x2e1   : > { %v1505_v54 = vpop.f32.mrf.mxu1 }
 0x2e2   : > { %v1722_v53 = vpop.f32.mrf.mxu0 }
 0x2e3   : > { %v2158_v29 = vpop.f32.mrf.mxu1 }
 0x2e4   : > { %v2194_v25 = vpop.f32.mrf.mxu0 }
 0x2e5   : > { %v3451_v39 = vpop.f32.mrf.mxu1 }
 0x2e6   : > { %v1725_v28 = vpop.f32.mrf.mxu0 }
 0x2e7   : > { %v3453_v47 = vpop.f32.mrf.mxu1 }
 0x2e8   : > { %v2197_v3 = vpop.f32.mrf.mxu0 }
 0x2e9   : > { %v3455_v32 = vpop.f32.mrf.mxu1 }
 0x2ea   : > { %v1738_v34 = vpop.f32.mrf.mxu0 }
 0x2eb   : > { %v3457_v24 = vpop.f32.mrf.mxu1 }
 0x2ec   : > { %v2198_v15 = vpop.f32.mrf.mxu0 }
 0x2ed   : > { %v3460_v46 = vpop.f32.mrf.mxu1 }
 0x2ef   : > { %v3462_v61 = vpop.f32.mrf.mxu1 }
 0x2f1   : > { %v3465_v56 = vpop.f32.mrf.mxu1 }
 0x2f3   : > { %v3467_v58 = vpop.f32.mrf.mxu1 }
 0x2f5   : > { %v3470_v33 = vpop.f32.mrf.mxu1 }
 0x2f7   : > { %v2171_v38 = vpop.f32.mrf.mxu1 }
 0x2f8   : > { %v1605_v17 = vadd.f32 %v2171_v38, %v2153_v5 }
 0x2f9   : > { %v1596_v23 = vpop.f32.mrf.mxu1 }
 0x2fa   : > { %v1771_v13 = vadd.f32 %v2189_v36, %v1605_v17  ;;  %v1597_v1 = vadd.f32 %v1596_v23, %v1489_v2  ;;  %v2264_v36 = vld [vmem:[%s2397_s9 + $0x40] sm:$0xff] }
 0x2fb   : > { %v2172_v59 = vpop.f32.mrf.mxu1 }
 0x2fc   : > { %v1794_v4 = vadd.f32 %v3475_v51, %v1771_v13  ;;  %v1769_v48 = vadd.f32 %v1706_v52, %v1597_v1  ;;  %v1608_v50 = vadd.f32 %v2172_v59, %v2154_v0 }
 0x2fd   : > { %v1599_v57 = vpop.f32.mrf.mxu1 }
 0x2fe   : > { %v1810_v55 = vadd.f32 %v2259_v63, %v1794_v4  ;;  %v1792_v62 = vadd.f32 %v3475_v51, %v1769_v48  ;;  %v1772_v20 = vadd.f32 %v2190_v7, %v1608_v50  ;;  %v1600_v41 = vadd.f32 %v1599_v57, %v1492_v11  ;;  %v1741_v7 = vpop.f32.mrf.mxu0  ;;  %v2267_v48 = vld [vmem:[%s2397_s9 + $0x70] sm:$0xff] }
 0x2ff   : > { %v2175_v12 = vpop.f32.mrf.mxu1 }
 0x300   : > { %1826 = vst.msk [vmem:[%s3481_s15 + $0x10] sm:$0xff] %vm3642_vm0, %v1810_v55  ;;  %v1808_v27 = vadd.f32 %v2260_v44, %v1792_v62  ;;  %v1795_v18 = vadd.f32 %v3475_v51, %v1772_v20  ;;  %v1770_v60 = vadd.f32 %v1709_v21, %v1600_v41  ;;  %v1621_v26 = vadd.f32 %v2175_v12, %v2157_v22  ;;  %v2201_v17 = vpop.f32.mrf.mxu0  ;;  %v2268_v62 = vld [vmem:[%s2397_s9 + $0x60] sm:$0xff] }
 0x301   : > { %v1612_v14 = vpop.f32.mrf.mxu1 }
 0x302   : > { %1824 = vst.msk [vmem:[%s3481_s15] sm:$0xff] %vm3643_vm7, %v1808_v27  ;;  %v1811_v43 = vadd.f32 %v2261_v30, %v1795_v18  ;;  %v1793_v45 = vadd.f32 %v3475_v51, %v1770_v60  ;;  %v1775_v49 = vadd.f32 %v2193_v6, %v1621_v26  ;;  %v1613_v16 = vadd.f32 %v1612_v14, %v1505_v54  ;;  %v2265_v6 = vld [vmem:[%s2397_s9 + $0x58] sm:$0xff]  ;;  %v1754_v63 = vpop.f32.mrf.mxu0  ;;  %v2270_v30 = vld [vmem:[%s2397_s9 + $0x68] sm:$0xff] }
 0x303   : > { %v2176_v19 = vpop.f32.mrf.mxu1  ;;  %v2269_v27 = vld [vmem:[%s2397_s9 + $0x78] sm:$0xff] }
 0x304   : > { %1827 = vst.msk [vmem:[%s3481_s15 + $0x18] sm:$0xff] %vm3644_vm12, %v1811_v43  ;;  %v1809_v9 = vadd.f32 %v2262_v40, %v1793_v45  ;;  %v1798_v10 = vadd.f32 %v3475_v51, %v1775_v49  ;;  %v1773_v35 = vadd.f32 %v1722_v53, %v1613_v16  ;;  %v1624_v37 = vadd.f32 %v2176_v19, %v2158_v29 }
 0x305   : > { %v1615_v31 = vpop.f32.mrf.mxu1 }
 0x306   : > { %1825 = vst.msk [vmem:[%s3481_s15 + $0x8] sm:$0xff] %vm3645_vm6, %v1809_v9  ;;  %v1814_v8 = vadd.f32 %v2263_v42, %v1798_v10  ;;  %v1796_v5 = vadd.f32 %v3475_v51, %v1773_v35  ;;  %v1776_v2 = vadd.f32 %v2194_v25, %v1624_v37  ;;  %v1616_v0 = vadd.f32 %v1615_v31, %v3451_v39  ;;  %v2272_v37 = vld [vmem:[%s2397_s9 + $0x80] sm:$0xff]  ;;  %v2273_v42 = vld [vmem:[%s2397_s9 + $0x98] sm:$0xff] }
 0x307   : > { %v2179_v11 = vpop.f32.mrf.mxu1 }
 0x308   : > { %1830 = vst.msk [vmem:[%s3481_s15 + $0x30] sm:$0xff] %vm3646_vm3, %v1814_v8  ;;  %v1812_v22 = vadd.f32 %v2264_v36, %v1796_v5  ;;  %v1799_v52 = vadd.f32 %v3475_v51, %v1776_v2  ;;  %v1774_v54 = vadd.f32 %v1725_v28, %v1616_v0  ;;  %v1637_v29 = vadd.f32 %v2179_v11, %v3453_v47  ;;  %v2266_v47 = vld [vmem:[%s2397_s9 + $0x48] sm:$0xff] }
 0x309   : > { %v1628_v21 = vpop.f32.mrf.mxu1  ;;  %v2274_v2 = vld [vmem:[%s2397_s9 + $0x88] sm:$0xff] }
 0x30a   : > { %1828 = vst.msk [vmem:[%s3481_s15 + $0x20] sm:$0xff] %vm3647_vm4, %v1812_v22  ;;  %v1815_v39 = vadd.f32 %v2265_v6, %v1799_v52  ;;  %v1797_v53 = vadd.f32 %v3475_v51, %v1774_v54  ;;  %v1779_v25 = vadd.f32 %v2197_v3, %v1637_v29  ;;  %v1629_v38 = vadd.f32 %v1628_v21, %v3455_v32 }
 0x30b   : > { %v2180_v23 = vpop.f32.mrf.mxu1 }
 0x30c   : > { %1831 = vst.msk [vmem:[%s3481_s15 + $0x38] sm:$0xff] %vm3648_vm5, %v1815_v39  ;;  %v1813_v28 = vadd.f32 %v2266_v47, %v1797_v53  ;;  %v1802_v13 = vadd.f32 %v3475_v51, %v1779_v25  ;;  %v1777_v1 = vadd.f32 %v1738_v34, %v1629_v38  ;;  %v1640_v59 = vadd.f32 %v2180_v23, %v3457_v24  ;;  %v2202_v34 = vpop.f32.mrf.mxu0 }
 0x30d   : > { %v1631_v4 = vpop.f32.mrf.mxu1 }
 0x30e   : > { %1829 = vst.msk [vmem:[%s3481_s15 + $0x28] sm:$0xff] %vm3649_vm1, %v1813_v28  ;;  %v1818_v32 = vadd.f32 %v2267_v48, %v1802_v13  ;;  %v1800_v50 = vadd.f32 %v3475_v51, %v1777_v1  ;;  %v1780_v3 = vadd.f32 %v2198_v15, %v1640_v59  ;;  %v1632_v57 = vadd.f32 %v1631_v4, %v3460_v46  ;;  %v1757_v35 = vpop.f32.mrf.mxu0 }
 0x30f   : > { %v2183_v55 = vpop.f32.mrf.mxu1 }
 0x310   : > { %1834 = vst.msk [vmem:[%s3481_s15 + $0x50] sm:$0xff] %vm3650_vm2, %v1818_v32  ;;  %v1816_v24 = vadd.f32 %v2268_v62, %v1800_v50  ;;  %v1803_v20 = vadd.f32 %v3475_v51, %v1780_v3  ;;  %v1778_v41 = vadd.f32 %v1741_v7, %v1632_v57  ;;  %v1653_v12 = vadd.f32 %v2183_v55, %v3462_v61 }
 0x311   : > { %v1644_v44 = vpop.f32.mrf.mxu1 }
 0x312   : > { %1832 = vst.msk [vmem:[%s3481_s15 + $0x40] sm:$0xff] %vm3651_vm14, %v1816_v24  ;;  %v1819_v46 = vadd.f32 %v2269_v27, %v1803_v20  ;;  %v1801_v18 = vadd.f32 %v3475_v51, %v1778_v41  ;;  %v1783_v60 = vadd.f32 %v2201_v17, %v1653_v12  ;;  %v1645_v26 = vadd.f32 %v1644_v44, %v3465_v56  ;;  %v2271_v56 = vld [vmem:[%s2397_s9 + $0x90] sm:$0xff] }
 0x313   : > { %v2184_v14 = vpop.f32.mrf.mxu1 }
 0x314   : > { %1835 = vst.msk [vmem:[%s3481_s15 + $0x58] sm:$0xff] %vm3652_vm15, %v1819_v46  ;;  %v1817_v61 = vadd.f32 %v2270_v30, %v1801_v18  ;;  %v1806_v43 = vadd.f32 %v3475_v51, %v1783_v60  ;;  %v1781_v45 = vadd.f32 %v1754_v63, %v1645_v26  ;;  %v1656_v49 = vadd.f32 %v2184_v14, %v3467_v58 }
 0x315   : > { %v1647_v16 = vpop.f32.mrf.mxu1 }
 0x316   : > { %1833 = vst.msk [vmem:[%s3481_s15 + $0x48] sm:$0xff] %vm3653_vm8, %v1817_v61  ;;  %v1822_v19 = vadd.f32 %v2271_v56, %v1806_v43  ;;  %v1804_v40 = vadd.f32 %v3475_v51, %v1781_v45  ;;  %v1784_v9 = vadd.f32 %v2202_v34, %v1656_v49  ;;  %v1648_v10 = vadd.f32 %v1647_v16, %v3470_v33 }
 0x318   : > { %1838 = vst.msk [vmem:[%s3481_s15 + $0x70] sm:$0xff] %vm3654_vm9, %v1822_v19  ;;  %v1820_v15 = vadd.f32 %v2272_v37, %v1804_v40  ;;  %v1807_v58 = vadd.f32 %v3475_v51, %v1784_v9  ;;  %v1782_v31 = vadd.f32 %v1757_v35, %v1648_v10 }
 0x31a   : > { %1836 = vst.msk [vmem:[%s3481_s15 + $0x60] sm:$0xff] %vm3655_vm10, %v1820_v15  ;;  %v1823_v8 = vadd.f32 %v2273_v42, %v1807_v58  ;;  %v1805_v5 = vadd.f32 %v3475_v51, %v1782_v31 }
 0x31c   : > { %1839 = vst.msk [vmem:[%s3481_s15 + $0x78] sm:$0xff] %vm3656_vm11, %v1823_v8  ;;  %v1821_v0 = vadd.f32 %v2274_v2, %v1805_v5 }
 0x31e   : > { %1837 = vst.msk [vmem:[%s3481_s15 + $0x68] sm:$0xff] %vm3657_vm13, %v1821_v0 }
 0x31f PF: > { %s15_s22 = sadd.s32 1, %s2313_s22   ;;  %s3658_s18 = smov %s2305_s20 }
 0x320   : > { %p12_p8 = scmp.ge.s32.totalorder %s15_s22, 6   ;;  %s3659_s19 = smov %s2309_s21 }
 0x321   : > { %s3660_s20 = smov %s3663_s23  ;;  %s3661_s21 = smov %s3667_s24 }
 0x322   :  { %14 = sbr.rel (!%p12_p8) target bundleno = 3 (0x3), region = 74 }

</bundles_post_ra>
